<compile_context>
chip_gen: v5e
topology: v5e:2x2
jax: 0.10.0
libtpu: 0.0.40
codegen_flags: <defaults>
</compile_context>

<pallas_src>
import functools

import jax
import jax.numpy as jnp
from jax import lax
from jax.experimental import pallas as pl
from jax.experimental.pallas import tpu as pltpu


def _leaky_relu(v, slope=0.2):
    return jnp.where(v >= 0, v, slope * v)


def residual_block_kernel(x_ref, w0_ref, b0_ref, w1_ref, b1_ref, o_ref,
                          xpad_ref, ypad_ref, *, H, W, C, last_act,
                          matmul_dtype):
    # x_ref   : (1, H, W, C)      input block (one batch element)
    # w0/w1   : (3, 3, C, C)      conv weights, HWIO
    # b0/b1   : (1, C)            conv biases
    # o_ref   : (1, H, W, C)      output block
    # xpad/ypad: (H+2, W+2, C)    VMEM scratch, zero-bordered padded planes
    f32 = jnp.float32

    def zero_border(pad_ref):
        # Only the 1-element halo needs zeroing; the interior is fully
        # overwritten each step (no full-plane re-zero pass).
        pad_ref[0:1, :, :] = jnp.zeros((1, W + 2, C), f32)
        pad_ref[H + 1:H + 2, :, :] = jnp.zeros((1, W + 2, C), f32)
        pad_ref[:, 0:1, :] = jnp.zeros((H + 2, 1, C), f32)
        pad_ref[:, W + 1:W + 2, :] = jnp.zeros((H + 2, 1, C), f32)

    def conv3x3(pad_ref, w_ref, bias_ref):
        # pad_ref: (H+2, W+2, C) zero-bordered plane -> (H*W, C) f32 output.
        # Bias folded into the accumulator init (hoisted broadcast).
        acc = jnp.broadcast_to(bias_ref[...].astype(f32), (H * W, C))
        for ky in range(3):
            for kx in range(3):
                patch = pad_ref[ky:ky + H, kx:kx + W, :].reshape(H * W, C)
                wt = w_ref[ky, kx]
                if matmul_dtype is not None:
                    patch = patch.astype(matmul_dtype)
                    wt = wt.astype(matmul_dtype)
                acc = acc + jnp.dot(patch, wt, preferred_element_type=f32)
        return acc

    # ---- stage input into padded scratch (single HBM read, reused below) ---
    xin = x_ref[0].astype(f32)                       # (H, W, C)
    zero_border(xpad_ref)
    xpad_ref[1:H + 1, 1:W + 1, :] = xin

    # ---- conv0 + leaky_relu -> padded intermediate for conv1 ---------------
    h0 = conv3x3(xpad_ref, w0_ref, b0_ref)           # (H*W, C)
    zero_border(ypad_ref)
    ypad_ref[1:H + 1, 1:W + 1, :] = _leaky_relu(h0).reshape(H, W, C)

    # ---- conv1 --------------------------------------------------------------
    h1 = conv3x3(ypad_ref, w1_ref, b1_ref)           # (H*W, C)

    # ---- residual + final activation ----------------------------------------
    if last_act:
        out = _leaky_relu(xin.reshape(H * W, C) + h1)
    else:
        out = h1
    o_ref[0] = out.reshape(H, W, C).astype(o_ref.dtype)


def residual_block(x_nchw, w0, b0, w1, b1, *, last_act=True, matmul_dtype=None):
    """x_nchw: (N, C, H, W) float32.  w*: (3,3,C,C) HWIO.  b*: (C,).

    matmul_dtype: None keeps f32 MXU matmuls; jnp.bfloat16 speeds up the
    contraction on v6e/v7x for large C (not used for the small-C test).
    """
    x = jnp.transpose(x_nchw, (0, 2, 3, 1))          # NCHW -> NHWC
    N, H, W, C = x.shape
    b0r = b0.reshape(1, C).astype(jnp.float32)
    b1r = b1.reshape(1, C).astype(jnp.float32)

    kernel = functools.partial(residual_block_kernel, H=H, W=W, C=C,
                               last_act=last_act, matmul_dtype=matmul_dtype)

    out_nhwc = pl.pallas_call(
        kernel,
        out_shape=jax.ShapeDtypeStruct((N, H, W, C), x.dtype),
        grid=(N,),
        in_specs=[
            pl.BlockSpec((1, H, W, C), lambda n: (n, 0, 0, 0)),
            pl.BlockSpec((3, 3, C, C), lambda n: (0, 0, 0, 0)),
            pl.BlockSpec((1, C), lambda n: (0, 0)),
            pl.BlockSpec((3, 3, C, C), lambda n: (0, 0, 0, 0)),
            pl.BlockSpec((1, C), lambda n: (0, 0)),
        ],
        out_specs=pl.BlockSpec((1, H, W, C), lambda n: (n, 0, 0, 0)),
        scratch_shapes=[
            pltpu.VMEM((H + 2, W + 2, C), jnp.float32),   # padded input
            pltpu.VMEM((H + 2, W + 2, C), jnp.float32),   # padded conv0 out
        ],
        compiler_params=pltpu.CompilerParams(
            dimension_semantics=("parallel",),
            vmem_limit_bytes=64 * 1024 * 1024),
    )(x, w0, b0r, w1, b1r)

    return jnp.transpose(out_nhwc, (0, 3, 1, 2))      # NHWC -> NCHW


def _reference(x_nchw, w0, b0, w1, b1, last_act=True):
    """Pure-JAX reference (lax.conv), NCHW in/out, weights in HWIO."""
    x = jnp.transpose(x_nchw, (0, 2, 3, 1))
    dn = ('NHWC', 'HWIO', 'NHWC')
    y = lax.conv_general_dilated(x, w0, (1, 1), 'SAME', dimension_numbers=dn)
    y = _leaky_relu(y + b0)
    y = lax.conv_general_dilated(y, w1, (1, 1), 'SAME', dimension_numbers=dn)
    y = y + b1
    if last_act:
        y = _leaky_relu(x + y)
    return jnp.transpose(y, (0, 3, 1, 2))


if __name__ == "__main__":
    N, C, H, W = 2, 4, 16, 16
    key = jax.random.PRNGKey(0)
    kx, k0, kb0, k1, kb1 = jax.random.split(key, 5)

    x = jax.random.normal(kx, (N, C, H, W), jnp.float32)
    # Deterministic synthetic parameters (Conv2d(ch, ch, 3, padding=1) shapes),
    # stored in HWIO layout: (kh, kw, in_ch, out_ch).
    fan_in = C * 3 * 3
    bound = 1.0 / jnp.sqrt(fan_in)
    w0 = jax.random.uniform(k0, (3, 3, C, C), jnp.float32, -bound, bound)
    b0 = jax.random.uniform(kb0, (C,), jnp.float32, -bound, bound)
    w1 = jax.random.uniform(k1, (3, 3, C, C), jnp.float32, -bound, bound)
    b1 = jax.random.uniform(kb1, (C,), jnp.float32, -bound, bound)

    out = residual_block(x, w0, b0, w1, b1, last_act=True)
    out = jax.block_until_ready(out)

    ref = _reference(x, w0, b0, w1, b1, last_act=True)
    assert out.shape == (N, C, H, W)
    assert jnp.allclose(out, ref, atol=1e-4, rtol=1e-4), \
        f"max abs err {jnp.max(jnp.abs(out - ref))}"

    print("KERNEL_OK")
</pallas_src>

<mosaic_0001>
module attributes {stable_mosaic.version = 11 : i64} {
  func.func @residual_block_kernel(%arg0: i32, %arg1: memref<1x16x16x4xf32, #tpu.memory_space<vmem>>, %arg2: memref<3x3x4x4xf32, #tpu.memory_space<vmem>>, %arg3: memref<1x4xf32, #tpu.memory_space<vmem>>, %arg4: memref<3x3x4x4xf32, #tpu.memory_space<vmem>>, %arg5: memref<1x4xf32, #tpu.memory_space<vmem>>, %arg6: memref<1x16x16x4xf32, #tpu.memory_space<vmem>>, %arg7: memref<18x18x4xf32, #tpu.memory_space<vmem>>, %arg8: memref<18x18x4xf32, #tpu.memory_space<vmem>>) attributes {dimension_semantics = [#tpu.dimension_semantics<parallel>], iteration_bounds = array<i64: 2>, scalar_prefetch = 0 : i64, scratch_operands = 2 : i64, tpu.core_type = #tpu.core_type<tc>, window_params = [{transform_indices = @transform_0, window_bounds = array<i64: 1, 16, 16, 4>}, {pipeline_mode = #tpu.pipeline_mode<synchronous>, transform_indices = @transform_1, window_bounds = array<i64: 3, 3, 4, 4>}, {pipeline_mode = #tpu.pipeline_mode<synchronous>, transform_indices = @transform_2, window_bounds = array<i64: 1, 4>}, {pipeline_mode = #tpu.pipeline_mode<synchronous>, transform_indices = @transform_3, window_bounds = array<i64: 3, 3, 4, 4>}, {pipeline_mode = #tpu.pipeline_mode<synchronous>, transform_indices = @transform_4, window_bounds = array<i64: 1, 4>}, {transform_indices = @transform_5, window_bounds = array<i64: 1, 16, 16, 4>}]} {
    %c0 = arith.constant 0 : index
    %c0_0 = arith.constant 0 : index
    %c0_1 = arith.constant 0 : index
    %c0_2 = arith.constant 0 : index
    %0 = vector.load %arg1[%c0, %c0_0, %c0_1, %c0_2] : memref<1x16x16x4xf32, #tpu.memory_space<vmem>>, vector<1x16x16x4xf32>
    %1 = vector.shape_cast %0 : vector<1x16x16x4xf32> to vector<16x16x4xf32>
    %cst = arith.constant 0.000000e+00 : f32
    %2 = vector.broadcast %cst : f32 to vector<1x18x4xf32>
    %c0_3 = arith.constant 0 : index
    %c0_4 = arith.constant 0 : index
    %c0_5 = arith.constant 0 : index
    %3 = vector.load %arg7[%c0_3, %c0_4, %c0_5] : memref<18x18x4xf32, #tpu.memory_space<vmem>>, vector<1x18x4xf32>
    tpu.vector_store %arg7[%c0_3, %c0_4, %c0_5], %2 {strides = array<i32>} : memref<18x18x4xf32, #tpu.memory_space<vmem>>, vector<1x18x4xf32>,
    %cst_6 = arith.constant 0.000000e+00 : f32
    %4 = vector.broadcast %cst_6 : f32 to vector<1x18x4xf32>
    %c17 = arith.constant 17 : index
    %c0_7 = arith.constant 0 : index
    %c0_8 = arith.constant 0 : index
    %5 = vector.load %arg7[%c17, %c0_7, %c0_8] : memref<18x18x4xf32, #tpu.memory_space<vmem>>, vector<1x18x4xf32>
    tpu.vector_store %arg7[%c17, %c0_7, %c0_8], %4 {strides = array<i32>} : memref<18x18x4xf32, #tpu.memory_space<vmem>>, vector<1x18x4xf32>,
    %cst_9 = arith.constant 0.000000e+00 : f32
    %6 = vector.broadcast %cst_9 : f32 to vector<18x1x4xf32>
    %c0_10 = arith.constant 0 : index
    %c0_11 = arith.constant 0 : index
    %c0_12 = arith.constant 0 : index
    %7 = vector.load %arg7[%c0_10, %c0_11, %c0_12] : memref<18x18x4xf32, #tpu.memory_space<vmem>>, vector<18x1x4xf32>
    tpu.vector_store %arg7[%c0_10, %c0_11, %c0_12], %6 {strides = array<i32>} : memref<18x18x4xf32, #tpu.memory_space<vmem>>, vector<18x1x4xf32>,
    %cst_13 = arith.constant 0.000000e+00 : f32
    %8 = vector.broadcast %cst_13 : f32 to vector<18x1x4xf32>
    %c0_14 = arith.constant 0 : index
    %c17_15 = arith.constant 17 : index
    %c0_16 = arith.constant 0 : index
    %9 = vector.load %arg7[%c0_14, %c17_15, %c0_16] : memref<18x18x4xf32, #tpu.memory_space<vmem>>, vector<18x1x4xf32>
    tpu.vector_store %arg7[%c0_14, %c17_15, %c0_16], %8 {strides = array<i32>} : memref<18x18x4xf32, #tpu.memory_space<vmem>>, vector<18x1x4xf32>,
    %c1 = arith.constant 1 : index
    %c1_17 = arith.constant 1 : index
    %c0_18 = arith.constant 0 : index
    %10 = vector.load %arg7[%c1, %c1_17, %c0_18] : memref<18x18x4xf32, #tpu.memory_space<vmem>>, vector<16x16x4xf32>
    tpu.vector_store %arg7[%c1, %c1_17, %c0_18], %1 {strides = array<i32>} : memref<18x18x4xf32, #tpu.memory_space<vmem>>, vector<16x16x4xf32>,
    %c0_19 = arith.constant 0 : index
    %c0_20 = arith.constant 0 : index
    %11 = vector.load %arg3[%c0_19, %c0_20] : memref<1x4xf32, #tpu.memory_space<vmem>>, vector<1x4xf32>
    %12 = vector.shape_cast %11 : vector<1x4xf32> to vector<1x4xf32>
    %13 = vector.broadcast %12 : vector<1x4xf32> to vector<256x4xf32>
    %c0_21 = arith.constant 0 : index
    %c0_22 = arith.constant 0 : index
    %c0_23 = arith.constant 0 : index
    %14 = vector.load %arg7[%c0_21, %c0_22, %c0_23] : memref<18x18x4xf32, #tpu.memory_space<vmem>>, vector<16x16x4xf32>
    %15 = vector.shape_cast %14 : vector<16x16x4xf32> to vector<256x4xf32>
    %c0_24 = arith.constant 0 : index
    %c0_25 = arith.constant 0 : index
    %c0_26 = arith.constant 0 : index
    %c0_27 = arith.constant 0 : index
    %16 = vector.load %arg2[%c0_24, %c0_25, %c0_26, %c0_27] : memref<3x3x4x4xf32, #tpu.memory_space<vmem>>, vector<1x1x4x4xf32>
    %17 = vector.shape_cast %16 : vector<1x1x4x4xf32> to vector<4x4xf32>
    %cst_28 = arith.constant dense<0.000000e+00> : vector<256x4xf32>
    %18 = tpu.matmul %15, %17, %cst_28 {dimension_numbers = #tpu.dot_dimension_numbers<[1], [0], [0], [1], [0, 0, 1, 1], [], []>} : vector<256x4xf32>, vector<4x4xf32>, vector<256x4xf32> -> vector<256x4xf32>
    %19 = arith.addf %13, %18 : vector<256x4xf32>
    %c0_29 = arith.constant 0 : index
    %c1_30 = arith.constant 1 : index
    %c0_31 = arith.constant 0 : index
    %20 = vector.load %arg7[%c0_29, %c1_30, %c0_31] : memref<18x18x4xf32, #tpu.memory_space<vmem>>, vector<16x16x4xf32>
    %21 = vector.shape_cast %20 : vector<16x16x4xf32> to vector<256x4xf32>
    %c0_32 = arith.constant 0 : index
    %c1_33 = arith.constant 1 : index
    %c0_34 = arith.constant 0 : index
    %c0_35 = arith.constant 0 : index
    %22 = vector.load %arg2[%c0_32, %c1_33, %c0_34, %c0_35] : memref<3x3x4x4xf32, #tpu.memory_space<vmem>>, vector<1x1x4x4xf32>
    %23 = vector.shape_cast %22 : vector<1x1x4x4xf32> to vector<4x4xf32>
    %cst_36 = arith.constant dense<0.000000e+00> : vector<256x4xf32>
    %24 = tpu.matmul %21, %23, %cst_36 {dimension_numbers = #tpu.dot_dimension_numbers<[1], [0], [0], [1], [0, 0, 1, 1], [], []>} : vector<256x4xf32>, vector<4x4xf32>, vector<256x4xf32> -> vector<256x4xf32>
    %25 = arith.addf %19, %24 : vector<256x4xf32>
    %c0_37 = arith.constant 0 : index
    %c2 = arith.constant 2 : index
    %c0_38 = arith.constant 0 : index
    %26 = vector.load %arg7[%c0_37, %c2, %c0_38] : memref<18x18x4xf32, #tpu.memory_space<vmem>>, vector<16x16x4xf32>
    %27 = vector.shape_cast %26 : vector<16x16x4xf32> to vector<256x4xf32>
    %c0_39 = arith.constant 0 : index
    %c2_40 = arith.constant 2 : index
    %c0_41 = arith.constant 0 : index
    %c0_42 = arith.constant 0 : index
    %28 = vector.load %arg2[%c0_39, %c2_40, %c0_41, %c0_42] : memref<3x3x4x4xf32, #tpu.memory_space<vmem>>, vector<1x1x4x4xf32>
    %29 = vector.shape_cast %28 : vector<1x1x4x4xf32> to vector<4x4xf32>
    %cst_43 = arith.constant dense<0.000000e+00> : vector<256x4xf32>
    %30 = tpu.matmul %27, %29, %cst_43 {dimension_numbers = #tpu.dot_dimension_numbers<[1], [0], [0], [1], [0, 0, 1, 1], [], []>} : vector<256x4xf32>, vector<4x4xf32>, vector<256x4xf32> -> vector<256x4xf32>
    %31 = arith.addf %25, %30 : vector<256x4xf32>
    %c1_44 = arith.constant 1 : index
    %c0_45 = arith.constant 0 : index
    %c0_46 = arith.constant 0 : index
    %32 = vector.load %arg7[%c1_44, %c0_45, %c0_46] : memref<18x18x4xf32, #tpu.memory_space<vmem>>, vector<16x16x4xf32>
    %33 = vector.shape_cast %32 : vector<16x16x4xf32> to vector<256x4xf32>
    %c1_47 = arith.constant 1 : index
    %c0_48 = arith.constant 0 : index
    %c0_49 = arith.constant 0 : index
    %c0_50 = arith.constant 0 : index
    %34 = vector.load %arg2[%c1_47, %c0_48, %c0_49, %c0_50] : memref<3x3x4x4xf32, #tpu.memory_space<vmem>>, vector<1x1x4x4xf32>
    %35 = vector.shape_cast %34 : vector<1x1x4x4xf32> to vector<4x4xf32>
    %cst_51 = arith.constant dense<0.000000e+00> : vector<256x4xf32>
    %36 = tpu.matmul %33, %35, %cst_51 {dimension_numbers = #tpu.dot_dimension_numbers<[1], [0], [0], [1], [0, 0, 1, 1], [], []>} : vector<256x4xf32>, vector<4x4xf32>, vector<256x4xf32> -> vector<256x4xf32>
    %37 = arith.addf %31, %36 : vector<256x4xf32>
    %c1_52 = arith.constant 1 : index
    %c1_53 = arith.constant 1 : index
    %c0_54 = arith.constant 0 : index
    %38 = vector.load %arg7[%c1_52, %c1_53, %c0_54] : memref<18x18x4xf32, #tpu.memory_space<vmem>>, vector<16x16x4xf32>
    %39 = vector.shape_cast %38 : vector<16x16x4xf32> to vector<256x4xf32>
    %c1_55 = arith.constant 1 : index
    %c1_56 = arith.constant 1 : index
    %c0_57 = arith.constant 0 : index
    %c0_58 = arith.constant 0 : index
    %40 = vector.load %arg2[%c1_55, %c1_56, %c0_57, %c0_58] : memref<3x3x4x4xf32, #tpu.memory_space<vmem>>, vector<1x1x4x4xf32>
    %41 = vector.shape_cast %40 : vector<1x1x4x4xf32> to vector<4x4xf32>
    %cst_59 = arith.constant dense<0.000000e+00> : vector<256x4xf32>
    %42 = tpu.matmul %39, %41, %cst_59 {dimension_numbers = #tpu.dot_dimension_numbers<[1], [0], [0], [1], [0, 0, 1, 1], [], []>} : vector<256x4xf32>, vector<4x4xf32>, vector<256x4xf32> -> vector<256x4xf32>
    %43 = arith.addf %37, %42 : vector<256x4xf32>
    %c1_60 = arith.constant 1 : index
    %c2_61 = arith.constant 2 : index
    %c0_62 = arith.constant 0 : index
    %44 = vector.load %arg7[%c1_60, %c2_61, %c0_62] : memref<18x18x4xf32, #tpu.memory_space<vmem>>, vector<16x16x4xf32>
    %45 = vector.shape_cast %44 : vector<16x16x4xf32> to vector<256x4xf32>
    %c1_63 = arith.constant 1 : index
    %c2_64 = arith.constant 2 : index
    %c0_65 = arith.constant 0 : index
    %c0_66 = arith.constant 0 : index
    %46 = vector.load %arg2[%c1_63, %c2_64, %c0_65, %c0_66] : memref<3x3x4x4xf32, #tpu.memory_space<vmem>>, vector<1x1x4x4xf32>
    %47 = vector.shape_cast %46 : vector<1x1x4x4xf32> to vector<4x4xf32>
    %cst_67 = arith.constant dense<0.000000e+00> : vector<256x4xf32>
    %48 = tpu.matmul %45, %47, %cst_67 {dimension_numbers = #tpu.dot_dimension_numbers<[1], [0], [0], [1], [0, 0, 1, 1], [], []>} : vector<256x4xf32>, vector<4x4xf32>, vector<256x4xf32> -> vector<256x4xf32>
    %49 = arith.addf %43, %48 : vector<256x4xf32>
    %c2_68 = arith.constant 2 : index
    %c0_69 = arith.constant 0 : index
    %c0_70 = arith.constant 0 : index
    %50 = vector.load %arg7[%c2_68, %c0_69, %c0_70] : memref<18x18x4xf32, #tpu.memory_space<vmem>>, vector<16x16x4xf32>
    %51 = vector.shape_cast %50 : vector<16x16x4xf32> to vector<256x4xf32>
    %c2_71 = arith.constant 2 : index
    %c0_72 = arith.constant 0 : index
    %c0_73 = arith.constant 0 : index
    %c0_74 = arith.constant 0 : index
    %52 = vector.load %arg2[%c2_71, %c0_72, %c0_73, %c0_74] : memref<3x3x4x4xf32, #tpu.memory_space<vmem>>, vector<1x1x4x4xf32>
    %53 = vector.shape_cast %52 : vector<1x1x4x4xf32> to vector<4x4xf32>
    %cst_75 = arith.constant dense<0.000000e+00> : vector<256x4xf32>
    %54 = tpu.matmul %51, %53, %cst_75 {dimension_numbers = #tpu.dot_dimension_numbers<[1], [0], [0], [1], [0, 0, 1, 1], [], []>} : vector<256x4xf32>, vector<4x4xf32>, vector<256x4xf32> -> vector<256x4xf32>
    %55 = arith.addf %49, %54 : vector<256x4xf32>
    %c2_76 = arith.constant 2 : index
    %c1_77 = arith.constant 1 : index
    %c0_78 = arith.constant 0 : index
    %56 = vector.load %arg7[%c2_76, %c1_77, %c0_78] : memref<18x18x4xf32, #tpu.memory_space<vmem>>, vector<16x16x4xf32>
    %57 = vector.shape_cast %56 : vector<16x16x4xf32> to vector<256x4xf32>
    %c2_79 = arith.constant 2 : index
    %c1_80 = arith.constant 1 : index
    %c0_81 = arith.constant 0 : index
    %c0_82 = arith.constant 0 : index
    %58 = vector.load %arg2[%c2_79, %c1_80, %c0_81, %c0_82] : memref<3x3x4x4xf32, #tpu.memory_space<vmem>>, vector<1x1x4x4xf32>
    %59 = vector.shape_cast %58 : vector<1x1x4x4xf32> to vector<4x4xf32>
    %cst_83 = arith.constant dense<0.000000e+00> : vector<256x4xf32>
    %60 = tpu.matmul %57, %59, %cst_83 {dimension_numbers = #tpu.dot_dimension_numbers<[1], [0], [0], [1], [0, 0, 1, 1], [], []>} : vector<256x4xf32>, vector<4x4xf32>, vector<256x4xf32> -> vector<256x4xf32>
    %61 = arith.addf %55, %60 : vector<256x4xf32>
    %c2_84 = arith.constant 2 : index
    %c2_85 = arith.constant 2 : index
    %c0_86 = arith.constant 0 : index
    %62 = vector.load %arg7[%c2_84, %c2_85, %c0_86] : memref<18x18x4xf32, #tpu.memory_space<vmem>>, vector<16x16x4xf32>
    %63 = vector.shape_cast %62 : vector<16x16x4xf32> to vector<256x4xf32>
    %c2_87 = arith.constant 2 : index
    %c2_88 = arith.constant 2 : index
    %c0_89 = arith.constant 0 : index
    %c0_90 = arith.constant 0 : index
    %64 = vector.load %arg2[%c2_87, %c2_88, %c0_89, %c0_90] : memref<3x3x4x4xf32, #tpu.memory_space<vmem>>, vector<1x1x4x4xf32>
    %65 = vector.shape_cast %64 : vector<1x1x4x4xf32> to vector<4x4xf32>
    %cst_91 = arith.constant dense<0.000000e+00> : vector<256x4xf32>
    %66 = tpu.matmul %63, %65, %cst_91 {dimension_numbers = #tpu.dot_dimension_numbers<[1], [0], [0], [1], [0, 0, 1, 1], [], []>} : vector<256x4xf32>, vector<4x4xf32>, vector<256x4xf32> -> vector<256x4xf32>
    %67 = arith.addf %61, %66 : vector<256x4xf32>
    %cst_92 = arith.constant 0.000000e+00 : f32
    %68 = vector.broadcast %cst_92 : f32 to vector<1x18x4xf32>
    %c0_93 = arith.constant 0 : index
    %c0_94 = arith.constant 0 : index
    %c0_95 = arith.constant 0 : index
    %69 = vector.load %arg8[%c0_93, %c0_94, %c0_95] : memref<18x18x4xf32, #tpu.memory_space<vmem>>, vector<1x18x4xf32>
    tpu.vector_store %arg8[%c0_93, %c0_94, %c0_95], %68 {strides = array<i32>} : memref<18x18x4xf32, #tpu.memory_space<vmem>>, vector<1x18x4xf32>,
    %cst_96 = arith.constant 0.000000e+00 : f32
    %70 = vector.broadcast %cst_96 : f32 to vector<1x18x4xf32>
    %c17_97 = arith.constant 17 : index
    %c0_98 = arith.constant 0 : index
    %c0_99 = arith.constant 0 : index
    %71 = vector.load %arg8[%c17_97, %c0_98, %c0_99] : memref<18x18x4xf32, #tpu.memory_space<vmem>>, vector<1x18x4xf32>
    tpu.vector_store %arg8[%c17_97, %c0_98, %c0_99], %70 {strides = array<i32>} : memref<18x18x4xf32, #tpu.memory_space<vmem>>, vector<1x18x4xf32>,
    %cst_100 = arith.constant 0.000000e+00 : f32
    %72 = vector.broadcast %cst_100 : f32 to vector<18x1x4xf32>
    %c0_101 = arith.constant 0 : index
    %c0_102 = arith.constant 0 : index
    %c0_103 = arith.constant 0 : index
    %73 = vector.load %arg8[%c0_101, %c0_102, %c0_103] : memref<18x18x4xf32, #tpu.memory_space<vmem>>, vector<18x1x4xf32>
    tpu.vector_store %arg8[%c0_101, %c0_102, %c0_103], %72 {strides = array<i32>} : memref<18x18x4xf32, #tpu.memory_space<vmem>>, vector<18x1x4xf32>,
    %cst_104 = arith.constant 0.000000e+00 : f32
    %74 = vector.broadcast %cst_104 : f32 to vector<18x1x4xf32>
    %c0_105 = arith.constant 0 : index
    %c17_106 = arith.constant 17 : index
    %c0_107 = arith.constant 0 : index
    %75 = vector.load %arg8[%c0_105, %c17_106, %c0_107] : memref<18x18x4xf32, #tpu.memory_space<vmem>>, vector<18x1x4xf32>
    tpu.vector_store %arg8[%c0_105, %c17_106, %c0_107], %74 {strides = array<i32>} : memref<18x18x4xf32, #tpu.memory_space<vmem>>, vector<18x1x4xf32>,
    %cst_108 = arith.constant 0.000000e+00 : f32
    %76 = vector.broadcast %cst_108 : f32 to vector<256x4xf32>
    %77 = arith.cmpf oge, %67, %76 : vector<256x4xf32>
    %cst_109 = arith.constant 2.000000e-01 : f32
    %78 = vector.broadcast %cst_109 : f32 to vector<256x4xf32>
    %79 = arith.mulf %78, %67 : vector<256x4xf32>
    %80 = arith.select %77, %67, %79 : vector<256x4xi1>, vector<256x4xf32>
    %81 = vector.shape_cast %80 : vector<256x4xf32> to vector<16x16x4xf32>
    %c1_110 = arith.constant 1 : index
    %c1_111 = arith.constant 1 : index
    %c0_112 = arith.constant 0 : index
    %82 = vector.load %arg8[%c1_110, %c1_111, %c0_112] : memref<18x18x4xf32, #tpu.memory_space<vmem>>, vector<16x16x4xf32>
    tpu.vector_store %arg8[%c1_110, %c1_111, %c0_112], %81 {strides = array<i32>} : memref<18x18x4xf32, #tpu.memory_space<vmem>>, vector<16x16x4xf32>,
    %c0_113 = arith.constant 0 : index
    %c0_114 = arith.constant 0 : index
    %83 = vector.load %arg5[%c0_113, %c0_114] : memref<1x4xf32, #tpu.memory_space<vmem>>, vector<1x4xf32>
    %84 = vector.shape_cast %83 : vector<1x4xf32> to vector<1x4xf32>
    %85 = vector.broadcast %84 : vector<1x4xf32> to vector<256x4xf32>
    %c0_115 = arith.constant 0 : index
    %c0_116 = arith.constant 0 : index
    %c0_117 = arith.constant 0 : index
    %86 = vector.load %arg8[%c0_115, %c0_116, %c0_117] : memref<18x18x4xf32, #tpu.memory_space<vmem>>, vector<16x16x4xf32>
    %87 = vector.shape_cast %86 : vector<16x16x4xf32> to vector<256x4xf32>
    %c0_118 = arith.constant 0 : index
    %c0_119 = arith.constant 0 : index
    %c0_120 = arith.constant 0 : index
    %c0_121 = arith.constant 0 : index
    %88 = vector.load %arg4[%c0_118, %c0_119, %c0_120, %c0_121] : memref<3x3x4x4xf32, #tpu.memory_space<vmem>>, vector<1x1x4x4xf32>
    %89 = vector.shape_cast %88 : vector<1x1x4x4xf32> to vector<4x4xf32>
    %cst_122 = arith.constant dense<0.000000e+00> : vector<256x4xf32>
    %90 = tpu.matmul %87, %89, %cst_122 {dimension_numbers = #tpu.dot_dimension_numbers<[1], [0], [0], [1], [0, 0, 1, 1], [], []>} : vector<256x4xf32>, vector<4x4xf32>, vector<256x4xf32> -> vector<256x4xf32>
    %91 = arith.addf %85, %90 : vector<256x4xf32>
    %c0_123 = arith.constant 0 : index
    %c1_124 = arith.constant 1 : index
    %c0_125 = arith.constant 0 : index
    %92 = vector.load %arg8[%c0_123, %c1_124, %c0_125] : memref<18x18x4xf32, #tpu.memory_space<vmem>>, vector<16x16x4xf32>
    %93 = vector.shape_cast %92 : vector<16x16x4xf32> to vector<256x4xf32>
    %c0_126 = arith.constant 0 : index
    %c1_127 = arith.constant 1 : index
    %c0_128 = arith.constant 0 : index
    %c0_129 = arith.constant 0 : index
    %94 = vector.load %arg4[%c0_126, %c1_127, %c0_128, %c0_129] : memref<3x3x4x4xf32, #tpu.memory_space<vmem>>, vector<1x1x4x4xf32>
    %95 = vector.shape_cast %94 : vector<1x1x4x4xf32> to vector<4x4xf32>
    %cst_130 = arith.constant dense<0.000000e+00> : vector<256x4xf32>
    %96 = tpu.matmul %93, %95, %cst_130 {dimension_numbers = #tpu.dot_dimension_numbers<[1], [0], [0], [1], [0, 0, 1, 1], [], []>} : vector<256x4xf32>, vector<4x4xf32>, vector<256x4xf32> -> vector<256x4xf32>
    %97 = arith.addf %91, %96 : vector<256x4xf32>
    %c0_131 = arith.constant 0 : index
    %c2_132 = arith.constant 2 : index
    %c0_133 = arith.constant 0 : index
    %98 = vector.load %arg8[%c0_131, %c2_132, %c0_133] : memref<18x18x4xf32, #tpu.memory_space<vmem>>, vector<16x16x4xf32>
    %99 = vector.shape_cast %98 : vector<16x16x4xf32> to vector<256x4xf32>
    %c0_134 = arith.constant 0 : index
    %c2_135 = arith.constant 2 : index
    %c0_136 = arith.constant 0 : index
    %c0_137 = arith.constant 0 : index
    %100 = vector.load %arg4[%c0_134, %c2_135, %c0_136, %c0_137] : memref<3x3x4x4xf32, #tpu.memory_space<vmem>>, vector<1x1x4x4xf32>
    %101 = vector.shape_cast %100 : vector<1x1x4x4xf32> to vector<4x4xf32>
    %cst_138 = arith.constant dense<0.000000e+00> : vector<256x4xf32>
    %102 = tpu.matmul %99, %101, %cst_138 {dimension_numbers = #tpu.dot_dimension_numbers<[1], [0], [0], [1], [0, 0, 1, 1], [], []>} : vector<256x4xf32>, vector<4x4xf32>, vector<256x4xf32> -> vector<256x4xf32>
    %103 = arith.addf %97, %102 : vector<256x4xf32>
    %c1_139 = arith.constant 1 : index
    %c0_140 = arith.constant 0 : index
    %c0_141 = arith.constant 0 : index
    %104 = vector.load %arg8[%c1_139, %c0_140, %c0_141] : memref<18x18x4xf32, #tpu.memory_space<vmem>>, vector<16x16x4xf32>
    %105 = vector.shape_cast %104 : vector<16x16x4xf32> to vector<256x4xf32>
    %c1_142 = arith.constant 1 : index
    %c0_143 = arith.constant 0 : index
    %c0_144 = arith.constant 0 : index
    %c0_145 = arith.constant 0 : index
    %106 = vector.load %arg4[%c1_142, %c0_143, %c0_144, %c0_145] : memref<3x3x4x4xf32, #tpu.memory_space<vmem>>, vector<1x1x4x4xf32>
    %107 = vector.shape_cast %106 : vector<1x1x4x4xf32> to vector<4x4xf32>
    %cst_146 = arith.constant dense<0.000000e+00> : vector<256x4xf32>
    %108 = tpu.matmul %105, %107, %cst_146 {dimension_numbers = #tpu.dot_dimension_numbers<[1], [0], [0], [1], [0, 0, 1, 1], [], []>} : vector<256x4xf32>, vector<4x4xf32>, vector<256x4xf32> -> vector<256x4xf32>
    %109 = arith.addf %103, %108 : vector<256x4xf32>
    %c1_147 = arith.constant 1 : index
    %c1_148 = arith.constant 1 : index
    %c0_149 = arith.constant 0 : index
    %110 = vector.load %arg8[%c1_147, %c1_148, %c0_149] : memref<18x18x4xf32, #tpu.memory_space<vmem>>, vector<16x16x4xf32>
    %111 = vector.shape_cast %110 : vector<16x16x4xf32> to vector<256x4xf32>
    %c1_150 = arith.constant 1 : index
    %c1_151 = arith.constant 1 : index
    %c0_152 = arith.constant 0 : index
    %c0_153 = arith.constant 0 : index
    %112 = vector.load %arg4[%c1_150, %c1_151, %c0_152, %c0_153] : memref<3x3x4x4xf32, #tpu.memory_space<vmem>>, vector<1x1x4x4xf32>
    %113 = vector.shape_cast %112 : vector<1x1x4x4xf32> to vector<4x4xf32>
    %cst_154 = arith.constant dense<0.000000e+00> : vector<256x4xf32>
    %114 = tpu.matmul %111, %113, %cst_154 {dimension_numbers = #tpu.dot_dimension_numbers<[1], [0], [0], [1], [0, 0, 1, 1], [], []>} : vector<256x4xf32>, vector<4x4xf32>, vector<256x4xf32> -> vector<256x4xf32>
    %115 = arith.addf %109, %114 : vector<256x4xf32>
    %c1_155 = arith.constant 1 : index
    %c2_156 = arith.constant 2 : index
    %c0_157 = arith.constant 0 : index
    %116 = vector.load %arg8[%c1_155, %c2_156, %c0_157] : memref<18x18x4xf32, #tpu.memory_space<vmem>>, vector<16x16x4xf32>
    %117 = vector.shape_cast %116 : vector<16x16x4xf32> to vector<256x4xf32>
    %c1_158 = arith.constant 1 : index
    %c2_159 = arith.constant 2 : index
    %c0_160 = arith.constant 0 : index
    %c0_161 = arith.constant 0 : index
    %118 = vector.load %arg4[%c1_158, %c2_159, %c0_160, %c0_161] : memref<3x3x4x4xf32, #tpu.memory_space<vmem>>, vector<1x1x4x4xf32>
    %119 = vector.shape_cast %118 : vector<1x1x4x4xf32> to vector<4x4xf32>
    %cst_162 = arith.constant dense<0.000000e+00> : vector<256x4xf32>
    %120 = tpu.matmul %117, %119, %cst_162 {dimension_numbers = #tpu.dot_dimension_numbers<[1], [0], [0], [1], [0, 0, 1, 1], [], []>} : vector<256x4xf32>, vector<4x4xf32>, vector<256x4xf32> -> vector<256x4xf32>
    %121 = arith.addf %115, %120 : vector<256x4xf32>
    %c2_163 = arith.constant 2 : index
    %c0_164 = arith.constant 0 : index
    %c0_165 = arith.constant 0 : index
    %122 = vector.load %arg8[%c2_163, %c0_164, %c0_165] : memref<18x18x4xf32, #tpu.memory_space<vmem>>, vector<16x16x4xf32>
    %123 = vector.shape_cast %122 : vector<16x16x4xf32> to vector<256x4xf32>
    %c2_166 = arith.constant 2 : index
    %c0_167 = arith.constant 0 : index
    %c0_168 = arith.constant 0 : index
    %c0_169 = arith.constant 0 : index
    %124 = vector.load %arg4[%c2_166, %c0_167, %c0_168, %c0_169] : memref<3x3x4x4xf32, #tpu.memory_space<vmem>>, vector<1x1x4x4xf32>
    %125 = vector.shape_cast %124 : vector<1x1x4x4xf32> to vector<4x4xf32>
    %cst_170 = arith.constant dense<0.000000e+00> : vector<256x4xf32>
    %126 = tpu.matmul %123, %125, %cst_170 {dimension_numbers = #tpu.dot_dimension_numbers<[1], [0], [0], [1], [0, 0, 1, 1], [], []>} : vector<256x4xf32>, vector<4x4xf32>, vector<256x4xf32> -> vector<256x4xf32>
    %127 = arith.addf %121, %126 : vector<256x4xf32>
    %c2_171 = arith.constant 2 : index
    %c1_172 = arith.constant 1 : index
    %c0_173 = arith.constant 0 : index
    %128 = vector.load %arg8[%c2_171, %c1_172, %c0_173] : memref<18x18x4xf32, #tpu.memory_space<vmem>>, vector<16x16x4xf32>
    %129 = vector.shape_cast %128 : vector<16x16x4xf32> to vector<256x4xf32>
    %c2_174 = arith.constant 2 : index
    %c1_175 = arith.constant 1 : index
    %c0_176 = arith.constant 0 : index
    %c0_177 = arith.constant 0 : index
    %130 = vector.load %arg4[%c2_174, %c1_175, %c0_176, %c0_177] : memref<3x3x4x4xf32, #tpu.memory_space<vmem>>, vector<1x1x4x4xf32>
    %131 = vector.shape_cast %130 : vector<1x1x4x4xf32> to vector<4x4xf32>
    %cst_178 = arith.constant dense<0.000000e+00> : vector<256x4xf32>
    %132 = tpu.matmul %129, %131, %cst_178 {dimension_numbers = #tpu.dot_dimension_numbers<[1], [0], [0], [1], [0, 0, 1, 1], [], []>} : vector<256x4xf32>, vector<4x4xf32>, vector<256x4xf32> -> vector<256x4xf32>
    %133 = arith.addf %127, %132 : vector<256x4xf32>
    %c2_179 = arith.constant 2 : index
    %c2_180 = arith.constant 2 : index
    %c0_181 = arith.constant 0 : index
    %134 = vector.load %arg8[%c2_179, %c2_180, %c0_181] : memref<18x18x4xf32, #tpu.memory_space<vmem>>, vector<16x16x4xf32>
    %135 = vector.shape_cast %134 : vector<16x16x4xf32> to vector<256x4xf32>
    %c2_182 = arith.constant 2 : index
    %c2_183 = arith.constant 2 : index
    %c0_184 = arith.constant 0 : index
    %c0_185 = arith.constant 0 : index
    %136 = vector.load %arg4[%c2_182, %c2_183, %c0_184, %c0_185] : memref<3x3x4x4xf32, #tpu.memory_space<vmem>>, vector<1x1x4x4xf32>
    %137 = vector.shape_cast %136 : vector<1x1x4x4xf32> to vector<4x4xf32>
    %cst_186 = arith.constant dense<0.000000e+00> : vector<256x4xf32>
    %138 = tpu.matmul %135, %137, %cst_186 {dimension_numbers = #tpu.dot_dimension_numbers<[1], [0], [0], [1], [0, 0, 1, 1], [], []>} : vector<256x4xf32>, vector<4x4xf32>, vector<256x4xf32> -> vector<256x4xf32>
    %139 = arith.addf %133, %138 : vector<256x4xf32>
    %140 = vector.shape_cast %1 : vector<16x16x4xf32> to vector<256x4xf32>
    %141 = arith.addf %140, %139 : vector<256x4xf32>
    %cst_187 = arith.constant 0.000000e+00 : f32
    %142 = vector.broadcast %cst_187 : f32 to vector<256x4xf32>
    %143 = arith.cmpf oge, %141, %142 : vector<256x4xf32>
    %cst_188 = arith.constant 2.000000e-01 : f32
    %144 = vector.broadcast %cst_188 : f32 to vector<256x4xf32>
    %145 = arith.mulf %144, %141 : vector<256x4xf32>
    %146 = arith.select %143, %141, %145 : vector<256x4xi1>, vector<256x4xf32>
    %147 = vector.shape_cast %146 : vector<256x4xf32> to vector<16x16x4xf32>
    %c0_189 = arith.constant 0 : index
    %c0_190 = arith.constant 0 : index
    %c0_191 = arith.constant 0 : index
    %c0_192 = arith.constant 0 : index
    %148 = vector.load %arg6[%c0_189, %c0_190, %c0_191, %c0_192] : memref<1x16x16x4xf32, #tpu.memory_space<vmem>>, vector<1x16x16x4xf32>
    %149 = vector.shape_cast %148 : vector<1x16x16x4xf32> to vector<16x16x4xf32>
    %150 = vector.shape_cast %147 : vector<16x16x4xf32> to vector<1x16x16x4xf32>
    tpu.vector_store %arg6[%c0_189, %c0_190, %c0_191, %c0_192], %150 {strides = array<i32>} : memref<1x16x16x4xf32, #tpu.memory_space<vmem>>, vector<1x16x16x4xf32>,
    return
  }
  func.func @transform_0(%arg0: i32) -> (i32, i32, i32, i32) {
    %c0_i32 = arith.constant 0 : i32
    %c0_i32_0 = arith.constant 0 : i32
    %c0_i32_1 = arith.constant 0 : i32
    %c0_i32_2 = arith.constant 0 : i32
    return %arg0, %c0_i32, %c0_i32_0, %c0_i32_1 : i32, i32, i32, i32
  }
  func.func @transform_1(%arg0: i32) -> (i32, i32, i32, i32) {
    %c0_i32 = arith.constant 0 : i32
    %c0_i32_0 = arith.constant 0 : i32
    %c0_i32_1 = arith.constant 0 : i32
    %c0_i32_2 = arith.constant 0 : i32
    %c0_i32_3 = arith.constant 0 : i32
    return %c0_i32, %c0_i32_0, %c0_i32_1, %c0_i32_2 : i32, i32, i32, i32
  }
  func.func @transform_2(%arg0: i32) -> (i32, i32) {
    %c0_i32 = arith.constant 0 : i32
    %c0_i32_0 = arith.constant 0 : i32
    %c0_i32_1 = arith.constant 0 : i32
    return %c0_i32, %c0_i32_0 : i32, i32
  }
  func.func @transform_3(%arg0: i32) -> (i32, i32, i32, i32) {
    %c0_i32 = arith.constant 0 : i32
    %c0_i32_0 = arith.constant 0 : i32
    %c0_i32_1 = arith.constant 0 : i32
    %c0_i32_2 = arith.constant 0 : i32
    %c0_i32_3 = arith.constant 0 : i32
    return %c0_i32, %c0_i32_0, %c0_i32_1, %c0_i32_2 : i32, i32, i32, i32
  }
  func.func @transform_4(%arg0: i32) -> (i32, i32) {
    %c0_i32 = arith.constant 0 : i32
    %c0_i32_0 = arith.constant 0 : i32
    %c0_i32_1 = arith.constant 0 : i32
    return %c0_i32, %c0_i32_0 : i32, i32
  }
  func.func @transform_5(%arg0: i32) -> (i32, i32, i32, i32) {
    %c0_i32 = arith.constant 0 : i32
    %c0_i32_0 = arith.constant 0 : i32
    %c0_i32_1 = arith.constant 0 : i32
    %c0_i32_2 = arith.constant 0 : i32
    return %arg0, %c0_i32, %c0_i32_0, %c0_i32_1 : i32, i32, i32, i32
  }
}

</mosaic_0001>

<bundles_post_ra>
// kernel: tpu_custom_call.1
= control target key start
LH: loop header
LB: loop body
LE: loop exit
PB: predicated region body
PF: predicated region fallthrough
CT: control target
= control target key end

     0   :  { %s6411_s18 = smov 0   ;;  %s9132_s0 = inlined_call_operand.vmem [shape: f32[2,16,16,4], index: 0, kind: input, shape index: {}]   ;;  %s9133_s1 = inlined_call_operand.vmem [shape: f32[3,3,4,4], index: 1, kind: input, shape index: {}]   ;;  %s9134_s2 = inlined_call_operand.vmem [shape: f32[1,4], index: 2, kind: input, shape index: {}]   ;;  %s9135_s3 = inlined_call_operand.vmem [shape: f32[3,3,4,4], index: 3, kind: input, shape index: {}]   ;;  %s9136_s4 = inlined_call_operand.vmem [shape: f32[1,4], index: 4, kind: input, shape index: {}]   ;;  %s9137_s5 = inlined_call_operand.vmem [shape: f32[2,16,16,4], index: 5, kind: output, shape index: {}]  }
   0x1 LB: > { %s5736_s19 = sadd.s32 4294967295, %s6378_s18   ;;  %p5740_p0 = scmp.ge.s32.totalorder %s6378_s18, 1  ;;  %s6378_s18 = sphi %s6411_s18, %s15_s18  }
   0x2   : > { %p187_p1 = scmp.lt.s32.totalorder %s6378_s18, 3 }
   0x4   : > { %p188_p2 = pnand %p5740_p0, %p187_p1 }
   0x6   : > { %191 = sbr.rel (%p188_p2) target bundleno = 1510 (0x5e6), region = 40 }
   0xb   : > { %v372_v0 = vld [vmem:[%s9133_s1] sm:$0xf]  ;;  %vm469_vm0 = vcmask 1043456   ;;  %vm257_vm1 = vcmask 31744   ;;  %vm266_vm2 = vcmask 24576   ;;  %v6380_v1 = vmov 0.0  }
   0xc   : > { %5745 = vmatpush.msk.msra.mxu0 %vm469_vm0, %v372_v0  ;;  %258 = vst.msk [vmem:[#allocation2] sm:$0xff] %vm257_vm1, %v6380_v1  ;;  %6359 = vmatpush.msk.msra.mxu2 %vm469_vm0, %v372_v0  ;;  %v5778_v2 = vld [vmem:[%s9133_s1 + $0x4] sm:$0xf]  ;;  %v5812_v4 = vld [vmem:[%s9133_s1 + $0x8] sm:$0xf]  ;;  %p215_p3 = scmp.lt.s32.totalorder %s5736_s19, 1 }
   0xd   : > { %267 = vst.msk [vmem:[#allocation2] sm:$0x1] %vm266_vm2, %v6380_v1  ;;  %6360 = vmatpush.msk.msra.mxu3 %vm469_vm0, %v5778_v2  ;;  %5779 = vmatpush.msk.msra.mxu1 %vm469_vm0, %v5778_v2  ;;  %v5846_v5 = vld [vmem:[%s9133_s1 + $0xc] sm:$0xf]  ;;  %v5880_v7 = vld [vmem:[%s9133_s1 + $0x10] sm:$0xf] }
   0xe   : > { %259 = vst.msk [vmem:[#allocation2 + $0x8] sm:$0xff] %vm257_vm1, %v6380_v1  ;;  %5813 = vmatpush.msk.msrb.mxu2 %vm469_vm0, %v5812_v4  ;;  %5881 = vmatpush.msk.msrb.mxu0 %vm469_vm0, %v5880_v7  ;;  %s9474_s19 = smov (!%p215_p3, %s5736_s19), 1  ;;  %vm260_vm3 = vcmask 25600  }
   0xf   : > { %263 = vst.msk [vmem:[#allocation2 + $0x198] sm:$0xff] %vm257_vm1, %v6380_v1  ;;  %5847 = vmatpush.msk.msrb.mxu3 %vm469_vm0, %v5846_v5  ;;  %s6357_s30 = sshll.u32 %s9474_s19, 8 }
  0x10   : > { %264 = vst.msk [vmem:[#allocation2 + $0x1a0] sm:$0xff] %vm257_vm1, %v6380_v1  ;;  %s6598_s8 = scalar_lea.vmem %s9132_s0, %s6357_s30  ;;  %s8888_s21 = scalar_lea.vmem %s9137_s5, %s6357_s30 }
  0x11   : > { %268 = vst.msk [vmem:[#allocation2 + $0x18] sm:$0x1] %vm266_vm2, %v6380_v1  ;;  %v6607_v9 = vld [vmem:[%s6598_s8 + $0x70] sm:$0xff]  ;;  %v6612_v10 = vld [vmem:[%s6598_s8 + $0x78] sm:$0xff]  ;;  %v6617_v11 = vld [vmem:[%s6598_s8] sm:$0xff] }
  0x12   : > { %269 = vst.msk [vmem:[#allocation2 + $0x30] sm:$0x1] %vm266_vm2, %v6380_v1  ;;  %v6622_v12 = vld [vmem:[%s6598_s8 + $0x80] sm:$0xff]  ;;  %v6627_v13 = vld [vmem:[%s6598_s8 + $0x8] sm:$0xff]  ;;  %v6661_v18 = vld [vmem:[%s6598_s8 + $0x10] sm:$0xff] }
  0x13   : > { %270 = vst.msk [vmem:[#allocation2 + $0x48] sm:$0x1] %vm266_vm2, %v6380_v1  ;;  %v6644_v16 = vld [vmem:[%s6598_s8 + $0x88] sm:$0xff]  ;;  %v6666_v20 = vld [vmem:[%s6598_s8 + $0x90] sm:$0xff]  ;;  %v6676_v23 = vld [vmem:[%s6598_s8 + $0x18] sm:$0xff] }
  0x14   : > { %v340_v3 = vld [vmem:[#allocation2] sm:$0xff]  ;;  %271 = vst.msk [vmem:[#allocation2 + $0x60] sm:$0x1] %vm266_vm2, %v6380_v1  ;;  %v6681_v24 = vld [vmem:[%s6598_s8 + $0x98] sm:$0xff]  ;;  %v6708_v29 = vld [vmem:[%s6598_s8 + $0x28] sm:$0xff] }
  0x15   : > { %5746 = vmatmul.msk.f32.vlgmr.msra.gmra.mxu0 %vm257_vm1, %v340_v3  ;;  %272 = vst.msk [vmem:[#allocation2 + $0x78] sm:$0x1] %vm266_vm2, %v6380_v1  ;;  %v341_v6 = vld [vmem:[#allocation2 + $0x8] sm:$0xff]  ;;  %v6688_v26 = vld [vmem:[%s6598_s8 + $0x20] sm:$0xff]  ;;  %v6736_v35 = vld [vmem:[%s6598_s8 + $0x30] sm:$0xff] }
  0x16   : > { %273 = vst.msk [vmem:[#allocation2 + $0x90] sm:$0x1] %vm266_vm2, %v6380_v1  ;;  %v618_v8 = vld [vmem:[#allocation2 + $0x1] sm:$0xff]  ;;  %v6749_v39 = vld [vmem:[%s6598_s8 + $0xb0] sm:$0xff]  ;;  %v6762_v41 = vld [vmem:[%s6598_s8 + $0x38] sm:$0xff] }
  0x17   : > { %274 = vst.msk [vmem:[#allocation2 + $0xa8] sm:$0x1] %vm266_vm2, %v6380_v1  ;;  %5780 = vmatmul.msk.f32.vlgmr.msra.gmra.mxu1 %vm257_vm1, %v618_v8  ;;  %v6697_v27 = vld [vmem:[%s6598_s8 + $0xa0] sm:$0xff]  ;;  %v6723_v33 = vld [vmem:[%s6598_s8 + $0xa8] sm:$0xff]  ;;  %v6775_v45 = vld [vmem:[%s6598_s8 + $0xb8] sm:$0xff] }
  0x18   : > { %275 = vst.msk [vmem:[#allocation2 + $0xc0] sm:$0x1] %vm266_vm2, %v6380_v1  ;;  %v6788_v47 = vld [vmem:[%s6598_s8 + $0x40] sm:$0xff]  ;;  %v6814_v53 = vld [vmem:[%s6598_s8 + $0x48] sm:$0xff]  ;;  %v6840_v59 = vld [vmem:[%s6598_s8 + $0x50] sm:$0xff] }
  0x19   : > { %276 = vst.msk [vmem:[#allocation2 + $0xd8] sm:$0x1] %vm266_vm2, %v6380_v1  ;;  %v6801_v51 = vld [vmem:[%s6598_s8 + $0xc0] sm:$0xff]  ;;  %v6827_v57 = vld [vmem:[%s6598_s8 + $0xc8] sm:$0xff]  ;;  %v6853_v63 = vld [vmem:[%s6598_s8 + $0xd0] sm:$0xff] }
  0x1a   : > { %277 = vst.msk [vmem:[#allocation2 + $0xf0] sm:$0x1] %vm266_vm2, %v6380_v1  ;;  %v6879_v5 = vld [vmem:[%s6598_s8 + $0xd8] sm:$0xff]  ;;  %v6892_v7 = vld [vmem:[%s6598_s8 + $0x60] sm:$0xff] }
  0x1b   : > { %278 = vst.msk [vmem:[#allocation2 + $0x108] sm:$0x1] %vm266_vm2, %v6380_v1 }
  0x1c   : > { %279 = vst.msk [vmem:[#allocation2 + $0x120] sm:$0x1] %vm266_vm2, %v6380_v1 }
  0x1d   : > { %280 = vst.msk [vmem:[#allocation2 + $0x138] sm:$0x1] %vm266_vm2, %v6380_v1  ;;  %5747 = vmatmul.msk.f32.gmra.mxu0 %vm257_vm1, %v341_v6 }
  0x1e   : > { %281 = vst.msk [vmem:[#allocation2 + $0x150] sm:$0x1] %vm266_vm2, %v6380_v1 }
  0x1f   : > { %282 = vst.msk [vmem:[#allocation2 + $0x168] sm:$0x1] %vm266_vm2, %v6380_v1 }
  0x20   : > { %283 = vst.msk [vmem:[#allocation2 + $0x180] sm:$0x1] %vm266_vm2, %v6380_v1 }
  0x21   : > { %286 = vst.msk [vmem:[#allocation2 + $0x29] sm:$0x1] %vm266_vm2, %v6380_v1 }
  0x22   : > { %287 = vst.msk [vmem:[#allocation2 + $0x41] sm:$0x1] %vm266_vm2, %v6380_v1 }
  0x23   : > { %288 = vst.msk [vmem:[#allocation2 + $0x59] sm:$0x1] %vm266_vm2, %v6380_v1 }
  0x24   : > { %289 = vst.msk [vmem:[#allocation2 + $0x71] sm:$0x1] %vm266_vm2, %v6380_v1 }
  0x25   : > { %290 = vst.msk [vmem:[#allocation2 + $0x89] sm:$0x1] %vm266_vm2, %v6380_v1 }
  0x26   : > { %291 = vst.msk [vmem:[#allocation2 + $0xa1] sm:$0x1] %vm266_vm2, %v6380_v1 }
  0x27   : > { %292 = vst.msk [vmem:[#allocation2 + $0xb9] sm:$0x1] %vm266_vm2, %v6380_v1 }
  0x28   : > { %293 = vst.msk [vmem:[#allocation2 + $0xd1] sm:$0x1] %vm266_vm2, %v6380_v1 }
  0x29   : > { %294 = vst.msk [vmem:[#allocation2 + $0xe9] sm:$0x1] %vm266_vm2, %v6380_v1 }
  0x2a   : > { %295 = vst.msk [vmem:[#allocation2 + $0x101] sm:$0x1] %vm266_vm2, %v6380_v1 }
  0x2b   : > { %296 = vst.msk [vmem:[#allocation2 + $0x119] sm:$0x1] %vm266_vm2, %v6380_v1 }
  0x2c   : > { %297 = vst.msk [vmem:[#allocation2 + $0x131] sm:$0x1] %vm266_vm2, %v6380_v1 }
  0x2d   : > { %298 = vst.msk [vmem:[#allocation2 + $0x149] sm:$0x1] %vm266_vm2, %v6380_v1 }
  0x2e   : > { %299 = vst.msk [vmem:[#allocation2 + $0x161] sm:$0x1] %vm266_vm2, %v6380_v1 }
  0x2f   : > { %300 = vst.msk [vmem:[#allocation2 + $0x179] sm:$0x1] %vm266_vm2, %v6380_v1 }
  0x30   : > { %301 = vst.msk [vmem:[#allocation2 + $0x191] sm:$0x1] %vm266_vm2, %v6380_v1 }
  0x31   : > { %2843 = vst.msk [vmem:[#allocation3] sm:$0xff] %vm257_vm1, %v6380_v1 }
  0x32   : > { %2844 = vst.msk [vmem:[#allocation3 + $0x8] sm:$0xff] %vm257_vm1, %v6380_v1 }
  0x33   : > { %2847 = vst.msk [vmem:[#allocation3 + $0x198] sm:$0xff] %vm257_vm1, %v6380_v1 }
  0x34   : > { %2848 = vst.msk [vmem:[#allocation3 + $0x1a0] sm:$0xff] %vm257_vm1, %v6380_v1 }
  0x35   : > { %2851 = vst.msk [vmem:[#allocation3 + $0x18] sm:$0x1] %vm266_vm2, %v6380_v1 }
  0x36   : > { %2852 = vst.msk [vmem:[#allocation3 + $0x30] sm:$0x1] %vm266_vm2, %v6380_v1 }
  0x37   : > { %2853 = vst.msk [vmem:[#allocation3 + $0x48] sm:$0x1] %vm266_vm2, %v6380_v1 }
  0x38   : > { %2854 = vst.msk [vmem:[#allocation3 + $0x60] sm:$0x1] %vm266_vm2, %v6380_v1 }
  0x39   : > { %2855 = vst.msk [vmem:[#allocation3 + $0x78] sm:$0x1] %vm266_vm2, %v6380_v1 }
  0x3a   : > { %2856 = vst.msk [vmem:[#allocation3 + $0x90] sm:$0x1] %vm266_vm2, %v6380_v1 }
  0x3b   : > { %2857 = vst.msk [vmem:[#allocation3 + $0xa8] sm:$0x1] %vm266_vm2, %v6380_v1 }
  0x3c   : > { %2858 = vst.msk [vmem:[#allocation3 + $0xc0] sm:$0x1] %vm266_vm2, %v6380_v1 }
  0x3d   : > { %2859 = vst.msk [vmem:[#allocation3 + $0xd8] sm:$0x1] %vm266_vm2, %v6380_v1 }
  0x3e   : > { %2860 = vst.msk [vmem:[#allocation3 + $0xf0] sm:$0x1] %vm266_vm2, %v6380_v1 }
  0x3f   : > { %2861 = vst.msk [vmem:[#allocation3 + $0x108] sm:$0x1] %vm266_vm2, %v6380_v1 }
  0x40   : > { %2862 = vst.msk [vmem:[#allocation3 + $0x120] sm:$0x1] %vm266_vm2, %v6380_v1 }
  0x41   : > { %2863 = vst.msk [vmem:[#allocation3 + $0x138] sm:$0x1] %vm266_vm2, %v6380_v1 }
  0x42   : > { %2864 = vst.msk [vmem:[#allocation3 + $0x150] sm:$0x1] %vm266_vm2, %v6380_v1 }
  0x43   : > { %2865 = vst.msk [vmem:[#allocation3 + $0x168] sm:$0x1] %vm266_vm2, %v6380_v1 }
  0x44   : > { %2866 = vst.msk [vmem:[#allocation3 + $0x180] sm:$0x1] %vm266_vm2, %v6380_v1 }
  0x45   : > { %2869 = vst.msk [vmem:[#allocation3 + $0x29] sm:$0x1] %vm266_vm2, %v6380_v1 }
  0x46   : > { %2870 = vst.msk [vmem:[#allocation3 + $0x41] sm:$0x1] %vm266_vm2, %v6380_v1 }
  0x47   : > { %2871 = vst.msk [vmem:[#allocation3 + $0x59] sm:$0x1] %vm266_vm2, %v6380_v1 }
  0x48   : > { %2872 = vst.msk [vmem:[#allocation3 + $0x71] sm:$0x1] %vm266_vm2, %v6380_v1 }
  0x49   : > { %2873 = vst.msk [vmem:[#allocation3 + $0x89] sm:$0x1] %vm266_vm2, %v6380_v1 }
  0x4a   : > { %2874 = vst.msk [vmem:[#allocation3 + $0xa1] sm:$0x1] %vm266_vm2, %v6380_v1 }
  0x4b   : > { %2875 = vst.msk [vmem:[#allocation3 + $0xb9] sm:$0x1] %vm266_vm2, %v6380_v1 }
  0x4c   : > { %2876 = vst.msk [vmem:[#allocation3 + $0xd1] sm:$0x1] %vm266_vm2, %v6380_v1 }
  0x4d   : > { %2877 = vst.msk [vmem:[#allocation3 + $0xe9] sm:$0x1] %vm266_vm2, %v6380_v1 }
  0x4e   : > { %2878 = vst.msk [vmem:[#allocation3 + $0x101] sm:$0x1] %vm266_vm2, %v6380_v1 }
  0x4f   : > { %2879 = vst.msk [vmem:[#allocation3 + $0x119] sm:$0x1] %vm266_vm2, %v6380_v1 }
  0x50   : > { %2880 = vst.msk [vmem:[#allocation3 + $0x131] sm:$0x1] %vm266_vm2, %v6380_v1 }
  0x51   : > { %2881 = vst.msk [vmem:[#allocation3 + $0x149] sm:$0x1] %vm266_vm2, %v6380_v1 }
  0x52   : > { %2882 = vst.msk [vmem:[#allocation3 + $0x161] sm:$0x1] %vm266_vm2, %v6380_v1 }
  0x53   : > { %2883 = vst.msk [vmem:[#allocation3 + $0x179] sm:$0x1] %vm266_vm2, %v6380_v1 }
  0x54   : > { %2884 = vst.msk [vmem:[#allocation3 + $0x191] sm:$0x1] %vm266_vm2, %v6380_v1 }
  0x55   : > { %284 = vst.msk [vmem:[#allocation2 + $0x198] sm:$0x1] %vm266_vm2, %v6380_v1 }
  0x56   : > { %9213 = vst [vmem:[#allocation4_spill] sm:$0xff] %v6607_v9 }
  0x57   : > { %2850 = vst.msk [vmem:[#allocation3] sm:$0x1] %vm266_vm2, %v6380_v1 }
  0x58   : > { %9214 = vst [vmem:[#allocation5_spill] sm:$0xff] %v6612_v10 }
  0x59   : > { %2867 = vst.msk [vmem:[#allocation3 + $0x198] sm:$0x1] %vm266_vm2, %v6380_v1 }
  0x5a   : > { %9215 = vst [vmem:[#allocation6_spill] sm:$0xff] %v6617_v11 }
  0x5b   : > { %318 = vst.msk [vmem:[#allocation2 + $0xc1] sm:$0xff] %vm257_vm1, %v6607_v9 }
  0x5c   : > { %9216 = vst [vmem:[#allocation7_spill] sm:$0xff] %v6622_v12 }
  0x5d   : > { %319 = vst.msk [vmem:[#allocation2 + $0xc9] sm:$0xff] %vm257_vm1, %v6612_v10 }
  0x5e   : > { %9217 = vst [vmem:[#allocation8_spill] sm:$0xff] %v6627_v13 }
  0x5f   : > { %304 = vst.msk [vmem:[#allocation2 + $0x19] sm:$0xff] %vm257_vm1, %v6617_v11  ;;  %v896_v11 = vld [vmem:[#allocation2 + $0x2] sm:$0xff] }
  0x60   : > { %320 = vst.msk [vmem:[#allocation2 + $0xd9] sm:$0xff] %vm257_vm1, %v6622_v12 }
  0x61   : > { %305 = vst.msk [vmem:[#allocation2 + $0x21] sm:$0xff] %vm257_vm1, %v6627_v13 }
  0x62   : > { %261 = vst.msk [vmem:[#allocation2 + $0x10] sm:$0x3] %vm260_vm3, %v6380_v1  ;;  %v6637_v14 = vld [vmem:[#allocation2 + $0xc0] sm:$0xff] }
  0x63   : > { %265 = vst.msk [vmem:[#allocation2 + $0x1a8] sm:$0x3] %vm260_vm3, %v6380_v1  ;;  %v6639_v15 = vld [vmem:[#allocation2 + $0xc1] sm:$0xff]  ;;  %5762 = vmatmul.msk.f32.vlgmr.msra.gmra.mxu2 %vm257_vm1, %v6637_v14 }
  0x64   : > { %285 = vst.msk [vmem:[#allocation2 + $0x11] sm:$0x1] %vm266_vm2, %v6380_v1  ;;  %5796 = vmatmul.msk.f32.vlgmr.msra.gmra.mxu3 %vm257_vm1, %v6639_v15  ;;  %v6668_v21 = vld [vmem:[#allocation2 + $0xc8] sm:$0xff] }
  0x65   : > { %9218 = vst [vmem:[#allocation9_spill] sm:$0xff] %v6644_v16  ;;  %v6670_v22 = vld [vmem:[#allocation2 + $0xc9] sm:$0xff] }
  0x66   : > { %2845 = vst.msk [vmem:[#allocation3 + $0x10] sm:$0x3] %vm260_vm3, %v6380_v1  ;;  %v6651_v17 = vld [vmem:[#allocation2 + $0x18] sm:$0xff] }
  0x67   : > { %2849 = vst.msk [vmem:[#allocation3 + $0x1a8] sm:$0x3] %vm260_vm3, %v6380_v1  ;;  %5748 = vmatmul.msk.f32.gmra.mxu0 %vm257_vm1, %v6651_v17  ;;  %v6703_v28 = vld [vmem:[#allocation2 + $0x19] sm:$0xff] }
  0x68   : > { %321 = vst.msk [vmem:[#allocation2 + $0xe1] sm:$0xff] %vm257_vm1, %v6644_v16  ;;  %v6683_v25 = vld [vmem:[#allocation2 + $0x20] sm:$0xff]  ;;  %v6714_v30 = vld [vmem:[#allocation2 + $0xd8] sm:$0xff] }
  0x69   : > { %302 = vst.msk [vmem:[#allocation2 + $0x1a9] sm:$0x1] %vm266_vm2, %v6380_v1  ;;  %v619_v19 = vld [vmem:[#allocation2 + $0x9] sm:$0xff]  ;;  %v6716_v31 = vld [vmem:[#allocation2 + $0xd9] sm:$0xff]  ;;  %v6733_v34 = vld [vmem:[#allocation2 + $0x21] sm:$0xff] }
  0x6a   : > { %9219 = vst [vmem:[#allocation10_spill] sm:$0xff] %v6661_v18  ;;  %5781 = vmatmul.msk.f32.gmra.mxu1 %vm257_vm1, %v619_v19 }
  0x6b   : > { %2868 = vst.msk [vmem:[#allocation3 + $0x11] sm:$0x1] %vm266_vm2, %v6380_v1  ;;  %5763 = vmatmul.msk.f32.gmra.mxu2 %vm257_vm1, %v6668_v21 }
  0x6c   : > { %9220 = vst [vmem:[#allocation11_spill] sm:$0xff] %v6666_v20  ;;  %5797 = vmatmul.msk.f32.gmra.mxu3 %vm257_vm1, %v6670_v22 }
  0x6d   : > { %2885 = vst.msk [vmem:[#allocation3 + $0x1a9] sm:$0x1] %vm266_vm2, %v6380_v1  ;;  %v6866_v1 = vld [vmem:[%s6598_s8 + $0x58] sm:$0xff] }
  0x6e   : > { %9221 = vst [vmem:[#allocation12_spill] sm:$0xff] %v6676_v23 }
  0x6f   : > { %306 = vst.msk [vmem:[#allocation2 + $0x31] sm:$0xff] %vm257_vm1, %v6661_v18  ;;  %5749 = vmatmul.msk.f32.gmra.mxu0 %vm257_vm1, %v6683_v25  ;;  %v6740_v36 = vld [vmem:[#allocation2 + $0xe0] sm:$0xff] }
  0x70   : > { %9222 = vst [vmem:[#allocation13_spill] sm:$0xff] %v6681_v24  ;;  %v6742_v37 = vld [vmem:[#allocation2 + $0xe1] sm:$0xff] }
  0x71   : > { %322 = vst.msk [vmem:[#allocation2 + $0xf1] sm:$0xff] %vm257_vm1, %v6666_v20 }
  0x72   : > { %9223 = vst [vmem:[#allocation14_spill] sm:$0xff] %v6688_v26  ;;  %5782 = vmatmul.msk.f32.gmra.mxu1 %vm257_vm1, %v6703_v28 }
  0x73   : > { %307 = vst.msk [vmem:[#allocation2 + $0x39] sm:$0xff] %vm257_vm1, %v6676_v23  ;;  %5764 = vmatmul.msk.f32.gmra.mxu2 %vm257_vm1, %v6714_v30 }
  0x74   : > { %9224 = vst [vmem:[#allocation15_spill] sm:$0xff] %v6697_v27  ;;  %5798 = vmatmul.msk.f32.gmra.mxu3 %vm257_vm1, %v6716_v31 }
  0x75   : > { %323 = vst.msk [vmem:[#allocation2 + $0xf9] sm:$0xff] %vm257_vm1, %v6681_v24 }
  0x76   : > { %308 = vst.msk [vmem:[#allocation2 + $0x49] sm:$0xff] %vm257_vm1, %v6688_v26  ;;  %v6720_v32 = vld [vmem:[#allocation2 + $0x30] sm:$0xff] }
  0x77   : > { %9225 = vst [vmem:[#allocation16_spill] sm:$0xff] %v6708_v29  ;;  %5750 = vmatmul.msk.f32.gmra.mxu0 %vm257_vm1, %v6720_v32  ;;  %v6759_v40 = vld [vmem:[#allocation2 + $0x31] sm:$0xff] }
  0x78   : > { %324 = vst.msk [vmem:[#allocation2 + $0x109] sm:$0xff] %vm257_vm1, %v6697_v27  ;;  %v6766_v42 = vld [vmem:[#allocation2 + $0xf0] sm:$0xff] }
  0x79   : > { %309 = vst.msk [vmem:[#allocation2 + $0x51] sm:$0xff] %vm257_vm1, %v6708_v29  ;;  %v6768_v43 = vld [vmem:[#allocation2 + $0xf1] sm:$0xff] }
  0x7a   : > { %9226 = vst [vmem:[#allocation17_spill] sm:$0xff] %v6723_v33  ;;  %5783 = vmatmul.msk.f32.gmra.mxu1 %vm257_vm1, %v6733_v34  ;;  %v6746_v38 = vld [vmem:[#allocation2 + $0x38] sm:$0xff] }
  0x7b   : > { %325 = vst.msk [vmem:[#allocation2 + $0x111] sm:$0xff] %vm257_vm1, %v6723_v33  ;;  %5765 = vmatmul.msk.f32.gmra.mxu2 %vm257_vm1, %v6740_v36  ;;  %v6785_v46 = vld [vmem:[#allocation2 + $0x39] sm:$0xff] }
  0x7c   : > { %9227 = vst [vmem:[#allocation18_spill] sm:$0xff] %v6736_v35  ;;  %5799 = vmatmul.msk.f32.gmra.mxu3 %vm257_vm1, %v6742_v37  ;;  %v6792_v48 = vld [vmem:[#allocation2 + $0xf8] sm:$0xff] }
  0x7d   : > { %310 = vst.msk [vmem:[#allocation2 + $0x61] sm:$0xff] %vm257_vm1, %v6736_v35  ;;  %v6772_v44 = vld [vmem:[#allocation2 + $0x48] sm:$0xff]  ;;  %v6794_v49 = vld [vmem:[#allocation2 + $0xf9] sm:$0xff] }
  0x7e   : > { %9228 = vst [vmem:[#allocation19_spill] sm:$0xff] %v6749_v39  ;;  %v6811_v52 = vld [vmem:[#allocation2 + $0x49] sm:$0xff] }
  0x7f   : > { %326 = vst.msk [vmem:[#allocation2 + $0x121] sm:$0xff] %vm257_vm1, %v6749_v39  ;;  %5751 = vmatmul.msk.f32.gmra.mxu0 %vm257_vm1, %v6746_v38  ;;  %v6818_v54 = vld [vmem:[#allocation2 + $0x108] sm:$0xff] }
  0x80   : > { %9229 = vst [vmem:[#allocation20_spill] sm:$0xff] %v6762_v41  ;;  %v6798_v50 = vld [vmem:[#allocation2 + $0x50] sm:$0xff] }
  0x81   : > { %311 = vst.msk [vmem:[#allocation2 + $0x69] sm:$0xff] %vm257_vm1, %v6762_v41  ;;  %v6820_v55 = vld [vmem:[#allocation2 + $0x109] sm:$0xff]  ;;  %v6837_v58 = vld [vmem:[#allocation2 + $0x51] sm:$0xff] }
  0x82   : > { %5784 = vmatmul.msk.f32.gmra.mxu1 %vm257_vm1, %v6759_v40  ;;  %9230 = vst [vmem:[#allocation21_spill] sm:$0xff] %v6775_v45  ;;  %v6844_v60 = vld [vmem:[#allocation2 + $0x110] sm:$0xff] }
  0x83   : > { %5766 = vmatmul.msk.f32.gmra.mxu2 %vm257_vm1, %v6766_v42  ;;  %327 = vst.msk [vmem:[#allocation2 + $0x129] sm:$0xff] %vm257_vm1, %v6775_v45  ;;  %v6846_v61 = vld [vmem:[#allocation2 + $0x111] sm:$0xff] }
  0x84   : > { %5800 = vmatmul.msk.f32.gmra.mxu3 %vm257_vm1, %v6768_v43  ;;  %9231 = vst [vmem:[#allocation22_spill] sm:$0xff] %v6788_v47  ;;  %v6824_v56 = vld [vmem:[#allocation2 + $0x60] sm:$0xff] }
  0x85   : > { %312 = vst.msk [vmem:[#allocation2 + $0x79] sm:$0xff] %vm257_vm1, %v6788_v47  ;;  %v6863_v0 = vld [vmem:[#allocation2 + $0x61] sm:$0xff]  ;;  %v5914_v47 = vld [vmem:[%s9133_s1 + $0x14] sm:$0xf] }
  0x86   : > { %9232 = vst [vmem:[#allocation23_spill] sm:$0xff] %v6801_v51  ;;  %v6870_v2 = vld [vmem:[#allocation2 + $0x120] sm:$0xff]  ;;  %5915 = vmatpush.msk.msrb.mxu1 %vm469_vm0, %v5914_v47 }
  0x87   : > { %5752 = vmatmul.msk.f32.gmra.mxu0 %vm257_vm1, %v6772_v44  ;;  %328 = vst.msk [vmem:[#allocation2 + $0x139] sm:$0xff] %vm257_vm1, %v6801_v51  ;;  %v6872_v3 = vld [vmem:[#allocation2 + $0x121] sm:$0xff] }
  0x88   : > { %9233 = vst [vmem:[#allocation24_spill] sm:$0xff] %v6814_v53  ;;  %v6850_v62 = vld [vmem:[#allocation2 + $0x68] sm:$0xff] }
  0x89   : > { %313 = vst.msk [vmem:[#allocation2 + $0x81] sm:$0xff] %vm257_vm1, %v6814_v53  ;;  %v6889_v6 = vld [vmem:[#allocation2 + $0x69] sm:$0xff] }
  0x8a   : > { %5785 = vmatmul.msk.f32.gmra.mxu1 %vm257_vm1, %v6785_v46  ;;  %9234 = vst [vmem:[#allocation25_spill] sm:$0xff] %v6827_v57  ;;  %v6896_v8 = vld [vmem:[#allocation2 + $0x128] sm:$0xff] }
  0x8b   : > { %5767 = vmatmul.msk.f32.gmra.mxu2 %vm257_vm1, %v6792_v48  ;;  %329 = vst.msk [vmem:[#allocation2 + $0x141] sm:$0xff] %vm257_vm1, %v6827_v57  ;;  %v6898_v19 = vld [vmem:[#allocation2 + $0x129] sm:$0xff] }
  0x8c   : > { %5801 = vmatmul.msk.f32.gmra.mxu3 %vm257_vm1, %v6794_v49  ;;  %9235 = vst [vmem:[#allocation26_spill] sm:$0xff] %v6840_v59  ;;  %v6876_v4 = vld [vmem:[#allocation2 + $0x78] sm:$0xff]  ;;  %v6918_v51 = vld [vmem:[%s6598_s8 + $0x68] sm:$0xff] }
  0x8d   : > { %314 = vst.msk [vmem:[#allocation2 + $0x91] sm:$0xff] %vm257_vm1, %v6840_v59  ;;  %v6915_v57 = vld [vmem:[#allocation2 + $0x79] sm:$0xff] }
  0x8e   : > { %9236 = vst [vmem:[#allocation27_spill] sm:$0xff] %v6853_v63  ;;  %v6922_v45 = vld [vmem:[#allocation2 + $0x138] sm:$0xff] }
  0x8f   : > { %5753 = vmatmul.msk.f32.gmra.mxu0 %vm257_vm1, %v6798_v50  ;;  %330 = vst.msk [vmem:[#allocation2 + $0x151] sm:$0xff] %vm257_vm1, %v6853_v63  ;;  %v6924_v39 = vld [vmem:[#allocation2 + $0x139] sm:$0xff] }
  0x90   : > { %9237 = vst [vmem:[#allocation28_spill] sm:$0xff] %v6866_v1  ;;  %v6902_v63 = vld [vmem:[#allocation2 + $0x80] sm:$0xff] }
  0x91   : > { %315 = vst.msk [vmem:[#allocation2 + $0x99] sm:$0xff] %vm257_vm1, %v6866_v1  ;;  %v6941_v27 = vld [vmem:[#allocation2 + $0x81] sm:$0xff] }
  0x92   : > { %5786 = vmatmul.msk.f32.gmra.mxu1 %vm257_vm1, %v6811_v52  ;;  %9238 = vst [vmem:[#allocation29_spill] sm:$0xff] %v6879_v5  ;;  %v6943_v24 = vld [vmem:[#allocation2 + $0x140] sm:$0xff]  ;;  %v7007_v35 = vpop.f32.mrf.mxu0 }
  0x93   : > { %5768 = vmatmul.msk.f32.gmra.mxu2 %vm257_vm1, %v6818_v54  ;;  %331 = vst.msk [vmem:[#allocation2 + $0x159] sm:$0xff] %vm257_vm1, %v6879_v5  ;;  %v6905_v5 = vld [vmem:[%s6598_s8 + $0xe0] sm:$0xff] }
  0x94   : > { %5802 = vmatmul.msk.f32.gmra.mxu3 %vm257_vm1, %v6820_v55  ;;  %9239 = vst [vmem:[#allocation30_spill] sm:$0xff] %v6892_v7  ;;  %v6928_v33 = vld [vmem:[#allocation2 + $0x90] sm:$0xff]  ;;  %v6945_v20 = vld [vmem:[#allocation2 + $0x141] sm:$0xff]  ;;  %v7035_v13 = vpop.f32.mrf.mxu1 }
  0x95   : > { %316 = vst.msk [vmem:[#allocation2 + $0xa9] sm:$0xff] %vm257_vm1, %v6892_v7  ;;  %v5982_v7 = vld [vmem:[%s9133_s1 + $0x1c] sm:$0xf] }
  0x96   : > { %9240 = vst [vmem:[#allocation31_spill] sm:$0xff] %v6905_v5  ;;  %v6959_v12 = vld [vmem:[#allocation2 + $0x150] sm:$0xff]  ;;  %5983 = vmatpush.msk.msra.mxu3 %vm469_vm0, %v5982_v7 }
  0x97   : > { %5754 = vmatmul.msk.f32.gmra.mxu0 %vm257_vm1, %v6824_v56  ;;  %332 = vst.msk [vmem:[#allocation2 + $0x169] sm:$0xff] %vm257_vm1, %v6905_v5  ;;  %v6931_v5 = vld [vmem:[%s6598_s8 + $0xe8] sm:$0xff]  ;;  %v6961_v10 = vld [vmem:[#allocation2 + $0x151] sm:$0xff] }
  0x98   : > { %9241 = vst [vmem:[#allocation32_spill] sm:$0xff] %v6918_v51  ;;  %v6949_v16 = vld [vmem:[#allocation2 + $0x98] sm:$0xff] }
  0x99   : > { %317 = vst.msk [vmem:[#allocation2 + $0xb1] sm:$0xff] %vm257_vm1, %v6918_v51  ;;  %v5948_v51 = vld [vmem:[%s9133_s1 + $0x18] sm:$0xf] }
  0x9a   : > { %5787 = vmatmul.msk.f32.gmra.mxu1 %vm257_vm1, %v6837_v58  ;;  %9242 = vst [vmem:[#allocation33_spill] sm:$0xff] %v6922_v45  ;;  %5949 = vmatpush.msk.msra.mxu2 %vm469_vm0, %v5948_v51  ;;  %v6981_v1 = vld [vmem:[#allocation2 + $0x99] sm:$0xff]  ;;  %v7027_v18 = vpop.f32.mrf.mxu0 }
  0x9b   : > { %5769 = vmatmul.msk.f32.gmra.mxu2 %vm257_vm1, %v6844_v60  ;;  %9243 = vst [vmem:[#allocation34_spill] sm:$0xff] %v6931_v5  ;;  %v6983_v59 = vld [vmem:[#allocation2 + $0x158] sm:$0xff]  ;;  %v6016_v51 = vld [vmem:[%s9133_s1 + $0x20] sm:$0xf] }
  0x9c   : > { %5803 = vmatmul.msk.f32.gmra.mxu3 %vm257_vm1, %v6846_v61  ;;  %333 = vst.msk [vmem:[#allocation2 + $0x171] sm:$0xff] %vm257_vm1, %v6931_v5  ;;  %v6957_v5 = vld [vmem:[#allocation2 + $0x91] sm:$0xff]  ;;  %v6965_v9 = vld [vmem:[#allocation2 + $0xa8] sm:$0xff]  ;;  %v6985_v53 = vld [vmem:[#allocation2 + $0x159] sm:$0xff]  ;;  %6017 = vmatpush.msk.msra.mxu0 %vm469_vm0, %v6016_v51 }
  0x9d   : > { %9244 = vst [vmem:[#allocation35_spill] sm:$0xff] %v6943_v24  ;;  %v7005_v7 = vld [vmem:[#allocation2 + $0xa9] sm:$0xff] }
  0x9e   : > { %9245 = vst [vmem:[#allocation36_spill] sm:$0xff] %v6959_v12  ;;  %v7009_v47 = vld [vmem:[#allocation2 + $0x168] sm:$0xff] }
  0x9f   : > { %5755 = vmatmul.msk.f32.gmra.mxu0 %vm257_vm1, %v6850_v62  ;;  %9246 = vst [vmem:[#allocation37_spill] sm:$0xff] %v6961_v10  ;;  %v7011_v29 = vld [vmem:[#allocation2 + $0x169] sm:$0xff] }
  0xa0   : > { %9247 = vst [vmem:[#allocation38_spill] sm:$0xff] %v6983_v59  ;;  %v6992_v41 = vld [vmem:[#allocation2 + $0xb0] sm:$0xff] }
  0xa1   : > { %9248 = vst [vmem:[#allocation39_spill] sm:$0xff] %v6985_v53  ;;  %v7021_v51 = vld [vmem:[#allocation2 + $0xb1] sm:$0xff] }
  0xa2   : > { %5788 = vmatmul.msk.f32.gmra.mxu1 %vm257_vm1, %v6863_v0  ;;  %9249 = vst [vmem:[#allocation40_spill] sm:$0xff] %v7009_v47 }
  0xa3   : > { %5770 = vmatmul.msk.f32.gmra.mxu2 %vm257_vm1, %v6870_v2  ;;  %9250 = vst [vmem:[#allocation41_spill] sm:$0xff] %v7011_v29  ;;  %v7023_v26 = vld [vmem:[#allocation2 + $0x170] sm:$0xff] }
  0xa4   : > { %5804 = vmatmul.msk.f32.gmra.mxu3 %vm257_vm1, %v6872_v3  ;;  %9251 = vst [vmem:[#allocation42_spill] sm:$0xff] %v7023_v26  ;;  %v7025_v23 = vld [vmem:[#allocation2 + $0x171] sm:$0xff] }
  0xa5   : > { %9252 = vst [vmem:[#allocation43_spill] sm:$0xff] %v7025_v23 }
  0xa7   : > { %5756 = vmatmul.msk.f32.gmra.mxu0 %vm257_vm1, %v6876_v4 }
  0xaa   : > { %5789 = vmatmul.msk.f32.gmra.mxu1 %vm257_vm1, %v6889_v6 }
  0xab   : > { %5771 = vmatmul.msk.f32.gmra.mxu2 %vm257_vm1, %v6896_v8 }
  0xac   : > { %5805 = vmatmul.msk.f32.gmra.mxu3 %vm257_vm1, %v6898_v19 }
  0xaf   : > { %5757 = vmatmul.msk.f32.gmra.mxu0 %vm257_vm1, %v6902_v63 }
  0xb2   : > { %5790 = vmatmul.msk.f32.gmra.mxu1 %vm257_vm1, %v6915_v57 }
  0xb3   : > { %5772 = vmatmul.msk.f32.gmra.mxu2 %vm257_vm1, %v6922_v45 }
  0xb4   : > { %5806 = vmatmul.msk.f32.gmra.mxu3 %vm257_vm1, %v6924_v39 }
  0xb7   : > { %5758 = vmatmul.msk.f32.gmra.mxu0 %vm257_vm1, %v6928_v33 }
  0xba   : > { %5791 = vmatmul.msk.f32.gmra.mxu1 %vm257_vm1, %v6941_v27 }
  0xbb   : > { %5773 = vmatmul.msk.f32.gmra.mxu2 %vm257_vm1, %v6943_v24 }
  0xbc   : > { %5807 = vmatmul.msk.f32.gmra.mxu3 %vm257_vm1, %v6945_v20 }
  0xbf   : > { %5759 = vmatmul.msk.f32.gmra.mxu0 %vm257_vm1, %v6949_v16 }
  0xc2   : > { %5792 = vmatmul.msk.f32.gmra.mxu1 %vm257_vm1, %v6957_v5 }
  0xc3   : > { %5774 = vmatmul.msk.f32.gmra.mxu2 %vm257_vm1, %v6959_v12 }
  0xc4   : > { %5808 = vmatmul.msk.f32.gmra.mxu3 %vm257_vm1, %v6961_v10 }
  0xc7   : > { %5760 = vmatmul.msk.f32.gmra.mxu0 %vm257_vm1, %v6965_v9 }
  0xca   : > { %5793 = vmatmul.msk.f32.gmra.mxu1 %vm257_vm1, %v6981_v1 }
  0xcb   : > { %5775 = vmatmul.msk.f32.gmra.mxu2 %vm257_vm1, %v6983_v59  ;;  %v7045_v59 = vld [vmem:[%s9134_s2] ss:$0 sm:$0xff] }
  0xcc   : > { %5809 = vmatmul.msk.f32.gmra.mxu3 %vm257_vm1, %v6985_v53  ;;  %v897_v53 = vld [vmem:[#allocation2 + $0xa] sm:$0xff] }
  0xcf   : > { %5761 = vmatmul.msk.f32.gmra.mxu0 %vm257_vm1, %v6992_v41 }
  0xd2   : > { %5794 = vmatmul.msk.f32.gmra.mxu1 %vm257_vm1, %v7005_v7 }
  0xd3   : > { %5776 = vmatmul.msk.f32.gmra.mxu2 %vm257_vm1, %v7009_v47 }
  0xd4   : > { %5810 = vmatmul.msk.f32.gmra.mxu3 %vm257_vm1, %v7011_v29 }
  0xd7   : > { %5882 = vmatmul.msk.f32.vlgmr.msrb.gmra.mxu0 %vm257_vm1, %v6703_v28  ;;  %v1730_v28 = vld [vmem:[#allocation2 + $0x1a] sm:$0xff] }
  0xda   : > { %5795 = vmatmul.msk.f32.gmra.mxu1 %vm257_vm1, %v7021_v51 }
  0xdb   : > { %5777 = vmatmul.msk.f32.gmra.mxu2 %vm257_vm1, %v7023_v26  ;;  %v1731_v26 = vld [vmem:[#allocation2 + $0x22] sm:$0xff] }
  0xdc   : > { %5811 = vmatmul.msk.f32.gmra.mxu3 %vm257_vm1, %v7025_v23 }
  0xdf   : > { %5883 = vmatmul.msk.f32.gmra.mxu0 %vm257_vm1, %v6733_v34 }
  0xe2   : > { %5916 = vmatmul.msk.f32.vlgmr.msrb.gmra.mxu1 %vm257_vm1, %v1730_v28 }
  0xe3   : > { %5814 = vmatmul.msk.f32.vlgmr.msrb.gmra.mxu2 %vm257_vm1, %v896_v11 }
  0xe4   : > { %v7040_v47 = vpop.f32.mrf.mxu0  ;;  %5848 = vmatmul.msk.f32.vlgmr.msrb.gmra.mxu3 %vm257_vm1, %v6651_v17  ;;  %v7067_v17 = vld [vmem:[#allocation2 + $0x32] sm:$0xff] }
  0xe6   : > { %v538_v23 = vpop.f32.mrf.mxu2 }
  0xe7   : > { %5884 = vmatmul.msk.f32.gmra.mxu0 %vm257_vm1, %v6759_v40  ;;  %v7052_v34 = vpop.f32.mrf.mxu1  ;;  %v816_v29 = vpop.f32.mrf.mxu3  ;;  %v602_v12 = vadd.f32 %v7045_v59, %v538_v23 }
  0xe9   : > { %v7056_v24 = vadd.f32 %v816_v29, %v602_v12 }
  0xea   : > { %5917 = vmatmul.msk.f32.gmra.mxu1 %vm257_vm1, %v1731_v26 }
  0xeb   : > { %9253 = vst [vmem:[#allocation44_spill] sm:$0xff] %v7056_v24  ;;  %5815 = vmatmul.msk.f32.gmra.mxu2 %vm257_vm1, %v897_v53 }
  0xec   : > { %v7058_v10 = vpop.f32.mrf.mxu0  ;;  %5849 = vmatmul.msk.f32.gmra.mxu3 %vm257_vm1, %v6683_v25 }
  0xee   : > { %v541_v23 = vpop.f32.mrf.mxu2 }
  0xef   : > { %5885 = vmatmul.msk.f32.gmra.mxu0 %vm257_vm1, %v6785_v46  ;;  %v7065_v11 = vpop.f32.mrf.mxu1  ;;  %v819_v40 = vpop.f32.mrf.mxu3  ;;  %v603_v45 = vadd.f32 %v7045_v59, %v541_v23  ;;  %v7083_v46 = vld [vmem:[#allocation2 + $0x3a] sm:$0xff] }
  0xf0   : > { %9255 = vst [vmem:[#allocation46_spill] sm:$0xff] %v7083_v46 }
  0xf1   : > { %v7072_v12 = vadd.f32 %v819_v40, %v603_v45 }
  0xf2   : > { %5918 = vmatmul.msk.f32.gmra.mxu1 %vm257_vm1, %v7067_v17 }
  0xf3   : > { %9254 = vst [vmem:[#allocation45_spill] sm:$0xff] %v7072_v12  ;;  %5816 = vmatmul.msk.f32.gmra.mxu2 %vm257_vm1, %v1730_v28 }
  0xf4   : > { %v7074_v29 = vpop.f32.mrf.mxu0  ;;  %5850 = vmatmul.msk.f32.gmra.mxu3 %vm257_vm1, %v6720_v32 }
  0xf6   : > { %v544_v53 = vpop.f32.mrf.mxu2 }
  0xf7   : > { %5886 = vmatmul.msk.f32.gmra.mxu0 %vm257_vm1, %v6811_v52  ;;  %v7081_v25 = vpop.f32.mrf.mxu1  ;;  %v822_v23 = vpop.f32.mrf.mxu3  ;;  %v604_v24 = vadd.f32 %v7045_v59, %v544_v53  ;;  %v7099_v52 = vld [vmem:[#allocation2 + $0x4a] sm:$0xff] }
  0xf8   : > { %9257 = vst [vmem:[#allocation48_spill] sm:$0xff] %v7099_v52 }
  0xf9   : > { %v7088_v45 = vadd.f32 %v822_v23, %v604_v24 }
  0xfa   : > { %5919 = vmatmul.msk.f32.gmra.mxu1 %vm257_vm1, %v7083_v46 }
  0xfb   : > { %9256 = vst [vmem:[#allocation47_spill] sm:$0xff] %v7088_v45  ;;  %5817 = vmatmul.msk.f32.gmra.mxu2 %vm257_vm1, %v1731_v26 }
  0xfc   : > { %v7090_v28 = vpop.f32.mrf.mxu0  ;;  %5851 = vmatmul.msk.f32.gmra.mxu3 %vm257_vm1, %v6746_v38 }
  0xfe   : > { %v547_v40 = vpop.f32.mrf.mxu2 }
  0xff   : > { %5887 = vmatmul.msk.f32.gmra.mxu0 %vm257_vm1, %v6837_v58  ;;  %v7097_v32 = vpop.f32.mrf.mxu1  ;;  %v825_v53 = vpop.f32.mrf.mxu3  ;;  %v605_v12 = vadd.f32 %v7045_v59, %v547_v40  ;;  %v7116_v58 = vld [vmem:[#allocation2 + $0x52] sm:$0xff] }
 0x100   : > { %9259 = vst [vmem:[#allocation50_spill] sm:$0xff] %v7116_v58 }
 0x101   : > { %v7104_v24 = vadd.f32 %v825_v53, %v605_v12 }
 0x102   : > { %5920 = vmatmul.msk.f32.gmra.mxu1 %vm257_vm1, %v7099_v52 }
 0x103   : > { %9258 = vst [vmem:[#allocation49_spill] sm:$0xff] %v7104_v24  ;;  %5818 = vmatmul.msk.f32.gmra.mxu2 %vm257_vm1, %v7067_v17 }
 0x104   : > { %v7106_v26 = vpop.f32.mrf.mxu0  ;;  %5852 = vmatmul.msk.f32.gmra.mxu3 %vm257_vm1, %v6772_v44 }
 0x106   : > { %v550_v23 = vpop.f32.mrf.mxu2 }
 0x107   : > { %5888 = vmatmul.msk.f32.gmra.mxu0 %vm257_vm1, %v6863_v0  ;;  %v7114_v38 = vpop.f32.mrf.mxu1  ;;  %v828_v40 = vpop.f32.mrf.mxu3  ;;  %v606_v12 = vadd.f32 %v7045_v59, %v550_v23  ;;  %v7133_v0 = vld [vmem:[#allocation2 + $0x62] sm:$0xff] }
 0x108   : > { %9261 = vst [vmem:[#allocation52_spill] sm:$0xff] %v7133_v0 }
 0x109   : > { %v7121_v53 = vadd.f32 %v828_v40, %v606_v12 }
 0x10a   : > { %5921 = vmatmul.msk.f32.gmra.mxu1 %vm257_vm1, %v7116_v58 }
 0x10b   : > { %9260 = vst [vmem:[#allocation51_spill] sm:$0xff] %v7121_v53  ;;  %5819 = vmatmul.msk.f32.gmra.mxu2 %vm257_vm1, %v7083_v46 }
 0x10c   : > { %v7123_v24 = vpop.f32.mrf.mxu0  ;;  %5853 = vmatmul.msk.f32.gmra.mxu3 %vm257_vm1, %v6798_v50 }
 0x10e   : > { %v553_v23 = vpop.f32.mrf.mxu2 }
 0x10f   : > { %5889 = vmatmul.msk.f32.gmra.mxu0 %vm257_vm1, %v6889_v6  ;;  %v7131_v44 = vpop.f32.mrf.mxu1  ;;  %v831_v45 = vpop.f32.mrf.mxu3  ;;  %v607_v40 = vadd.f32 %v7045_v59, %v553_v23  ;;  %v7150_v6 = vld [vmem:[#allocation2 + $0x6a] sm:$0xff] }
 0x110   : > { %9263 = vst [vmem:[#allocation54_spill] sm:$0xff] %v7150_v6 }
 0x111   : > { %v7138_v12 = vadd.f32 %v831_v45, %v607_v40 }
 0x112   : > { %5922 = vmatmul.msk.f32.gmra.mxu1 %vm257_vm1, %v7133_v0 }
 0x113   : > { %9262 = vst [vmem:[#allocation53_spill] sm:$0xff] %v7138_v12  ;;  %5820 = vmatmul.msk.f32.gmra.mxu2 %vm257_vm1, %v7099_v52 }
 0x114   : > { %v7140_v53 = vpop.f32.mrf.mxu0  ;;  %5854 = vmatmul.msk.f32.gmra.mxu3 %vm257_vm1, %v6824_v56 }
 0x116   : > { %v556_v23 = vpop.f32.mrf.mxu2 }
 0x117   : > { %5890 = vmatmul.msk.f32.gmra.mxu0 %vm257_vm1, %v6915_v57  ;;  %v7148_v50 = vpop.f32.mrf.mxu1  ;;  %v834_v46 = vpop.f32.mrf.mxu3  ;;  %v608_v45 = vadd.f32 %v7045_v59, %v556_v23  ;;  %v7167_v57 = vld [vmem:[#allocation2 + $0x7a] sm:$0xff] }
 0x118   : > { %9265 = vst [vmem:[#allocation56_spill] sm:$0xff] %v7167_v57 }
 0x119   : > { %v7155_v40 = vadd.f32 %v834_v46, %v608_v45 }
 0x11a   : > { %5923 = vmatmul.msk.f32.gmra.mxu1 %vm257_vm1, %v7150_v6 }
 0x11b   : > { %9264 = vst [vmem:[#allocation55_spill] sm:$0xff] %v7155_v40  ;;  %5821 = vmatmul.msk.f32.gmra.mxu2 %vm257_vm1, %v7116_v58 }
 0x11c   : > { %v7157_v12 = vpop.f32.mrf.mxu0  ;;  %5855 = vmatmul.msk.f32.gmra.mxu3 %vm257_vm1, %v6850_v62  ;;  %v7184_v62 = vld [vmem:[#allocation2 + $0x82] sm:$0xff] }
 0x11d   : > { %9267 = vst [vmem:[#allocation58_spill] sm:$0xff] %v7184_v62 }
 0x11e   : > { %v559_v23 = vpop.f32.mrf.mxu2 }
 0x11f   : > { %5891 = vmatmul.msk.f32.gmra.mxu0 %vm257_vm1, %v6941_v27  ;;  %v7165_v56 = vpop.f32.mrf.mxu1  ;;  %v837_v52 = vpop.f32.mrf.mxu3  ;;  %v609_v46 = vadd.f32 %v7045_v59, %v559_v23 }
 0x121   : > { %v7172_v45 = vadd.f32 %v837_v52, %v609_v46 }
 0x122   : > { %5924 = vmatmul.msk.f32.gmra.mxu1 %vm257_vm1, %v7167_v57 }
 0x123   : > { %9266 = vst [vmem:[#allocation57_spill] sm:$0xff] %v7172_v45  ;;  %5822 = vmatmul.msk.f32.gmra.mxu2 %vm257_vm1, %v7133_v0 }
 0x124   : > { %v7174_v40 = vpop.f32.mrf.mxu0  ;;  %5856 = vmatmul.msk.f32.gmra.mxu3 %vm257_vm1, %v6876_v4 }
 0x126   : > { %v562_v23 = vpop.f32.mrf.mxu2 }
 0x127   : > { %5892 = vmatmul.msk.f32.gmra.mxu0 %vm257_vm1, %v6957_v5  ;;  %v7182_v27 = vpop.f32.mrf.mxu1  ;;  %v840_v58 = vpop.f32.mrf.mxu3  ;;  %v610_v52 = vadd.f32 %v7045_v59, %v562_v23  ;;  %v7201_v5 = vld [vmem:[#allocation2 + $0x92] sm:$0xff] }
 0x128   : > { %9269 = vst [vmem:[#allocation60_spill] sm:$0xff] %v7201_v5 }
 0x129   : > { %v7189_v46 = vadd.f32 %v840_v58, %v610_v52 }
 0x12a   : > { %5925 = vmatmul.msk.f32.gmra.mxu1 %vm257_vm1, %v7184_v62 }
 0x12b   : > { %9268 = vst [vmem:[#allocation59_spill] sm:$0xff] %v7189_v46  ;;  %5823 = vmatmul.msk.f32.gmra.mxu2 %vm257_vm1, %v7150_v6 }
 0x12c   : > { %v7191_v45 = vpop.f32.mrf.mxu0  ;;  %5857 = vmatmul.msk.f32.gmra.mxu3 %vm257_vm1, %v6902_v63 }
 0x12e   : > { %v565_v23 = vpop.f32.mrf.mxu2 }
 0x12f   : > { %5893 = vmatmul.msk.f32.gmra.mxu0 %vm257_vm1, %v6981_v1  ;;  %v7199_v4 = vpop.f32.mrf.mxu1  ;;  %v843_v0 = vpop.f32.mrf.mxu3  ;;  %v611_v58 = vadd.f32 %v7045_v59, %v565_v23  ;;  %v7218_v1 = vld [vmem:[#allocation2 + $0x9a] sm:$0xff] }
 0x130   : > { %9271 = vst [vmem:[#allocation62_spill] sm:$0xff] %v7218_v1 }
 0x131   : > { %v7206_v52 = vadd.f32 %v843_v0, %v611_v58 }
 0x132   : > { %5926 = vmatmul.msk.f32.gmra.mxu1 %vm257_vm1, %v7201_v5 }
 0x133   : > { %9270 = vst [vmem:[#allocation61_spill] sm:$0xff] %v7206_v52  ;;  %5824 = vmatmul.msk.f32.gmra.mxu2 %vm257_vm1, %v7167_v57 }
 0x134   : > { %v7208_v46 = vpop.f32.mrf.mxu0  ;;  %5858 = vmatmul.msk.f32.gmra.mxu3 %vm257_vm1, %v6928_v33 }
 0x136   : > { %v568_v23 = vpop.f32.mrf.mxu2 }
 0x137   : > { %5894 = vmatmul.msk.f32.gmra.mxu0 %vm257_vm1, %v7005_v7  ;;  %v7216_v63 = vpop.f32.mrf.mxu1  ;;  %v846_v6 = vpop.f32.mrf.mxu3  ;;  %v612_v0 = vadd.f32 %v7045_v59, %v568_v23  ;;  %v7235_v7 = vld [vmem:[#allocation2 + $0xaa] sm:$0xff] }
 0x138   : > { %9273 = vst [vmem:[#allocation64_spill] sm:$0xff] %v7235_v7 }
 0x139   : > { %v7223_v58 = vadd.f32 %v846_v6, %v612_v0 }
 0x13a   : > { %5927 = vmatmul.msk.f32.gmra.mxu1 %vm257_vm1, %v7218_v1 }
 0x13b   : > { %9272 = vst [vmem:[#allocation63_spill] sm:$0xff] %v7223_v58  ;;  %5825 = vmatmul.msk.f32.gmra.mxu2 %vm257_vm1, %v7184_v62 }
 0x13c   : > { %v7225_v52 = vpop.f32.mrf.mxu0  ;;  %5859 = vmatmul.msk.f32.gmra.mxu3 %vm257_vm1, %v6949_v16 }
 0x13e   : > { %v571_v23 = vpop.f32.mrf.mxu2 }
 0x13f   : > { %5895 = vmatmul.msk.f32.gmra.mxu0 %vm257_vm1, %v7021_v51  ;;  %v7233_v33 = vpop.f32.mrf.mxu1  ;;  %v849_v57 = vpop.f32.mrf.mxu3  ;;  %v613_v6 = vadd.f32 %v7045_v59, %v571_v23  ;;  %v7252_v51 = vld [vmem:[#allocation2 + $0xb2] sm:$0xff] }
 0x140   : > { %9275 = vst [vmem:[#allocation66_spill] sm:$0xff] %v7252_v51 }
 0x141   : > { %v7240_v0 = vadd.f32 %v849_v57, %v613_v6 }
 0x142   : > { %5928 = vmatmul.msk.f32.gmra.mxu1 %vm257_vm1, %v7235_v7 }
 0x143   : > { %9274 = vst [vmem:[#allocation65_spill] sm:$0xff] %v7240_v0  ;;  %5826 = vmatmul.msk.f32.gmra.mxu2 %vm257_vm1, %v7201_v5 }
 0x144   : > { %v7242_v58 = vpop.f32.mrf.mxu0  ;;  %5860 = vmatmul.msk.f32.gmra.mxu3 %vm257_vm1, %v6965_v9  ;;  %v3051_v9 = vld [vmem:[%s9135_s3] sm:$0xf] }
 0x145   : > { %6050 = vmatpush.msk.msra.mxu1 %vm469_vm0, %v3051_v9 }
 0x146   : > { %v574_v23 = vpop.f32.mrf.mxu2 }
 0x147   : > { %5896 = vmatmul.msk.f32.gmra.mxu0 %vm257_vm1, %v6639_v15  ;;  %v7250_v16 = vpop.f32.mrf.mxu1  ;;  %v852_v62 = vpop.f32.mrf.mxu3  ;;  %v614_v57 = vadd.f32 %v7045_v59, %v574_v23 }
 0x149   : > { %v7257_v6 = vadd.f32 %v852_v62, %v614_v57  ;;  %v7273_v62 = vld [vmem:[#allocation2 + $0xc2] sm:$0xff] }
 0x14a   : > { %5929 = vmatmul.msk.f32.gmra.mxu1 %vm257_vm1, %v7252_v51 }
 0x14b   : > { %9276 = vst [vmem:[#allocation67_spill] sm:$0xff] %v7257_v6  ;;  %5827 = vmatmul.msk.f32.gmra.mxu2 %vm257_vm1, %v7218_v1 }
 0x14c   : > { %v7262_v0 = vpop.f32.mrf.mxu0  ;;  %5861 = vmatmul.msk.f32.gmra.mxu3 %vm257_vm1, %v6992_v41  ;;  %v7288_v41 = vld [vmem:[#allocation2 + $0xca] sm:$0xff] }
 0x14d   : > { %9277 = vst [vmem:[#allocation68_spill] sm:$0xff] %v7262_v0 }
 0x14e   : > { %v577_v23 = vpop.f32.mrf.mxu2 }
 0x14f   : > { %5897 = vmatmul.msk.f32.gmra.mxu0 %vm257_vm1, %v6670_v22  ;;  %v7271_v15 = vpop.f32.mrf.mxu1  ;;  %v855_v57 = vpop.f32.mrf.mxu3  ;;  %v615_v6 = vadd.f32 %v7045_v59, %v577_v23 }
 0x151   : > { %v7278_v9 = vadd.f32 %v855_v57, %v615_v6 }
 0x152   : > { %5930 = vmatmul.msk.f32.gmra.mxu1 %vm257_vm1, %v7273_v62 }
 0x153   : > { %9278 = vst [vmem:[#allocation69_spill] sm:$0xff] %v7278_v9  ;;  %5828 = vmatmul.msk.f32.gmra.mxu2 %vm257_vm1, %v7235_v7 }
 0x154   : > { %v1602_v1 = vpop.f32.mrf.mxu0  ;;  %5862 = vmatmul.msk.f32.gmra.mxu3 %vm257_vm1, %v6637_v14 }
 0x156   : > { %v580_v23 = vpop.f32.mrf.mxu2 }
 0x157   : > { %5898 = vmatmul.msk.f32.gmra.mxu0 %vm257_vm1, %v6716_v31  ;;  %v7286_v22 = vpop.f32.mrf.mxu1  ;;  %v858_v5 = vpop.f32.mrf.mxu3  ;;  %v616_v0 = vadd.f32 %v7045_v59, %v580_v23  ;;  %v7301_v31 = vld [vmem:[#allocation2 + $0xda] sm:$0xff] }
 0x158   : > { %9279 = vst [vmem:[#allocation70_spill] sm:$0xff] %v7286_v22 }
 0x159   : > { %v7293_v6 = vadd.f32 %v858_v5, %v616_v0  ;;  %v586_v5 = vadd.f32 %v7045_v59, %v7007_v35 }
 0x15a   : > { %5931 = vmatmul.msk.f32.gmra.mxu1 %vm257_vm1, %v7288_v41 }
 0x15b   : > { %9280 = vst [vmem:[#allocation71_spill] sm:$0xff] %v7293_v6  ;;  %5829 = vmatmul.msk.f32.gmra.mxu2 %vm257_vm1, %v7252_v51 }
 0x15c   : > { %v1605_v57 = vpop.f32.mrf.mxu0  ;;  %5863 = vmatmul.msk.f32.gmra.mxu3 %vm257_vm1, %v6668_v21  ;;  %v864_v21 = vadd.f32 %v7035_v13, %v586_v5 }
 0x15e   : > { %v583_v9 = vpop.f32.mrf.mxu2 }
 0x15f   : > { %5899 = vmatmul.msk.f32.gmra.mxu0 %vm257_vm1, %v6742_v37  ;;  %v1880_v14 = vpop.f32.mrf.mxu1  ;;  %v861_v23 = vpop.f32.mrf.mxu3  ;;  %v617_v7 = vadd.f32 %v7045_v59, %v583_v9  ;;  %v7317_v9 = vld [vmem:[#allocation2 + $0xe2] sm:$0xff] }
 0x161   : > { %v7308_v0 = vadd.f32 %v861_v23, %v617_v7  ;;  %v587_v7 = vadd.f32 %v7045_v59, %v7027_v18 }
 0x162   : > { %5932 = vmatmul.msk.f32.gmra.mxu1 %vm257_vm1, %v7301_v31 }
 0x163   : > { %9281 = vst [vmem:[#allocation72_spill] sm:$0xff] %v7308_v0  ;;  %5830 = vmatmul.msk.f32.gmra.mxu2 %vm257_vm1, %v7273_v62 }
 0x164   : > { %v1608_v6 = vpop.f32.mrf.mxu0  ;;  %5864 = vmatmul.msk.f32.gmra.mxu3 %vm257_vm1, %v6714_v30  ;;  %v865_v30 = vadd.f32 %v7052_v34, %v587_v7  ;;  %v7347_v7 = vld [vmem:[#allocation2 + $0xfa] sm:$0xff] }
 0x166   : > { %v1046_v51 = vpop.f32.mrf.mxu2 }
 0x167   : > { %5900 = vmatmul.msk.f32.gmra.mxu0 %vm257_vm1, %v6768_v43  ;;  %v1883_v37 = vpop.f32.mrf.mxu1  ;;  %v1324_v22 = vpop.f32.mrf.mxu3  ;;  %v1142_v35 = vadd.f32 %v1046_v51, %v864_v21  ;;  %v7332_v51 = vld [vmem:[#allocation2 + $0xf2] sm:$0xff] }
 0x169   : > { %v1420_v23 = vadd.f32 %v1324_v22, %v1142_v35 }
 0x16a   : > { %5933 = vmatmul.msk.f32.gmra.mxu1 %vm257_vm1, %v7317_v9 }
 0x16b   : > { %5831 = vmatmul.msk.f32.gmra.mxu2 %vm257_vm1, %v7288_v41  ;;  %v1698_v13 = vadd.f32 %v1602_v1, %v1420_v23 }
 0x16c   : > { %v1611_v0 = vpop.f32.mrf.mxu0  ;;  %5865 = vmatmul.msk.f32.gmra.mxu3 %vm257_vm1, %v6740_v36  ;;  %v588_v36 = vadd.f32 %v7045_v59, %v7040_v47 }
 0x16d   : > { %v7328_v43 = vadd.f32 %v1880_v14, %v1698_v13 }
 0x16e   : > { %v1049_v5 = vpop.f32.mrf.mxu2  ;;  %v866_v34 = vadd.f32 %v7065_v11, %v588_v36 }
 0x16f   : > { %5901 = vmatmul.msk.f32.gmra.mxu0 %vm257_vm1, %v6794_v49  ;;  %v1327_v18 = vpop.f32.mrf.mxu3  ;;  %v1143_v22 = vadd.f32 %v1049_v5, %v865_v30  ;;  %v1886_v21 = vpop.f32.mrf.mxu1  ;;  %v589_v30 = vadd.f32 %v7045_v59, %v7058_v10 }
 0x171   : > { %v1421_v1 = vadd.f32 %v1327_v18, %v1143_v22  ;;  %v867_v11 = vadd.f32 %v7081_v25, %v589_v30  ;;  %v7362_v18 = vld [vmem:[#allocation2 + $0x10a] sm:$0xff] }
 0x172   : > { %5934 = vmatmul.msk.f32.gmra.mxu1 %vm257_vm1, %v7332_v51 }
 0x173   : > { %5832 = vmatmul.msk.f32.gmra.mxu2 %vm257_vm1, %v7301_v31  ;;  %v1699_v49 = vadd.f32 %v1605_v57, %v1421_v1  ;;  %v590_v1 = vadd.f32 %v7045_v59, %v7074_v29 }
 0x174   : > { %v1614_v35 = vpop.f32.mrf.mxu0  ;;  %5866 = vmatmul.msk.f32.gmra.mxu3 %vm257_vm1, %v6766_v42 }
 0x175   : > { %v7343_v14 = vadd.f32 %v1883_v37, %v1699_v49 }
 0x176   : > { %v1052_v23 = vpop.f32.mrf.mxu2 }
 0x177   : > { %5902 = vmatmul.msk.f32.gmra.mxu0 %vm257_vm1, %v6820_v55  ;;  %v1330_v47 = vpop.f32.mrf.mxu3  ;;  %v1144_v13 = vadd.f32 %v1052_v23, %v866_v34  ;;  %v1889_v57 = vpop.f32.mrf.mxu1  ;;  %v7377_v34 = vld [vmem:[#allocation2 + $0x112] sm:$0xff] }
 0x179   : > { %v1422_v42 = vadd.f32 %v1330_v47, %v1144_v13 }
 0x17a   : > { %5935 = vmatmul.msk.f32.gmra.mxu1 %vm257_vm1, %v7347_v7 }
 0x17b   : > { %5833 = vmatmul.msk.f32.gmra.mxu2 %vm257_vm1, %v7317_v9  ;;  %v1700_v55 = vadd.f32 %v1608_v6, %v1422_v42 }
 0x17c   : > { %v1617_v5 = vpop.f32.mrf.mxu0  ;;  %5867 = vmatmul.msk.f32.gmra.mxu3 %vm257_vm1, %v6792_v48 }
 0x17d   : > { %v7358_v37 = vadd.f32 %v1886_v21, %v1700_v55  ;;  %v868_v21 = vadd.f32 %v7097_v32, %v590_v1 }
 0x17e   : > { %v1055_v10 = vpop.f32.mrf.mxu2 }
 0x17f   : > { %5903 = vmatmul.msk.f32.gmra.mxu0 %vm257_vm1, %v6846_v61  ;;  %v1333_v22 = vpop.f32.mrf.mxu3  ;;  %v1145_v36 = vadd.f32 %v1055_v10, %v867_v11  ;;  %v1892_v25 = vpop.f32.mrf.mxu1 }
 0x181   : > { %v1423_v48 = vadd.f32 %v1333_v22, %v1145_v36  ;;  %v7407_v36 = vld [vmem:[#allocation2 + $0x12a] sm:$0xff] }
 0x182   : > { %5936 = vmatmul.msk.f32.gmra.mxu1 %vm257_vm1, %v7362_v18 }
 0x183   : > { %5834 = vmatmul.msk.f32.gmra.mxu2 %vm257_vm1, %v7332_v51  ;;  %v1701_v61 = vadd.f32 %v1611_v0, %v1423_v48 }
 0x184   : > { %v1620_v6 = vpop.f32.mrf.mxu0  ;;  %5868 = vmatmul.msk.f32.gmra.mxu3 %vm257_vm1, %v6818_v54  ;;  %v591_v54 = vadd.f32 %v7045_v59, %v7090_v28 }
 0x185   : > { %v7373_v49 = vadd.f32 %v1889_v57, %v1701_v61  ;;  %v7392_v57 = vld [vmem:[#allocation2 + $0x122] sm:$0xff] }
 0x186   : > { %v1058_v29 = vpop.f32.mrf.mxu2  ;;  %v869_v32 = vadd.f32 %v7114_v38, %v591_v54 }
 0x187   : > { %5904 = vmatmul.msk.f32.gmra.mxu0 %vm257_vm1, %v6872_v3  ;;  %v1336_v23 = vpop.f32.mrf.mxu3  ;;  %v1146_v47 = vadd.f32 %v1058_v29, %v868_v21  ;;  %v1895_v42 = vpop.f32.mrf.mxu1  ;;  %v7422_v29 = vld [vmem:[#allocation2 + $0x13a] sm:$0xff] }
 0x189   : > { %v1424_v0 = vadd.f32 %v1336_v23, %v1146_v47 }
 0x18a   : > { %5937 = vmatmul.msk.f32.gmra.mxu1 %vm257_vm1, %v7377_v34 }
 0x18b   : > { %5835 = vmatmul.msk.f32.gmra.mxu2 %vm257_vm1, %v7347_v7  ;;  %v1702_v3 = vadd.f32 %v1614_v35, %v1424_v0  ;;  %v9282_v0 = vld [vmem:[#allocation33_spill] sm:$0xff] }
 0x18c   : > { %v1623_v13 = vpop.f32.mrf.mxu0  ;;  %5869 = vmatmul.msk.f32.gmra.mxu3 %vm257_vm1, %v6844_v60  ;;  %v592_v60 = vadd.f32 %v7045_v59, %v7106_v26 }
 0x18d   : > { %v7388_v30 = vadd.f32 %v1892_v25, %v1702_v3 }
 0x18e   : > { %v1061_v28 = vpop.f32.mrf.mxu2  ;;  %v870_v38 = vadd.f32 %v7131_v44, %v592_v60 }
 0x18f   : > { %5905 = vmatmul.msk.f32.gmra.mxu0 %vm257_vm1, %v6898_v19  ;;  %v1339_v55 = vpop.f32.mrf.mxu3  ;;  %v1147_v11 = vadd.f32 %v1061_v28, %v869_v32  ;;  %v1898_v61 = vpop.f32.mrf.mxu1  ;;  %v7437_v28 = vld [vmem:[#allocation2 + $0x142] sm:$0xff] }
 0x191   : > { %v1425_v35 = vadd.f32 %v1339_v55, %v1147_v11 }
 0x192   : > { %5938 = vmatmul.msk.f32.gmra.mxu1 %vm257_vm1, %v7392_v57 }
 0x193   : > { %5836 = vmatmul.msk.f32.gmra.mxu2 %vm257_vm1, %v7362_v18  ;;  %v1703_v19 = vadd.f32 %v1617_v5, %v1425_v35 }
 0x194   : > { %v1626_v10 = vpop.f32.mrf.mxu0  ;;  %5870 = vmatmul.msk.f32.gmra.mxu3 %vm257_vm1, %v6870_v2  ;;  %v593_v2 = vadd.f32 %v7045_v59, %v7123_v24 }
 0x195   : > { %v7403_v22 = vadd.f32 %v1895_v42, %v1703_v19  ;;  %v9283_v42 = vld [vmem:[#allocation37_spill] sm:$0xff]  ;;  %v9285_v19 = vld [vmem:[#allocation35_spill] sm:$0xff] }
 0x196   : > { %v1064_v1 = vpop.f32.mrf.mxu2  ;;  %v871_v44 = vadd.f32 %v7148_v50, %v593_v2 }
 0x197   : > { %5906 = vmatmul.msk.f32.gmra.mxu0 %vm257_vm1, %v6924_v39  ;;  %v1342_v26 = vpop.f32.mrf.mxu3  ;;  %v1148_v48 = vadd.f32 %v1064_v1, %v870_v38  ;;  %v1901_v54 = vpop.f32.mrf.mxu1 }
 0x199   : > { %v1426_v5 = vadd.f32 %v1342_v26, %v1148_v48  ;;  %v9286_v26 = vld [vmem:[#allocation39_spill] sm:$0xff] }
 0x19a   : > { %5939 = vmatmul.msk.f32.gmra.mxu1 %vm257_vm1, %v7407_v36  ;;  %v7457_v48 = vld [vmem:[#allocation2 + $0x152] sm:$0xff] }
 0x19b   : > { %5837 = vmatmul.msk.f32.gmra.mxu2 %vm257_vm1, %v7377_v34  ;;  %v1704_v39 = vadd.f32 %v1620_v6, %v1426_v5 }
 0x19c   : > { %v1629_v25 = vpop.f32.mrf.mxu0  ;;  %5871 = vmatmul.msk.f32.gmra.mxu3 %vm257_vm1, %v6896_v8  ;;  %v594_v8 = vadd.f32 %v7045_v59, %v7140_v53  ;;  %v7440_v53 = vld [vmem:[%s6598_s8 + $0xf0] sm:$0xff] }
 0x19d   : > { %v7418_v21 = vadd.f32 %v1898_v61, %v1704_v39  ;;  %9284 = vst [vmem:[#allocation33_spill] sm:$0xff] %v7440_v53  ;;  %v7460_v61 = vld [vmem:[%s6598_s8 + $0xf8] sm:$0xff] }
 0x19e   : > { %v1067_v24 = vpop.f32.mrf.mxu2  ;;  %v872_v3 = vadd.f32 %v7165_v56, %v594_v8  ;;  %334 = vst.msk [vmem:[#allocation2 + $0x181] sm:$0xff] %vm257_vm1, %v7440_v53  ;;  %v595_v56 = vadd.f32 %v7045_v59, %v7157_v12  ;;  %v7477_v8 = vld [vmem:[#allocation2 + $0x15a] sm:$0xff] }
 0x19f   : > { %5907 = vmatmul.msk.f32.gmra.mxu0 %vm257_vm1, %v6945_v20  ;;  %v1345_v23 = vpop.f32.mrf.mxu3  ;;  %v1149_v47 = vadd.f32 %v1067_v24, %v871_v44  ;;  %9287 = vst [vmem:[#allocation37_spill] sm:$0xff] %v7460_v61  ;;  %v9288_v44 = vld [vmem:[#allocation36_spill] sm:$0xff] }
 0x1a0   : > { %v873_v1 = vadd.f32 %v7182_v27, %v595_v56  ;;  %335 = vst.msk [vmem:[#allocation2 + $0x189] sm:$0xff] %vm257_vm1, %v7460_v61  ;;  %v2015_v61 = vld [vmem:[#allocation2 + $0x78] sm:$0xff] }
 0x1a1   : > { %v1427_v6 = vadd.f32 %v1345_v23, %v1149_v47  ;;  %v9289_v47 = vld [vmem:[#allocation41_spill] sm:$0xff]  ;;  %v2293_v53 = vld [vmem:[#allocation2 + $0x79] sm:$0xff] }
 0x1a2   : > { %5940 = vmatmul.msk.f32.gmra.mxu1 %vm257_vm1, %v7422_v29 }
 0x1a3   : > { %5838 = vmatmul.msk.f32.gmra.mxu2 %vm257_vm1, %v7392_v57  ;;  %v1705_v20 = vadd.f32 %v1623_v13, %v1427_v6 }
 0x1a4   : > { %v1632_v50 = vpop.f32.mrf.mxu0  ;;  %5872 = vmatmul.msk.f32.gmra.mxu3 %vm257_vm1, %v9282_v0  ;;  %v597_v0 = vadd.f32 %v7045_v59, %v7191_v45 }
 0x1a5   : > { %v7433_v32 = vadd.f32 %v1901_v54, %v1705_v20 }
 0x1a6   : > { %v1070_v55 = vpop.f32.mrf.mxu2 }
 0x1a7   : > { %5908 = vmatmul.msk.f32.gmra.mxu0 %vm257_vm1, %v9283_v42  ;;  %v1348_v11 = vpop.f32.mrf.mxu3  ;;  %v1150_v60 = vadd.f32 %v1070_v55, %v872_v3  ;;  %v875_v42 = vadd.f32 %v7216_v63, %v597_v0  ;;  %v9291_v55 = vld [vmem:[#allocation43_spill] sm:$0xff]  ;;  %v9292_v63 = vld [vmem:[#allocation40_spill] sm:$0xff] }
 0x1a9   : > { %v1428_v13 = vadd.f32 %v1348_v11, %v1150_v60  ;;  %v7492_v11 = vld [vmem:[#allocation2 + $0x16a] sm:$0xff] }
 0x1aa   : > { %5941 = vmatmul.msk.f32.gmra.mxu1 %vm257_vm1, %v7437_v28 }
 0x1ab   : > { %5839 = vmatmul.msk.f32.gmra.mxu2 %vm257_vm1, %v7407_v36  ;;  %v7452_v38 = vadd.f32 %v1626_v10, %v1428_v13  ;;  %v596_v10 = vadd.f32 %v7045_v59, %v7174_v40  ;;  %v598_v13 = vadd.f32 %v7045_v59, %v7208_v46 }
 0x1ac   : > { %v1635_v35 = vpop.f32.mrf.mxu0  ;;  %5873 = vmatmul.msk.f32.gmra.mxu3 %vm257_vm1, %v9285_v19 }
 0x1ad   : > { %v874_v23 = vadd.f32 %v7199_v4, %v596_v10  ;;  %v9290_v4 = vld [vmem:[#allocation38_spill] sm:$0xff] }
 0x1ae   : > { %v1073_v12 = vpop.f32.mrf.mxu2 }
 0x1af   : > { %5909 = vmatmul.msk.f32.gmra.mxu0 %vm257_vm1, %v9286_v26  ;;  %v1351_v2 = vpop.f32.mrf.mxu3  ;;  %v1151_v5 = vadd.f32 %v1073_v12, %v873_v1  ;;  %v876_v12 = vadd.f32 %v7233_v33, %v598_v13  ;;  %v9293_v33 = vld [vmem:[#allocation42_spill] sm:$0xff]  ;;  %v7545_v13 = vld [vmem:[#allocation2 + $0x188] sm:$0xff] }
 0x1b1   : > { %v1429_v27 = vadd.f32 %v1351_v2, %v1151_v5  ;;  %v7509_v2 = vld [vmem:[#allocation2 + $0x172] sm:$0xff] }
 0x1b2   : > { %5942 = vmatmul.msk.f32.gmra.mxu1 %vm257_vm1, %v7457_v48 }
 0x1b3   : > { %5840 = vmatmul.msk.f32.gmra.mxu2 %vm257_vm1, %v7422_v29  ;;  %v7472_v24 = vadd.f32 %v1629_v25, %v1429_v27  ;;  %v599_v27 = vadd.f32 %v7045_v59, %v7225_v52 }
 0x1b4   : > { %v1638_v39 = vpop.f32.mrf.mxu0  ;;  %5874 = vmatmul.msk.f32.gmra.mxu3 %vm257_vm1, %v9288_v44 }
 0x1b6   : > { %v1076_v6 = vpop.f32.mrf.mxu2 }
 0x1b7   : > { %5910 = vmatmul.msk.f32.gmra.mxu0 %vm257_vm1, %v9289_v47  ;;  %v1354_v54 = vpop.f32.mrf.mxu3  ;;  %v1152_v40 = vadd.f32 %v1076_v6, %v874_v23  ;;  %v877_v6 = vadd.f32 %v7250_v16, %v599_v27 }
 0x1b9   : > { %v1430_v20 = vadd.f32 %v1354_v54, %v1152_v40  ;;  %v7526_v54 = vld [vmem:[#allocation2 + $0x182] sm:$0xff] }
 0x1ba   : > { %5943 = vmatmul.msk.f32.gmra.mxu1 %vm257_vm1, %v7477_v8 }
 0x1bb   : > { %5841 = vmatmul.msk.f32.gmra.mxu2 %vm257_vm1, %v7437_v28  ;;  %v7487_v25 = vadd.f32 %v1632_v50, %v1430_v20  ;;  %v7498_v50 = vld [vmem:[#allocation2 + $0x181] sm:$0xff] }
 0x1bc   : > { %v1641_v3 = vpop.f32.mrf.mxu0  ;;  %5875 = vmatmul.msk.f32.gmra.mxu3 %vm257_vm1, %v9290_v4  ;;  %v7528_v20 = vld [vmem:[#allocation2 + $0x180] sm:$0xff]  ;;  %v600_v4 = vadd.f32 %v7045_v59, %v7242_v58 }
 0x1be   : > { %v1079_v60 = vpop.f32.mrf.mxu2 }
 0x1bf   : > { %5911 = vmatmul.msk.f32.gmra.mxu0 %vm257_vm1, %v9291_v55  ;;  %v1357_v56 = vpop.f32.mrf.mxu3  ;;  %v1153_v45 = vadd.f32 %v1079_v60, %v875_v42  ;;  %v878_v55 = vadd.f32 %v7271_v15, %v600_v4  ;;  %v7543_v60 = vld [vmem:[#allocation2 + $0x18a] sm:$0xff] }
 0x1c0   : > { %v9295_v15 = vld [vmem:[#allocation70_spill] sm:$0xff] }
 0x1c1   : > { %v1431_v19 = vadd.f32 %v1357_v56, %v1153_v45 }
 0x1c2   : > { %5944 = vmatmul.msk.f32.gmra.mxu1 %vm257_vm1, %v7492_v11 }
 0x1c3   : > { %5842 = vmatmul.msk.f32.gmra.mxu2 %vm257_vm1, %v7457_v48  ;;  %v7504_v26 = vadd.f32 %v1635_v35, %v1431_v19  ;;  %v7515_v35 = vld [vmem:[#allocation2 + $0x189] sm:$0xff]  ;;  %v9294_v19 = vld [vmem:[#allocation68_spill] sm:$0xff] }
 0x1c4   : > { %v1644_v1 = vpop.f32.mrf.mxu0  ;;  %5876 = vmatmul.msk.f32.gmra.mxu3 %vm257_vm1, %v9292_v63  ;;  %v601_v63 = vadd.f32 %v7045_v59, %v9294_v19  ;;  %v2287_v59 = vld [vmem:[#allocation2 + $0x31] sm:$0xff] }
 0x1c6   : > { %v1082_v46 = vpop.f32.mrf.mxu2 }
 0x1c7   : > { %5912 = vmatmul.msk.f32.gmra.mxu0 %vm257_vm1, %v7498_v50  ;;  %v1360_v5 = vpop.f32.mrf.mxu3  ;;  %v1154_v10 = vadd.f32 %v1082_v46, %v876_v12  ;;  %v879_v46 = vadd.f32 %v9295_v15, %v601_v63 }
 0x1c9   : > { %v1432_v44 = vadd.f32 %v1360_v5, %v1154_v10  ;;  %v9296_v5 = vld [vmem:[#allocation46_spill] sm:$0xff] }
 0x1ca   : > { %5945 = vmatmul.msk.f32.gmra.mxu1 %vm257_vm1, %v7509_v2 }
 0x1cb   : > { %5843 = vmatmul.msk.f32.gmra.mxu2 %vm257_vm1, %v7477_v8  ;;  %v7521_v47 = vadd.f32 %v1638_v39, %v1432_v44 }
 0x1cc   : > { %v1647_v23 = vpop.f32.mrf.mxu0  ;;  %5877 = vmatmul.msk.f32.gmra.mxu3 %vm257_vm1, %v9293_v33  ;;  %v2009_v33 = vld [vmem:[#allocation2 + $0x30] sm:$0xff] }
 0x1ce   : > { %v1085_v52 = vpop.f32.mrf.mxu2 }
 0x1cf   : > { %5913 = vmatmul.msk.f32.gmra.mxu0 %vm257_vm1, %v7515_v35  ;;  %v1363_v40 = vpop.f32.mrf.mxu3  ;;  %v1155_v0 = vadd.f32 %v1085_v52, %v877_v6 }
 0x1d1   : > { %v1433_v39 = vadd.f32 %v1363_v40, %v1155_v0 }
 0x1d2   : > { %5946 = vmatmul.msk.f32.gmra.mxu1 %vm257_vm1, %v7526_v54 }
 0x1d3   : > { %5844 = vmatmul.msk.f32.gmra.mxu2 %vm257_vm1, %v7492_v11  ;;  %v7538_v16 = vadd.f32 %v1641_v3, %v1433_v39  ;;  %v9298_v39 = vld [vmem:[#allocation44_spill] sm:$0xff] }
 0x1d4   : > { %v1650_v42 = vpop.f32.mrf.mxu0  ;;  %5878 = vmatmul.msk.f32.gmra.mxu3 %vm257_vm1, %v7528_v20 }
 0x1d6   : > { %v1088_v56 = vpop.f32.mrf.mxu2 }
 0x1d7   : > { %6018 = vmatmul.msk.f32.vlgmr.msra.gmra.mxu0 %vm257_vm1, %v7067_v17  ;;  %v1366_v45 = vpop.f32.mrf.mxu3  ;;  %v1156_v58 = vadd.f32 %v1088_v56, %v878_v55  ;;  %v2010_v56 = vld [vmem:[#allocation2 + $0x38] sm:$0xff] }
 0x1d9   : > { %v1434_v3 = vadd.f32 %v1366_v45, %v1156_v58  ;;  %v2288_v45 = vld [vmem:[#allocation2 + $0x39] sm:$0xff] }
 0x1da   : > { %5947 = vmatmul.msk.f32.gmra.mxu1 %vm257_vm1, %v7543_v60 }
 0x1db   : > { %5845 = vmatmul.msk.f32.gmra.mxu2 %vm257_vm1, %v7509_v2  ;;  %v7555_v17 = vadd.f32 %v1644_v1, %v1434_v3  ;;  %v9297_v1 = vld [vmem:[#allocation48_spill] sm:$0xff]  ;;  %v9299_v3 = vld [vmem:[#allocation50_spill] sm:$0xff] }
 0x1dc   : > { %v1653_v12 = vpop.f32.mrf.mxu0  ;;  %5879 = vmatmul.msk.f32.gmra.mxu3 %vm257_vm1, %v7545_v13 }
 0x1de   : > { %v1091_v10 = vpop.f32.mrf.mxu2 }
 0x1df   : > { %6019 = vmatmul.msk.f32.gmra.mxu0 %vm257_vm1, %v9296_v5  ;;  %v1369_v27 = vpop.f32.mrf.mxu3  ;;  %v1157_v44 = vadd.f32 %v1091_v10, %v879_v46  ;;  %v9300_v46 = vld [vmem:[#allocation45_spill] sm:$0xff] }
 0x1e0   : > { %v2011_v10 = vld [vmem:[#allocation2 + $0x48] sm:$0xff] }
 0x1e1   : > { %v1435_v6 = vadd.f32 %v1369_v27, %v1157_v44  ;;  %v2289_v27 = vld [vmem:[#allocation2 + $0x49] sm:$0xff] }
 0x1e3   : > { %5950 = vmatmul.msk.f32.vlgmr.msra.gmra.mxu2 %vm257_vm1, %v2009_v33  ;;  %v7562_v40 = vadd.f32 %v1647_v23, %v1435_v6 }
 0x1e4   : > { %v1656_v52 = vpop.f32.mrf.mxu0  ;;  %5984 = vmatmul.msk.f32.vlgmr.msra.gmra.mxu3 %vm257_vm1, %v2287_v59  ;;  %v7574_v59 = vpop.f32.mrf.mxu1 }
 0x1e6   : > { %v1094_v0 = vpop.f32.mrf.mxu2 }
 0x1e7   : > { %6020 = vmatmul.msk.f32.gmra.mxu0 %vm257_vm1, %v9297_v1  ;;  %v1372_v4 = vpop.f32.mrf.mxu3  ;;  %v1158_v55 = vadd.f32 %v1094_v0, %v9298_v39 }
 0x1e9   : > { %v1436_v58 = vadd.f32 %v1372_v4, %v1158_v55  ;;  %v9303_v4 = vld [vmem:[#allocation47_spill] sm:$0xff]  ;;  %v2012_v55 = vld [vmem:[#allocation2 + $0x50] sm:$0xff] }
 0x1eb   : > { %5951 = vmatmul.msk.f32.gmra.mxu2 %vm257_vm1, %v2010_v56  ;;  %v7569_v63 = vadd.f32 %v1650_v42, %v1436_v58  ;;  %v9302_v42 = vld [vmem:[#allocation52_spill] sm:$0xff]  ;;  %v2290_v56 = vld [vmem:[#allocation2 + $0x51] sm:$0xff] }
 0x1ec   : > { %v1659_v19 = vpop.f32.mrf.mxu0  ;;  %5985 = vmatmul.msk.f32.gmra.mxu3 %vm257_vm1, %v2288_v45 }
 0x1ee   : > { %v1097_v23 = vpop.f32.mrf.mxu2 }
 0x1ef   : > { %6021 = vmatmul.msk.f32.gmra.mxu0 %vm257_vm1, %v9299_v3  ;;  %v1375_v15 = vpop.f32.mrf.mxu3  ;;  %v1159_v5 = vadd.f32 %v1097_v23, %v9300_v46  ;;  %v7587_v23 = vpop.f32.mrf.mxu1 }
 0x1f1   : > { %v1437_v44 = vadd.f32 %v1375_v15, %v1159_v5  ;;  %v9306_v5 = vld [vmem:[#allocation49_spill] sm:$0xff] }
 0x1f3   : > { %5952 = vmatmul.msk.f32.gmra.mxu2 %vm257_vm1, %v2011_v10  ;;  %v7578_v6 = vadd.f32 %v1653_v12, %v1437_v44  ;;  %v9305_v12 = vld [vmem:[#allocation54_spill] sm:$0xff]  ;;  %v2291_v44 = vld [vmem:[#allocation2 + $0x61] sm:$0xff] }
 0x1f4   : > { %v1662_v33 = vpop.f32.mrf.mxu0  ;;  %5986 = vmatmul.msk.f32.gmra.mxu3 %vm257_vm1, %v2289_v27  ;;  %v2013_v27 = vld [vmem:[#allocation2 + $0x60] sm:$0xff] }
 0x1f5   : > { %9301 = vst [vmem:[#allocation35_spill] sm:$0xff] %v7578_v6 }
 0x1f6   : > { %v1100_v1 = vpop.f32.mrf.mxu2 }
 0x1f7   : > { %6022 = vmatmul.msk.f32.gmra.mxu0 %vm257_vm1, %v9302_v42  ;;  %v1378_v0 = vpop.f32.mrf.mxu3  ;;  %v1160_v39 = vadd.f32 %v1100_v1, %v9303_v4 }
 0x1f9   : > { %v1438_v45 = vadd.f32 %v1378_v0, %v1160_v39 }
 0x1fb   : > { %5953 = vmatmul.msk.f32.gmra.mxu2 %vm257_vm1, %v2012_v55  ;;  %v7585_v3 = vadd.f32 %v1656_v52, %v1438_v45  ;;  %v9308_v52 = vld [vmem:[#allocation56_spill] sm:$0xff]  ;;  %v7598_v55 = vpop.f32.mrf.mxu1 }
 0x1fc   : > { %v1665_v58 = vpop.f32.mrf.mxu0  ;;  %5987 = vmatmul.msk.f32.gmra.mxu3 %vm257_vm1, %v2290_v56  ;;  %v9309_v56 = vld [vmem:[#allocation51_spill] sm:$0xff] }
 0x1fd   : > { %9304 = vst [vmem:[#allocation39_spill] sm:$0xff] %v7585_v3 }
 0x1fe   : > { %v1103_v15 = vpop.f32.mrf.mxu2 }
 0x1ff   : > { %6023 = vmatmul.msk.f32.gmra.mxu0 %vm257_vm1, %v9305_v12  ;;  %v1381_v46 = vpop.f32.mrf.mxu3  ;;  %v1161_v10 = vadd.f32 %v1103_v15, %v9306_v5  ;;  %v2014_v12 = vld [vmem:[#allocation2 + $0x68] sm:$0xff] }
 0x200   : > { %v2292_v15 = vld [vmem:[#allocation2 + $0x69] sm:$0xff] }
 0x201   : > { %v1439_v42 = vadd.f32 %v1381_v46, %v1161_v10 }
 0x203   : > { %5954 = vmatmul.msk.f32.gmra.mxu2 %vm257_vm1, %v2013_v27  ;;  %v7594_v0 = vadd.f32 %v1659_v19, %v1439_v42  ;;  %v9311_v19 = vld [vmem:[#allocation58_spill] sm:$0xff]  ;;  %v9312_v42 = vld [vmem:[#allocation53_spill] sm:$0xff] }
 0x204   : > { %v1668_v1 = vpop.f32.mrf.mxu0  ;;  %5988 = vmatmul.msk.f32.gmra.mxu3 %vm257_vm1, %v2291_v44 }
 0x205   : > { %9307 = vst [vmem:[#allocation36_spill] sm:$0xff] %v7594_v0 }
 0x206   : > { %v1106_v4 = vpop.f32.mrf.mxu2 }
 0x207   : > { %6024 = vmatmul.msk.f32.gmra.mxu0 %vm257_vm1, %v9308_v52  ;;  %v1384_v39 = vpop.f32.mrf.mxu3  ;;  %v1162_v45 = vadd.f32 %v1106_v4, %v9309_v56  ;;  %v7608_v4 = vpop.f32.mrf.mxu1 }
 0x209   : > { %v1440_v5 = vadd.f32 %v1384_v39, %v1162_v45 }
 0x20b   : > { %5955 = vmatmul.msk.f32.gmra.mxu2 %vm257_vm1, %v2014_v12  ;;  %v7603_v10 = vadd.f32 %v1662_v33, %v1440_v5  ;;  %v9314_v33 = vld [vmem:[#allocation60_spill] sm:$0xff]  ;;  %v9315_v5 = vld [vmem:[#allocation55_spill] sm:$0xff] }
 0x20c   : > { %v1671_v46 = vpop.f32.mrf.mxu0  ;;  %5989 = vmatmul.msk.f32.gmra.mxu3 %vm257_vm1, %v2292_v15 }
 0x20d   : > { %9310 = vst [vmem:[#allocation41_spill] sm:$0xff] %v7603_v10 }
 0x20e   : > { %v1109_v27 = vpop.f32.mrf.mxu2 }
 0x20f   : > { %6025 = vmatmul.msk.f32.gmra.mxu0 %vm257_vm1, %v9311_v19  ;;  %v1387_v44 = vpop.f32.mrf.mxu3  ;;  %v1163_v52 = vadd.f32 %v1109_v27, %v9312_v42  ;;  %v2016_v27 = vld [vmem:[#allocation2 + $0x80] sm:$0xff]  ;;  %v7617_v3 = vpop.f32.mrf.mxu1 }
 0x210   : > { %v2294_v42 = vld [vmem:[#allocation2 + $0x81] sm:$0xff] }
 0x211   : > { %v1441_v56 = vadd.f32 %v1387_v44, %v1163_v52  ;;  %v9318_v52 = vld [vmem:[#allocation57_spill] sm:$0xff] }
 0x213   : > { %5956 = vmatmul.msk.f32.gmra.mxu2 %vm257_vm1, %v2015_v61  ;;  %v7612_v45 = vadd.f32 %v1665_v58, %v1441_v56  ;;  %v9317_v61 = vld [vmem:[#allocation62_spill] sm:$0xff] }
 0x214   : > { %v1674_v39 = vpop.f32.mrf.mxu0  ;;  %5990 = vmatmul.msk.f32.gmra.mxu3 %vm257_vm1, %v2293_v53 }
 0x215   : > { %9313 = vst [vmem:[#allocation38_spill] sm:$0xff] %v7612_v45 }
 0x216   : > { %v1112_v12 = vpop.f32.mrf.mxu2 }
 0x217   : > { %6026 = vmatmul.msk.f32.gmra.mxu0 %vm257_vm1, %v9314_v33  ;;  %v1390_v15 = vpop.f32.mrf.mxu3  ;;  %v1164_v19 = vadd.f32 %v1112_v12, %v9315_v5  ;;  %v2017_v33 = vld [vmem:[#allocation2 + $0x90] sm:$0xff] }
 0x218   : > { %v2295_v12 = vld [vmem:[#allocation2 + $0x91] sm:$0xff] }
 0x219   : > { %v1442_v10 = vadd.f32 %v1390_v15, %v1164_v19 }
 0x21b   : > { %5957 = vmatmul.msk.f32.gmra.mxu2 %vm257_vm1, %v2016_v27  ;;  %v7621_v53 = vadd.f32 %v1668_v1, %v1442_v10  ;;  %v7630_v27 = vpop.f32.mrf.mxu1  ;;  %v9320_v1 = vld [vmem:[#allocation64_spill] sm:$0xff] }
 0x21c   : > { %v1677_v0 = vpop.f32.mrf.mxu0  ;;  %5991 = vmatmul.msk.f32.gmra.mxu3 %vm257_vm1, %v2294_v42 }
 0x21d   : > { %9316 = vst [vmem:[#allocation43_spill] sm:$0xff] %v7621_v53 }
 0x21e   : > { %v1115_v58 = vpop.f32.mrf.mxu2 }
 0x21f   : > { %6027 = vmatmul.msk.f32.gmra.mxu0 %vm257_vm1, %v9317_v61  ;;  %v1393_v44 = vpop.f32.mrf.mxu3  ;;  %v1165_v56 = vadd.f32 %v1115_v58, %v9318_v52  ;;  %v9321_v61 = vld [vmem:[#allocation59_spill] sm:$0xff] }
 0x220   : > { %v2018_v58 = vld [vmem:[#allocation2 + $0x98] sm:$0xff] }
 0x221   : > { %v1443_v5 = vadd.f32 %v1393_v44, %v1165_v56  ;;  %v2296_v52 = vld [vmem:[#allocation2 + $0x99] sm:$0xff] }
 0x223   : > { %5958 = vmatmul.msk.f32.gmra.mxu2 %vm257_vm1, %v2017_v33  ;;  %v7628_v19 = vadd.f32 %v1671_v46, %v1443_v5  ;;  %v9323_v46 = vld [vmem:[#allocation66_spill] sm:$0xff]  ;;  %v7641_v5 = vpop.f32.mrf.mxu1 }
 0x224   : > { %v1680_v15 = vpop.f32.mrf.mxu0  ;;  %5992 = vmatmul.msk.f32.gmra.mxu3 %vm257_vm1, %v2295_v12 }
 0x225   : > { %9319 = vst [vmem:[#allocation40_spill] sm:$0xff] %v7628_v19 }
 0x226   : > { %v1118_v10 = vpop.f32.mrf.mxu2 }
 0x227   : > { %6028 = vmatmul.msk.f32.gmra.mxu0 %vm257_vm1, %v9320_v1  ;;  %v1396_v42 = vpop.f32.mrf.mxu3  ;;  %v1166_v53 = vadd.f32 %v1118_v10, %v9321_v61  ;;  %v9324_v1 = vld [vmem:[#allocation61_spill] sm:$0xff] }
 0x228   : > { %v2019_v10 = vld [vmem:[#allocation2 + $0xa8] sm:$0xff] }
 0x229   : > { %v1444_v45 = vadd.f32 %v1396_v42, %v1166_v53  ;;  %v2297_v61 = vld [vmem:[#allocation2 + $0xa9] sm:$0xff] }
 0x22b   : > { %5959 = vmatmul.msk.f32.gmra.mxu2 %vm257_vm1, %v2018_v58  ;;  %v7637_v56 = vadd.f32 %v1674_v39, %v1444_v45  ;;  %v9325_v58 = vld [vmem:[#allocation63_spill] sm:$0xff] }
 0x22c   : > { %v1683_v44 = vpop.f32.mrf.mxu0  ;;  %5993 = vmatmul.msk.f32.gmra.mxu3 %vm257_vm1, %v2296_v52 }
 0x22d   : > { %9322 = vst [vmem:[#allocation42_spill] sm:$0xff] %v7637_v56  ;;  %v2298_v56 = vld [vmem:[#allocation2 + $0xb1] sm:$0xff] }
 0x22e   : > { %v1121_v33 = vpop.f32.mrf.mxu2 }
 0x22f   : > { %6029 = vmatmul.msk.f32.gmra.mxu0 %vm257_vm1, %v9323_v46  ;;  %v1399_v12 = vpop.f32.mrf.mxu3  ;;  %v1167_v19 = vadd.f32 %v1121_v33, %v9324_v1  ;;  %v2020_v46 = vld [vmem:[#allocation2 + $0xb0] sm:$0xff]  ;;  %v7651_v33 = vpop.f32.mrf.mxu1 }
 0x231   : > { %v1445_v6 = vadd.f32 %v1399_v12, %v1167_v19 }
 0x233   : > { %5960 = vmatmul.msk.f32.gmra.mxu2 %vm257_vm1, %v2019_v10  ;;  %v7646_v42 = vadd.f32 %v1677_v0, %v1445_v6  ;;  %v9327_v10 = vld [vmem:[#allocation65_spill] sm:$0xff] }
 0x234   : > { %v1686_v53 = vpop.f32.mrf.mxu0  ;;  %5994 = vmatmul.msk.f32.gmra.mxu3 %vm257_vm1, %v2297_v61 }
 0x236   : > { %v1124_v39 = vpop.f32.mrf.mxu2 }
 0x237   : > { %6030 = vmatmul.msk.f32.gmra.mxu0 %vm257_vm1, %v7273_v62  ;;  %v1402_v45 = vpop.f32.mrf.mxu3  ;;  %v1168_v52 = vadd.f32 %v1124_v39, %v9325_v58  ;;  %v6083_v62 = vld [vmem:[%s9135_s3 + $0x4] sm:$0xf] }
 0x238   : > { %6084 = vmatpush.msk.msrb.mxu2 %vm469_vm0, %v6083_v62  ;;  %v2021_v39 = vld [vmem:[#allocation2 + $0xc0] sm:$0xff]  ;;  %v9329_v62 = vld [vmem:[#allocation67_spill] sm:$0xff] }
 0x239   : > { %v1446_v1 = vadd.f32 %v1402_v45, %v1168_v52  ;;  %v2299_v45 = vld [vmem:[#allocation2 + $0xc1] sm:$0xff] }
 0x23b   : > { %5961 = vmatmul.msk.f32.gmra.mxu2 %vm257_vm1, %v2020_v46  ;;  %v7655_v12 = vadd.f32 %v1680_v15, %v1446_v1  ;;  %v6117_v15 = vld [vmem:[%s9135_s3 + $0x8] sm:$0xf] }
 0x23c   : > { %v1689_v19 = vpop.f32.mrf.mxu0  ;;  %5995 = vmatmul.msk.f32.gmra.mxu3 %vm257_vm1, %v2298_v56 }
 0x23d   : > { %9326 = vst [vmem:[#allocation68_spill] sm:$0xff] %v7655_v12  ;;  %6118 = vmatpush.msk.msrb.mxu3 %vm469_vm0, %v6117_v15 }
 0x23e   : > { %v1127_v6 = vpop.f32.mrf.mxu2 }
 0x23f   : > { %6031 = vmatmul.msk.f32.gmra.mxu0 %vm257_vm1, %v7288_v41  ;;  %v1405_v0 = vpop.f32.mrf.mxu3  ;;  %v1169_v61 = vadd.f32 %v1127_v6, %v9327_v10  ;;  %v7668_v41 = vpop.f32.mrf.mxu1  ;;  %v2022_v10 = vld [vmem:[#allocation2 + $0xc8] sm:$0xff] }
 0x241   : > { %v1447_v58 = vadd.f32 %v1405_v0, %v1169_v61  ;;  %v3019_v0 = vld [vmem:[#allocation3] sm:$0xff] }
 0x242   : > { %v2300_v61 = vld [vmem:[#allocation2 + $0xc9] sm:$0xff]  ;;  %6051 = vmatmul.msk.f32.vlgmr.msra.gmra.mxu1 %vm257_vm1, %v3019_v0  ;;  %v2301_v0 = vld [vmem:[#allocation2 + $0xd9] sm:$0xff] }
 0x243   : > { %5962 = vmatmul.msk.f32.gmra.mxu2 %vm257_vm1, %v2021_v39  ;;  %v7672_v52 = vadd.f32 %v1683_v44, %v1447_v58  ;;  %v9331_v58 = vld [vmem:[#allocation69_spill] sm:$0xff] }
 0x244   : > { %v1692_v56 = vpop.f32.mrf.mxu0  ;;  %5996 = vmatmul.msk.f32.gmra.mxu3 %vm257_vm1, %v2299_v45 }
 0x245   : > { %9328 = vst [vmem:[#allocation70_spill] sm:$0xff] %v7672_v52  ;;  %v3020_v52 = vld [vmem:[#allocation3 + $0x8] sm:$0xff] }
 0x246   : > { %v1130_v46 = vpop.f32.mrf.mxu2 }
 0x247   : > { %6032 = vmatmul.msk.f32.gmra.mxu0 %vm257_vm1, %v7301_v31  ;;  %v1408_v1 = vpop.f32.mrf.mxu3  ;;  %v1170_v6 = vadd.f32 %v1130_v46, %v9329_v62  ;;  %v7682_v39 = vpop.f32.mrf.mxu1  ;;  %v2023_v62 = vld [vmem:[#allocation2 + $0xd8] sm:$0xff] }
 0x249   : > { %v1448_v15 = vadd.f32 %v1408_v1, %v1170_v6  ;;  %v6151_v1 = vld [vmem:[%s9135_s3 + $0xc] sm:$0xf] }
 0x24a   : > { %6052 = vmatmul.msk.f32.gmra.mxu1 %vm257_vm1, %v3020_v52  ;;  %6152 = vmatpush.msk.msrb.mxu0 %vm469_vm0, %v6151_v1  ;;  %v9333_v52 = vld [vmem:[#allocation71_spill] sm:$0xff] }
 0x24b   : > { %5963 = vmatmul.msk.f32.gmra.mxu2 %vm257_vm1, %v2022_v10  ;;  %v7680_v44 = vadd.f32 %v1686_v53, %v1448_v15  ;;  %v6185_v53 = vld [vmem:[%s9135_s3 + $0x10] sm:$0xf] }
 0x24c   : > { %v1695_v12 = vpop.f32.mrf.mxu0  ;;  %5997 = vmatmul.msk.f32.gmra.mxu3 %vm257_vm1, %v2300_v61  ;;  %6186 = vmatpush.msk.msrb.mxu1 %vm469_vm0, %v6185_v53 }
 0x24d   : > { %9330 = vst [vmem:[#allocation46_spill] sm:$0xff] %v7680_v44  ;;  %v2303_v44 = vld [vmem:[#allocation2 + $0xf1] sm:$0xff] }
 0x24e   : > { %v1133_v31 = vpop.f32.mrf.mxu2 }
 0x24f   : > { %6033 = vmatmul.msk.f32.gmra.mxu0 %vm257_vm1, %v7317_v9  ;;  %v1411_v45 = vpop.f32.mrf.mxu3  ;;  %v1171_v46 = vadd.f32 %v1133_v31, %v9331_v58  ;;  %v7702_v31 = vpop.f32.mrf.mxu1  ;;  %v2024_v58 = vld [vmem:[#allocation2 + $0xe0] sm:$0xff] }
 0x251   : > { %v1449_v6 = vadd.f32 %v1411_v45, %v1171_v46  ;;  %v2302_v46 = vld [vmem:[#allocation2 + $0xe1] sm:$0xff] }
 0x253   : > { %5964 = vmatmul.msk.f32.gmra.mxu2 %vm257_vm1, %v2023_v62  ;;  %v7698_v10 = vadd.f32 %v1689_v19, %v1449_v6 }
 0x254   : > { %v2715_v9 = vpop.f32.mrf.mxu0  ;;  %5998 = vmatmul.msk.f32.gmra.mxu3 %vm257_vm1, %v2301_v0  ;;  %v9335_v0 = vld [vmem:[#allocation72_spill] sm:$0xff] }
 0x255   : > { %9332 = vst [vmem:[#allocation48_spill] sm:$0xff] %v7698_v10  ;;  %v2025_v10 = vld [vmem:[#allocation2 + $0xf0] sm:$0xff] }
 0x256   : > { %v1136_v61 = vpop.f32.mrf.mxu2 }
 0x257   : > { %6034 = vmatmul.msk.f32.gmra.mxu0 %vm257_vm1, %v7332_v51  ;;  %v1414_v15 = vpop.f32.mrf.mxu3  ;;  %v1172_v45 = vadd.f32 %v1136_v61, %v9333_v52  ;;  %v7712_v61 = vpop.f32.mrf.mxu1 }
 0x259   : > { %v1450_v1 = vadd.f32 %v1414_v15, %v1172_v45 }
 0x25b   : > { %5965 = vmatmul.msk.f32.gmra.mxu2 %vm257_vm1, %v2024_v58  ;;  %v7707_v62 = vadd.f32 %v1692_v56, %v1450_v1  ;;  %v2304_v1 = vld [vmem:[#allocation2 + $0xf9] sm:$0xff] }
 0x25c   : > { %v2718_v53 = vpop.f32.mrf.mxu0  ;;  %5999 = vmatmul.msk.f32.gmra.mxu3 %vm257_vm1, %v2302_v46  ;;  %v2026_v46 = vld [vmem:[#allocation2 + $0xf8] sm:$0xff] }
 0x25d   : > { %9334 = vst [vmem:[#allocation44_spill] sm:$0xff] %v7707_v62 }
 0x25e   : > { %v1139_v51 = vpop.f32.mrf.mxu2 }
 0x25f   : > { %6035 = vmatmul.msk.f32.gmra.mxu0 %vm257_vm1, %v7347_v7  ;;  %v1417_v19 = vpop.f32.mrf.mxu3  ;;  %v1173_v6 = vadd.f32 %v1139_v51, %v9335_v0  ;;  %v7721_v62 = vpop.f32.mrf.mxu1 }
 0x261   : > { %v1451_v52 = vadd.f32 %v1417_v19, %v1173_v6  ;;  %v2027_v6 = vld [vmem:[#allocation2 + $0x108] sm:$0xff] }
 0x263   : > { %5966 = vmatmul.msk.f32.gmra.mxu2 %vm257_vm1, %v2025_v10  ;;  %v7716_v45 = vadd.f32 %v1695_v12, %v1451_v52  ;;  %v2305_v52 = vld [vmem:[#allocation2 + $0x109] sm:$0xff] }
 0x264   : > { %v2721_v15 = vpop.f32.mrf.mxu0  ;;  %6000 = vmatmul.msk.f32.gmra.mxu3 %vm257_vm1, %v2303_v44 }
 0x266   : > { %v2159_v7 = vpop.f32.mrf.mxu2 }
 0x267   : > { %6036 = vmatmul.msk.f32.gmra.mxu0 %vm257_vm1, %v7362_v18  ;;  %v2437_v56 = vpop.f32.mrf.mxu3  ;;  %v2255_v58 = vadd.f32 %v2159_v7, %v7328_v43 }
 0x269   : > { %v2533_v51 = vadd.f32 %v2437_v56, %v2255_v58  ;;  %v7731_v58 = vpop.f32.mrf.mxu1 }
 0x26b   : > { %v2811_v19 = vadd.f32 %v2715_v9, %v2533_v51  ;;  %5967 = vmatmul.msk.f32.gmra.mxu2 %vm257_vm1, %v2026_v46 }
 0x26c   : > { %v2724_v0 = vpop.f32.mrf.mxu0  ;;  %6001 = vmatmul.msk.f32.gmra.mxu3 %vm257_vm1, %v2304_v1 }
 0x26d   : > { %vm2886_vm4 = vcmp.ge.f32.partialorder %v2811_v19, 0.0  ;;  %v2918_v12 = vmul.f32 0.2, %v2811_v19 }
 0x26e   : > { %v2162_v18 = vpop.f32.mrf.mxu2 }
 0x26f   : > { %6037 = vmatmul.msk.f32.gmra.mxu0 %vm257_vm1, %v7377_v34  ;;  %v2440_v44 = vpop.f32.mrf.mxu3  ;;  %v2950_v10 = vsel %vm2886_vm4, %v2811_v19, %v2918_v12  ;;  %v2256_v43 = vadd.f32 %v2162_v18, %v7343_v14  ;;  %v2306_v12 = vld [vmem:[#allocation2 + $0x111] sm:$0xff] }
 0x270   : > { %2983 = vst.msk [vmem:[#allocation3 + $0x19] sm:$0xff] %vm257_vm1, %v2950_v10 }
 0x271   : > { %v2534_v7 = vadd.f32 %v2440_v44, %v2256_v43 }
 0x273   : > { %v2812_v56 = vadd.f32 %v2718_v53, %v2534_v7  ;;  %5968 = vmatmul.msk.f32.gmra.mxu2 %vm257_vm1, %v2027_v6  ;;  %v2028_v53 = vld [vmem:[#allocation2 + $0x110] sm:$0xff]  ;;  %v7745_v6 = vpop.f32.mrf.mxu1 }
 0x274   : > { %v2727_v9 = vpop.f32.mrf.mxu0  ;;  %6002 = vmatmul.msk.f32.gmra.mxu3 %vm257_vm1, %v2305_v52 }
 0x275   : > { %vm2887_vm5 = vcmp.ge.f32.partialorder %v2812_v56, 0.0  ;;  %v2919_v34 = vmul.f32 0.2, %v2812_v56 }
 0x276   : > { %v2165_v46 = vpop.f32.mrf.mxu2 }
 0x277   : > { %6038 = vmatmul.msk.f32.gmra.mxu0 %vm257_vm1, %v7392_v57  ;;  %v2443_v14 = vpop.f32.mrf.mxu3  ;;  %v2951_v1 = vsel %vm2887_vm5, %v2812_v56, %v2919_v34  ;;  %v2257_v51 = vadd.f32 %v2165_v46, %v7358_v37  ;;  %v7736_v19 = vld [vmem:[#allocation3 + $0x18] sm:$0xff] }
 0x278   : > { %2984 = vst.msk [vmem:[#allocation3 + $0x21] sm:$0xff] %vm257_vm1, %v2951_v1  ;;  %6053 = vmatmul.msk.f32.gmra.mxu1 %vm257_vm1, %v7736_v19  ;;  %v2307_v34 = vld [vmem:[#allocation2 + $0x121] sm:$0xff] }
 0x279   : > { %v2535_v18 = vadd.f32 %v2443_v14, %v2257_v51 }
 0x27b   : > { %v2813_v10 = vadd.f32 %v2721_v15, %v2535_v18  ;;  %5969 = vmatmul.msk.f32.gmra.mxu2 %vm257_vm1, %v2028_v53  ;;  %v2029_v15 = vld [vmem:[#allocation2 + $0x120] sm:$0xff] }
 0x27c   : > { %v2730_v44 = vpop.f32.mrf.mxu0  ;;  %6003 = vmatmul.msk.f32.gmra.mxu3 %vm257_vm1, %v2306_v12 }
 0x27d   : > { %vm2888_vm6 = vcmp.ge.f32.partialorder %v2813_v10, 0.0  ;;  %v2920_v57 = vmul.f32 0.2, %v2813_v10 }
 0x27e   : > { %v2168_v37 = vpop.f32.mrf.mxu2 }
 0x27f   : > { %6039 = vmatmul.msk.f32.gmra.mxu0 %vm257_vm1, %v7407_v36  ;;  %v2446_v43 = vpop.f32.mrf.mxu3  ;;  %v2952_v52 = vsel %vm2888_vm6, %v2813_v10, %v2920_v57  ;;  %v2258_v7 = vadd.f32 %v2168_v37, %v7373_v49  ;;  %v7748_v56 = vld [vmem:[#allocation3 + $0x20] sm:$0xff]  ;;  %v7763_v57 = vpop.f32.mrf.mxu1 }
 0x280   : > { %2985 = vst.msk [vmem:[#allocation3 + $0x31] sm:$0xff] %vm257_vm1, %v2952_v52  ;;  %6054 = vmatmul.msk.f32.gmra.mxu1 %vm257_vm1, %v7748_v56  ;;  %v2308_v10 = vld [vmem:[#allocation2 + $0x129] sm:$0xff] }
 0x281   : > { %v2536_v46 = vadd.f32 %v2446_v43, %v2258_v7 }
 0x283   : > { %v2814_v1 = vadd.f32 %v2724_v0, %v2536_v46  ;;  %5970 = vmatmul.msk.f32.gmra.mxu2 %vm257_vm1, %v2029_v15  ;;  %v2030_v0 = vld [vmem:[#allocation2 + $0x128] sm:$0xff] }
 0x284   : > { %v2733_v14 = vpop.f32.mrf.mxu0  ;;  %6004 = vmatmul.msk.f32.gmra.mxu3 %vm257_vm1, %v2307_v34 }
 0x285   : > { %vm2889_vm7 = vcmp.ge.f32.partialorder %v2814_v1, 0.0  ;;  %v2921_v36 = vmul.f32 0.2, %v2814_v1 }
 0x286   : > { %v2171_v49 = vpop.f32.mrf.mxu2 }
 0x287   : > { %6040 = vmatmul.msk.f32.gmra.mxu0 %vm257_vm1, %v7422_v29  ;;  %v2449_v51 = vpop.f32.mrf.mxu3  ;;  %v2953_v53 = vsel %vm2889_vm7, %v2814_v1, %v2921_v36  ;;  %v2259_v12 = vadd.f32 %v2171_v49, %v7388_v30  ;;  %v7758_v18 = vld [vmem:[#allocation3 + $0x30] sm:$0xff] }
 0x288   : > { %2986 = vst.msk [vmem:[#allocation3 + $0x39] sm:$0xff] %vm257_vm1, %v2953_v53  ;;  %6055 = vmatmul.msk.f32.gmra.mxu1 %vm257_vm1, %v7758_v18  ;;  %v2309_v1 = vld [vmem:[#allocation2 + $0x139] sm:$0xff] }
 0x289   : > { %v2537_v37 = vadd.f32 %v2449_v51, %v2259_v12  ;;  %v7775_v51 = vpop.f32.mrf.mxu1 }
 0x28b   : > { %v2815_v52 = vadd.f32 %v2727_v9, %v2537_v37  ;;  %5971 = vmatmul.msk.f32.gmra.mxu2 %vm257_vm1, %v2030_v0  ;;  %v2031_v9 = vld [vmem:[#allocation2 + $0x138] sm:$0xff] }
 0x28c   : > { %v2736_v43 = vpop.f32.mrf.mxu0  ;;  %6005 = vmatmul.msk.f32.gmra.mxu3 %vm257_vm1, %v2308_v10 }
 0x28d   : > { %vm2890_vm8 = vcmp.ge.f32.partialorder %v2815_v52, 0.0  ;;  %v2922_v30 = vmul.f32 0.2, %v2815_v52 }
 0x28e   : > { %v2174_v29 = vpop.f32.mrf.mxu2 }
 0x28f   : > { %6041 = vmatmul.msk.f32.gmra.mxu0 %vm257_vm1, %v7437_v28  ;;  %v2452_v7 = vpop.f32.mrf.mxu3  ;;  %v2954_v15 = vsel %vm2890_vm8, %v2815_v52, %v2922_v30  ;;  %v2260_v34 = vadd.f32 %v2174_v29, %v7403_v22  ;;  %v7770_v46 = vld [vmem:[#allocation3 + $0x38] sm:$0xff] }
 0x290   : > { %2987 = vst.msk [vmem:[#allocation3 + $0x49] sm:$0xff] %vm257_vm1, %v2954_v15  ;;  %6056 = vmatmul.msk.f32.gmra.mxu1 %vm257_vm1, %v7770_v46  ;;  %v2310_v52 = vld [vmem:[#allocation2 + $0x141] sm:$0xff] }
 0x291   : > { %v2538_v36 = vadd.f32 %v2452_v7, %v2260_v34 }
 0x293   : > { %v2816_v53 = vadd.f32 %v2730_v44, %v2538_v36  ;;  %5972 = vmatmul.msk.f32.gmra.mxu2 %vm257_vm1, %v2031_v9  ;;  %v2032_v44 = vld [vmem:[#allocation2 + $0x140] sm:$0xff] }
 0x294   : > { %v2739_v49 = vpop.f32.mrf.mxu0  ;;  %6006 = vmatmul.msk.f32.gmra.mxu3 %vm257_vm1, %v2309_v1 }
 0x295   : > { %vm2891_vm9 = vcmp.ge.f32.partialorder %v2816_v53, 0.0  ;;  %v2923_v22 = vmul.f32 0.2, %v2816_v53 }
 0x296   : > { %v2177_v28 = vpop.f32.mrf.mxu2 }
 0x297   : > { %6042 = vmatmul.msk.f32.gmra.mxu0 %vm257_vm1, %v7457_v48  ;;  %v2455_v12 = vpop.f32.mrf.mxu3  ;;  %v2955_v0 = vsel %vm2891_vm9, %v2816_v53, %v2923_v22  ;;  %v2261_v10 = vadd.f32 %v2177_v28, %v7418_v21  ;;  %v7782_v37 = vld [vmem:[#allocation3 + $0x48] sm:$0xff]  ;;  %v7789_v48 = vpop.f32.mrf.mxu1 }
 0x298   : > { %2988 = vst.msk [vmem:[#allocation3 + $0x51] sm:$0xff] %vm257_vm1, %v2955_v0  ;;  %6057 = vmatmul.msk.f32.gmra.mxu1 %vm257_vm1, %v7782_v37  ;;  %v2311_v53 = vld [vmem:[#allocation2 + $0x151] sm:$0xff] }
 0x299   : > { %v2539_v30 = vadd.f32 %v2455_v12, %v2261_v10 }
 0x29b   : > { %v2817_v7 = vadd.f32 %v2733_v14, %v2539_v30  ;;  %5973 = vmatmul.msk.f32.gmra.mxu2 %vm257_vm1, %v2032_v44  ;;  %v2033_v14 = vld [vmem:[#allocation2 + $0x150] sm:$0xff] }
 0x29c   : > { %v2742_v29 = vpop.f32.mrf.mxu0  ;;  %6007 = vmatmul.msk.f32.gmra.mxu3 %vm257_vm1, %v2310_v52 }
 0x29d   : > { %vm2892_vm10 = vcmp.ge.f32.partialorder %v2817_v7, 0.0  ;;  %v2924_v21 = vmul.f32 0.2, %v2817_v7 }
 0x29e   : > { %v2180_v15 = vpop.f32.mrf.mxu2 }
 0x29f   : > { %6043 = vmatmul.msk.f32.gmra.mxu0 %vm257_vm1, %v7477_v8  ;;  %v2458_v34 = vpop.f32.mrf.mxu3  ;;  %v2956_v9 = vsel %vm2892_vm10, %v2817_v7, %v2924_v21  ;;  %v2262_v1 = vadd.f32 %v2180_v15, %v7433_v32  ;;  %v7794_v36 = vld [vmem:[#allocation3 + $0x50] sm:$0xff]  ;;  %v1984_v8 = vadd.f32 %v7574_v59, %v7452_v38  ;;  %v7805_v44 = vpop.f32.mrf.mxu1 }
 0x2a0   : > { %2989 = vst.msk [vmem:[#allocation3 + $0x61] sm:$0xff] %vm257_vm1, %v2956_v9  ;;  %6058 = vmatmul.msk.f32.gmra.mxu1 %vm257_vm1, %v7794_v36  ;;  %v2312_v38 = vld [vmem:[#allocation2 + $0x159] sm:$0xff] }
 0x2a1   : > { %v2540_v22 = vadd.f32 %v2458_v34, %v2262_v1 }
 0x2a3   : > { %v2818_v12 = vadd.f32 %v2736_v43, %v2540_v22  ;;  %5974 = vmatmul.msk.f32.gmra.mxu2 %vm257_vm1, %v2033_v14  ;;  %v2034_v43 = vld [vmem:[#allocation2 + $0x158] sm:$0xff] }
 0x2a4   : > { %v2745_v28 = vpop.f32.mrf.mxu0  ;;  %6008 = vmatmul.msk.f32.gmra.mxu3 %vm257_vm1, %v2311_v53 }
 0x2a5   : > { %vm2893_vm11 = vcmp.ge.f32.partialorder %v2818_v12, 0.0  ;;  %v2925_v32 = vmul.f32 0.2, %v2818_v12 }
 0x2a6   : > { %v2183_v0 = vpop.f32.mrf.mxu2 }
 0x2a7   : > { %6044 = vmatmul.msk.f32.gmra.mxu0 %vm257_vm1, %v7492_v11  ;;  %v2461_v10 = vpop.f32.mrf.mxu3  ;;  %v2957_v52 = vsel %vm2893_vm11, %v2818_v12, %v2925_v32  ;;  %v2263_v30 = vadd.f32 %v2183_v0, %v1984_v8  ;;  %v7807_v7 = vld [vmem:[#allocation3 + $0x60] sm:$0xff]  ;;  %v1985_v11 = vadd.f32 %v7587_v23, %v7472_v24  ;;  %v7823_v8 = vpop.f32.mrf.mxu1 }
 0x2a8   : > { %2990 = vst.msk [vmem:[#allocation3 + $0x69] sm:$0xff] %vm257_vm1, %v2957_v52  ;;  %6059 = vmatmul.msk.f32.gmra.mxu1 %vm257_vm1, %v7807_v7  ;;  %v2313_v12 = vld [vmem:[#allocation2 + $0x169] sm:$0xff] }
 0x2a9   : > { %v2541_v59 = vadd.f32 %v2461_v10, %v2263_v30 }
 0x2ab   : > { %v2819_v15 = vadd.f32 %v2739_v49, %v2541_v59  ;;  %5975 = vmatmul.msk.f32.gmra.mxu2 %vm257_vm1, %v2034_v43  ;;  %v2035_v49 = vld [vmem:[#allocation2 + $0x168] sm:$0xff]  ;;  %v2314_v59 = vld [vmem:[#allocation2 + $0x171] sm:$0xff] }
 0x2ac   : > { %v2748_v21 = vpop.f32.mrf.mxu0  ;;  %6009 = vmatmul.msk.f32.gmra.mxu3 %vm257_vm1, %v2312_v38 }
 0x2ad   : > { %vm2894_vm12 = vcmp.ge.f32.partialorder %v2819_v15, 0.0  ;;  %v2926_v34 = vmul.f32 0.2, %v2819_v15 }
 0x2ae   : > { %v2186_v9 = vpop.f32.mrf.mxu2 }
 0x2af   : > { %6045 = vmatmul.msk.f32.gmra.mxu0 %vm257_vm1, %v7509_v2  ;;  %v2464_v1 = vpop.f32.mrf.mxu3  ;;  %v2958_v14 = vsel %vm2894_vm12, %v2819_v15, %v2926_v34  ;;  %v2264_v53 = vadd.f32 %v2186_v9, %v1985_v11  ;;  %v7818_v22 = vld [vmem:[#allocation3 + $0x68] sm:$0xff]  ;;  %v1986_v2 = vadd.f32 %v7598_v55, %v7487_v25  ;;  %v7836_v55 = vpop.f32.mrf.mxu1 }
 0x2b0   : > { %2991 = vst.msk [vmem:[#allocation3 + $0x79] sm:$0xff] %vm257_vm1, %v2958_v14  ;;  %6060 = vmatmul.msk.f32.gmra.mxu1 %vm257_vm1, %v7818_v22 }
 0x2b1   : > { %v2542_v24 = vadd.f32 %v2464_v1, %v2264_v53 }
 0x2b3   : > { %v2820_v32 = vadd.f32 %v2742_v29, %v2542_v24  ;;  %5976 = vmatmul.msk.f32.gmra.mxu2 %vm257_vm1, %v2035_v49  ;;  %v2036_v29 = vld [vmem:[#allocation2 + $0x170] sm:$0xff]  ;;  %v2595_v24 = vld [vmem:[#allocation2 + $0x19a] sm:$0xff] }
 0x2b4   : > { %v2751_v23 = vpop.f32.mrf.mxu0  ;;  %6010 = vmatmul.msk.f32.gmra.mxu3 %vm257_vm1, %v2313_v12 }
 0x2b5   : > { %vm2895_vm13 = vcmp.ge.f32.partialorder %v2820_v32, 0.0  ;;  %v2927_v0 = vmul.f32 0.2, %v2820_v32 }
 0x2b6   : > { %v2189_v10 = vpop.f32.mrf.mxu2 }
 0x2b7   : > { %6046 = vmatmul.msk.f32.gmra.mxu0 %vm257_vm1, %v7526_v54  ;;  %v2467_v52 = vpop.f32.mrf.mxu3  ;;  %v2959_v30 = vsel %vm2895_vm13, %v2820_v32, %v2927_v0  ;;  %v2265_v43 = vadd.f32 %v2189_v10, %v1986_v2  ;;  %v7831_v38 = vld [vmem:[#allocation3 + $0x78] sm:$0xff]  ;;  %v1987_v54 = vadd.f32 %v7608_v4, %v7504_v26  ;;  %v7855_v4 = vpop.f32.mrf.mxu1 }
 0x2b8   : > { %2992 = vst.msk [vmem:[#allocation3 + $0x81] sm:$0xff] %vm257_vm1, %v2959_v30  ;;  %6061 = vmatmul.msk.f32.gmra.mxu1 %vm257_vm1, %v7831_v38  ;;  %v1989_v30 = vadd.f32 %v7630_v27, %v7538_v16 }
 0x2b9   : > { %v2543_v15 = vadd.f32 %v2467_v52, %v2265_v43 }
 0x2bb   : > { %v2821_v11 = vadd.f32 %v2745_v28, %v2543_v15  ;;  %5977 = vmatmul.msk.f32.gmra.mxu2 %vm257_vm1, %v2036_v29 }
 0x2bc   : > { %v2754_v25 = vpop.f32.mrf.mxu0  ;;  %6011 = vmatmul.msk.f32.gmra.mxu3 %vm257_vm1, %v2314_v59 }
 0x2bd   : > { %vm2896_vm14 = vcmp.ge.f32.partialorder %v2821_v11, 0.0  ;;  %v2928_v34 = vmul.f32 0.2, %v2821_v11 }
 0x2be   : > { %v2192_v9 = vpop.f32.mrf.mxu2 }
 0x2bf   : > { %6047 = vmatmul.msk.f32.gmra.mxu0 %vm257_vm1, %v7543_v60  ;;  %v2470_v1 = vpop.f32.mrf.mxu3  ;;  %v2960_v14 = vsel %vm2896_vm14, %v2821_v11, %v2928_v34  ;;  %v2266_v53 = vadd.f32 %v2192_v9, %v1987_v54  ;;  %v7844_v49 = vld [vmem:[#allocation3 + $0x80] sm:$0xff]  ;;  %v1988_v60 = vadd.f32 %v7617_v3, %v7521_v47  ;;  %v2596_v47 = vld [vmem:[#allocation2 + $0x1a2] sm:$0xff]  ;;  %v7870_v15 = vpop.f32.mrf.mxu1  ;;  %v1990_v9 = vadd.f32 %v7641_v5, %v7555_v17 }
 0x2c0   : > { %2993 = vst.msk [vmem:[#allocation3 + $0x91] sm:$0xff] %vm257_vm1, %v2960_v14  ;;  %6062 = vmatmul.msk.f32.gmra.mxu1 %vm257_vm1, %v7844_v49 }
 0x2c1   : > { %v2544_v28 = vadd.f32 %v2470_v1, %v2266_v53 }
 0x2c3   : > { %v2822_v26 = vadd.f32 %v2748_v21, %v2544_v28  ;;  %5978 = vmatmul.msk.f32.gmra.mxu2 %vm257_vm1, %v7528_v20 }
 0x2c4   : > { %v2757_v12 = vpop.f32.mrf.mxu0  ;;  %6012 = vmatmul.msk.f32.gmra.mxu3 %vm257_vm1, %v7498_v50 }
 0x2c5   : > { %vm2897_vm15 = vcmp.ge.f32.partialorder %v2822_v26, 0.0  ;;  %v2929_v32 = vmul.f32 0.2, %v2822_v26 }
 0x2c6   : > { %v2195_v2 = vpop.f32.mrf.mxu2 }
 0x2c7   : > { %6048 = vmatmul.msk.f32.gmra.mxu0 %vm257_vm1, %v2595_v24  ;;  %v2473_v0 = vpop.f32.mrf.mxu3  ;;  %v2961_v10 = vsel %vm2897_vm15, %v2822_v26, %v2929_v32  ;;  %v2267_v52 = vadd.f32 %v2195_v2, %v1988_v60  ;;  %v7858_v21 = vld [vmem:[#allocation3 + $0x90] sm:$0xff]  ;;  %v7888_v32 = vpop.f32.mrf.mxu1 }
 0x2c8   : > { %2994 = vst.msk [vmem:[#allocation3 + $0x99] sm:$0xff] %vm257_vm1, %v2961_v10  ;;  %6063 = vmatmul.msk.f32.gmra.mxu1 %vm257_vm1, %v7858_v21  ;;  %v2318_v60 = vld [vmem:[#allocation2 + $0x1a1] sm:$0xff] }
 0x2c9   : > { %v2545_v50 = vadd.f32 %v2473_v0, %v2267_v52 }
 0x2cb   : > { %v2823_v3 = vadd.f32 %v2751_v23, %v2545_v50  ;;  %5979 = vmatmul.msk.f32.gmra.mxu2 %vm257_vm1, %v7545_v13  ;;  %v2317_v13 = vld [vmem:[#allocation2 + $0x199] sm:$0xff] }
 0x2cc   : > { %v2760_v20 = vpop.f32.mrf.mxu0  ;;  %6013 = vmatmul.msk.f32.gmra.mxu3 %vm257_vm1, %v7515_v35  ;;  %v2039_v35 = vld [vmem:[#allocation2 + $0x198] sm:$0xff] }
 0x2cd   : > { %vm2898_vm2 = vcmp.ge.f32.partialorder %v2823_v3, 0.0  ;;  %v2930_v43 = vmul.f32 0.2, %v2823_v3 }
 0x2ce   : > { %v2198_v29 = vpop.f32.mrf.mxu2 }
 0x2cf   : > { %6049 = vmatmul.msk.f32.gmra.mxu0 %vm257_vm1, %v2596_v47  ;;  %v2476_v59 = vpop.f32.mrf.mxu3  ;;  %v2962_v11 = vsel %vm2898_vm2, %v2823_v3, %v2930_v43  ;;  %v2268_v54 = vadd.f32 %v2198_v29, %v1989_v30  ;;  %v7872_v23 = vld [vmem:[#allocation3 + $0x98] sm:$0xff]  ;;  %v3574_v30 = vld [vmem:[#allocation3 + $0x2] sm:$0xff] }
 0x2d0   : > { %2995 = vst.msk [vmem:[#allocation3 + $0xa9] sm:$0xff] %vm257_vm1, %v2962_v11  ;;  %6064 = vmatmul.msk.f32.gmra.mxu1 %vm257_vm1, %v7872_v23 }
 0x2d1   : > { %v2546_v16 = vadd.f32 %v2476_v59, %v2268_v54 }
 0x2d3   : > { %v2824_v34 = vadd.f32 %v2754_v25, %v2546_v16  ;;  %5980 = vmatmul.msk.f32.gmra.mxu2 %vm257_vm1, %v2039_v35  ;;  %v2040_v25 = vld [vmem:[#allocation2 + $0x1a0] sm:$0xff] }
 0x2d4   : > { %v2763_v27 = vpop.f32.mrf.mxu0  ;;  %6014 = vmatmul.msk.f32.gmra.mxu3 %vm257_vm1, %v2317_v13 }
 0x2d5   : > { %vm2899_vm3 = vcmp.ge.f32.partialorder %v2824_v34, 0.0  ;;  %v2931_v1 = vmul.f32 0.2, %v2824_v34 }
 0x2d6   : > { %v2201_v14 = vpop.f32.mrf.mxu2 }
 0x2d7   : > { %6153 = vmatmul.msk.f32.vlgmr.msrb.gmra.mxu0 %vm257_vm1, %v7736_v19  ;;  %v2479_v53 = vpop.f32.mrf.mxu3  ;;  %v2963_v28 = vsel %vm2899_vm3, %v2824_v34, %v2931_v1  ;;  %v2269_v24 = vadd.f32 %v2201_v14, %v1990_v9  ;;  %v7883_v26 = vld [vmem:[#allocation3 + $0xa8] sm:$0xff]  ;;  %v1991_v19 = vadd.f32 %v7651_v33, %v7562_v40  ;;  %v7901_v40 = vpop.f32.mrf.mxu1 }
 0x2d8   : > { %2996 = vst.msk [vmem:[#allocation3 + $0xb1] sm:$0xff] %vm257_vm1, %v2963_v28  ;;  %6065 = vmatmul.msk.f32.gmra.mxu1 %vm257_vm1, %v7883_v26  ;;  %v3575_v34 = vld [vmem:[#allocation3 + $0xa] sm:$0xff] }
 0x2d9   : > { %v2547_v17 = vadd.f32 %v2479_v53, %v2269_v24  ;;  %v9336_v1 = vld [vmem:[#allocation35_spill] sm:$0xff] }
 0x2da   : > { %v1993_v14 = vadd.f32 %v7682_v39, %v9336_v1  ;;  %v3576_v39 = vld [vmem:[#allocation3 + $0x1a] sm:$0xff] }
 0x2db   : > { %v2825_v2 = vadd.f32 %v2757_v12, %v2547_v17  ;;  %5981 = vmatmul.msk.f32.gmra.mxu2 %vm257_vm1, %v2040_v25  ;;  %v3296_v12 = vld [vmem:[#allocation3 + $0x1] sm:$0xff] }
 0x2dc   : > { %v2766_v5 = vpop.f32.mrf.mxu0  ;;  %6015 = vmatmul.msk.f32.gmra.mxu3 %vm257_vm1, %v2318_v60 }
 0x2dd   : > { %vm2900_vm4 = vcmp.ge.f32.partialorder %v2825_v2, 0.0  ;;  %v2932_v0 = vmul.f32 0.2, %v2825_v2 }
 0x2de   : > { %v2204_v10 = vpop.f32.mrf.mxu2 }
 0x2df   : > { %6154 = vmatmul.msk.f32.gmra.mxu0 %vm257_vm1, %v7748_v56  ;;  %v2482_v52 = vpop.f32.mrf.mxu3  ;;  %v2964_v50 = vsel %vm2900_vm4, %v2825_v2, %v2932_v0  ;;  %v2270_v47 = vadd.f32 %v2204_v10, %v1991_v19  ;;  %v7896_v3 = vld [vmem:[#allocation3 + $0xb0] sm:$0xff]  ;;  %v1992_v56 = vadd.f32 %v7668_v41, %v7569_v63  ;;  %v7927_v2 = vld [vmem:[#allocation3 + $0x19] sm:$0xff] }
 0x2e0   : > { %2997 = vst.msk [vmem:[#allocation3 + $0xc1] sm:$0xff] %vm257_vm1, %v2964_v50  ;;  %6066 = vmatmul.msk.f32.gmra.mxu1 %vm257_vm1, %v7896_v3 }
 0x2e1   : > { %v2548_v43 = vadd.f32 %v2482_v52, %v2270_v47 }
 0x2e3   : > { %v2826_v29 = vadd.f32 %v2760_v20, %v2548_v43  ;;  %6085 = vmatmul.msk.f32.vlgmr.msrb.gmra.mxu2 %vm257_vm1, %v3296_v12  ;;  %v3297_v20 = vld [vmem:[#allocation3 + $0x9] sm:$0xff] }
 0x2e4   : > { %v2769_v33 = vpop.f32.mrf.mxu0  ;;  %6119 = vmatmul.msk.f32.vlgmr.msrb.gmra.mxu3 %vm257_vm1, %v3574_v30 }
 0x2e5   : > { %vm2901_vm5 = vcmp.ge.f32.partialorder %v2826_v29, 0.0  ;;  %v2933_v59 = vmul.f32 0.2, %v2826_v29 }
 0x2e6   : > { %v2207_v11 = vpop.f32.mrf.mxu2 }
 0x2e7   : > { %6155 = vmatmul.msk.f32.gmra.mxu0 %vm257_vm1, %v7758_v18  ;;  %v2485_v54 = vpop.f32.mrf.mxu3  ;;  %v2965_v35 = vsel %vm2901_vm5, %v2826_v29, %v2933_v59  ;;  %v2271_v13 = vadd.f32 %v2207_v11, %v1992_v56  ;;  %v7909_v16 = vld [vmem:[#allocation3 + $0xc0] sm:$0xff]  ;;  %v7916_v18 = vpop.f32.mrf.mxu1 }
 0x2e8   : > { %2998 = vst.msk [vmem:[#allocation3 + $0xc9] sm:$0xff] %vm257_vm1, %v2965_v35  ;;  %6067 = vmatmul.msk.f32.gmra.mxu1 %vm257_vm1, %v7909_v16  ;;  %v3577_v56 = vld [vmem:[#allocation3 + $0x22] sm:$0xff] }
 0x2e9   : > { %v2549_v9 = vadd.f32 %v2485_v54, %v2271_v13 }
 0x2eb   : > { %v2827_v41 = vadd.f32 %v2763_v27, %v2549_v9  ;;  %6086 = vmatmul.msk.f32.gmra.mxu2 %vm257_vm1, %v3297_v20 }
 0x2ec   : > { %v2772_v63 = vpop.f32.mrf.mxu0  ;;  %6120 = vmatmul.msk.f32.gmra.mxu3 %vm257_vm1, %v3575_v34 }
 0x2ed   : > { %vm2902_vm6 = vcmp.ge.f32.partialorder %v2827_v41, 0.0  ;;  %v2934_v53 = vmul.f32 0.2, %v2827_v41 }
 0x2ee   : > { %v2210_v28 = vpop.f32.mrf.mxu2 }
 0x2ef   : > { %6156 = vmatmul.msk.f32.gmra.mxu0 %vm257_vm1, %v7770_v46  ;;  %v2488_v24 = vpop.f32.mrf.mxu3  ;;  %v2966_v25 = vsel %vm2902_vm6, %v2827_v41, %v2934_v53  ;;  %v2272_v60 = vadd.f32 %v2210_v28, %v1993_v14  ;;  %v7922_v17 = vld [vmem:[#allocation3 + $0xc8] sm:$0xff]  ;;  %v3578_v14 = vld [vmem:[#allocation3 + $0x32] sm:$0xff] }
 0x2f0   : > { %2999 = vst.msk [vmem:[#allocation3 + $0xd9] sm:$0xff] %vm257_vm1, %v2966_v25  ;;  %6068 = vmatmul.msk.f32.gmra.mxu1 %vm257_vm1, %v7922_v17  ;;  %v9337_v46 = vld [vmem:[#allocation39_spill] sm:$0xff] }
 0x2f1   : > { %v2550_v27 = vadd.f32 %v2488_v24, %v2272_v60  ;;  %v1994_v10 = vadd.f32 %v7702_v31, %v9337_v46  ;;  %v7943_v31 = vld [vmem:[#allocation3 + $0x21] sm:$0xff] }
 0x2f3   : > { %v2828_v0 = vadd.f32 %v2766_v5, %v2550_v27  ;;  %6087 = vmatmul.msk.f32.gmra.mxu2 %vm257_vm1, %v7927_v2 }
 0x2f4   : > { %v2775_v19 = vpop.f32.mrf.mxu0  ;;  %6121 = vmatmul.msk.f32.gmra.mxu3 %vm257_vm1, %v3576_v39 }
 0x2f5   : > { %vm2903_vm7 = vcmp.ge.f32.partialorder %v2828_v0, 0.0  ;;  %v2935_v52 = vmul.f32 0.2, %v2828_v0  ;;  %v7934_v50 = vpop.f32.mrf.mxu1 }
 0x2f6   : > { %v2213_v47 = vpop.f32.mrf.mxu2 }
 0x2f7   : > { %6157 = vmatmul.msk.f32.gmra.mxu0 %vm257_vm1, %v7782_v37  ;;  %v2491_v12 = vpop.f32.mrf.mxu3  ;;  %v2967_v30 = vsel %vm2903_vm7, %v2828_v0, %v2935_v52  ;;  %v2273_v43 = vadd.f32 %v2213_v47, %v1994_v10  ;;  %v7938_v5 = vld [vmem:[#allocation3 + $0xd8] sm:$0xff]  ;;  %v9338_v37 = vld [vmem:[#allocation36_spill] sm:$0xff] }
 0x2f8   : > { %3000 = vst.msk [vmem:[#allocation3 + $0xe1] sm:$0xff] %vm257_vm1, %v2967_v30  ;;  %6069 = vmatmul.msk.f32.gmra.mxu1 %vm257_vm1, %v7938_v5  ;;  %v1995_v54 = vadd.f32 %v7712_v61, %v9338_v37  ;;  %v7959_v61 = vld [vmem:[#allocation3 + $0x31] sm:$0xff]  ;;  %v3579_v52 = vld [vmem:[#allocation3 + $0x3a] sm:$0xff] }
 0x2f9   : > { %v2551_v29 = vadd.f32 %v2491_v12, %v2273_v43 }
 0x2fb   : > { %v2829_v11 = vadd.f32 %v2769_v33, %v2551_v29  ;;  %6088 = vmatmul.msk.f32.gmra.mxu2 %vm257_vm1, %v7943_v31 }
 0x2fc   : > { %v2778_v59 = vpop.f32.mrf.mxu0  ;;  %6122 = vmatmul.msk.f32.gmra.mxu3 %vm257_vm1, %v3577_v56 }
 0x2fd   : > { %vm2904_vm8 = vcmp.ge.f32.partialorder %v2829_v11, 0.0  ;;  %v2936_v35 = vmul.f32 0.2, %v2829_v11  ;;  %v7950_v13 = vpop.f32.mrf.mxu1 }
 0x2fe   : > { %v2216_v20 = vpop.f32.mrf.mxu2 }
 0x2ff   : > { %6158 = vmatmul.msk.f32.gmra.mxu0 %vm257_vm1, %v7794_v36  ;;  %v2494_v34 = vpop.f32.mrf.mxu3  ;;  %v2968_v9 = vsel %vm2904_vm8, %v2829_v11, %v2936_v35  ;;  %v2274_v41 = vadd.f32 %v2216_v20, %v1995_v54  ;;  %v7954_v33 = vld [vmem:[#allocation3 + $0xe0] sm:$0xff]  ;;  %v9339_v36 = vld [vmem:[#allocation41_spill] sm:$0xff]  ;;  %v7993_v20 = vld [vmem:[#allocation3 + $0x4a] sm:$0xff] }
 0x300   : > { %3001 = vst.msk [vmem:[#allocation3 + $0xf1] sm:$0xff] %vm257_vm1, %v2968_v9  ;;  %6070 = vmatmul.msk.f32.gmra.mxu1 %vm257_vm1, %v7954_v33  ;;  %v1996_v24 = vadd.f32 %v7721_v62, %v9339_v36  ;;  %v7975_v62 = vld [vmem:[#allocation3 + $0x39] sm:$0xff] }
 0x301   : > { %v2552_v1 = vadd.f32 %v2494_v34, %v2274_v41 }
 0x303   : > { %v2830_v28 = vadd.f32 %v2772_v63, %v2552_v1  ;;  %6089 = vmatmul.msk.f32.gmra.mxu2 %vm257_vm1, %v7959_v61 }
 0x304   : > { %v2781_v53 = vpop.f32.mrf.mxu0  ;;  %6123 = vmatmul.msk.f32.gmra.mxu3 %vm257_vm1, %v3578_v14 }
 0x305   : > { %vm2905_vm9 = vcmp.ge.f32.partialorder %v2830_v28, 0.0  ;;  %v2937_v25 = vmul.f32 0.2, %v2830_v28  ;;  %v7966_v60 = vpop.f32.mrf.mxu1 }
 0x306   : > { %v2219_v27 = vpop.f32.mrf.mxu2 }
 0x307   : > { %6159 = vmatmul.msk.f32.gmra.mxu0 %vm257_vm1, %v7807_v7  ;;  %v2497_v39 = vpop.f32.mrf.mxu3  ;;  %v2969_v0 = vsel %vm2905_vm9, %v2830_v28, %v2937_v25  ;;  %v2275_v46 = vadd.f32 %v2219_v27, %v1996_v24  ;;  %v7970_v63 = vld [vmem:[#allocation3 + $0xf0] sm:$0xff]  ;;  %v9340_v7 = vld [vmem:[#allocation38_spill] sm:$0xff] }
 0x308   : > { %3002 = vst.msk [vmem:[#allocation3 + $0xf9] sm:$0xff] %vm257_vm1, %v2969_v0  ;;  %6071 = vmatmul.msk.f32.gmra.mxu1 %vm257_vm1, %v7970_v63  ;;  %v1997_v30 = vadd.f32 %v7731_v58, %v9340_v7  ;;  %v7991_v58 = vld [vmem:[#allocation3 + $0x49] sm:$0xff] }
 0x309   : > { %v2553_v10 = vadd.f32 %v2497_v39, %v2275_v46  ;;  %v8012_v39 = vld [vmem:[#allocation3 + $0x52] sm:$0xff] }
 0x30b   : > { %v2831_v12 = vadd.f32 %v2775_v19, %v2553_v10  ;;  %6090 = vmatmul.msk.f32.gmra.mxu2 %vm257_vm1, %v7975_v62 }
 0x30c   : > { %v2784_v47 = vpop.f32.mrf.mxu0  ;;  %6124 = vmatmul.msk.f32.gmra.mxu3 %vm257_vm1, %v3579_v52 }
 0x30d   : > { %vm2906_vm10 = vcmp.ge.f32.partialorder %v2831_v12, 0.0  ;;  %v2938_v43 = vmul.f32 0.2, %v2831_v12  ;;  %v7982_v29 = vpop.f32.mrf.mxu1 }
 0x30e   : > { %v2222_v56 = vpop.f32.mrf.mxu2 }
 0x30f   : > { %6160 = vmatmul.msk.f32.gmra.mxu0 %vm257_vm1, %v7818_v22  ;;  %v2500_v11 = vpop.f32.mrf.mxu3  ;;  %v2970_v37 = vsel %vm2906_vm10, %v2831_v12, %v2938_v43  ;;  %v2276_v54 = vadd.f32 %v2222_v56, %v1997_v30  ;;  %v7986_v19 = vld [vmem:[#allocation3 + $0xf8] sm:$0xff]  ;;  %v9341_v22 = vld [vmem:[#allocation43_spill] sm:$0xff] }
 0x310   : > { %3003 = vst.msk [vmem:[#allocation3 + $0x109] sm:$0xff] %vm257_vm1, %v2970_v37  ;;  %6072 = vmatmul.msk.f32.gmra.mxu1 %vm257_vm1, %v7986_v19  ;;  %v1998_v41 = vadd.f32 %v7745_v6, %v9341_v22  ;;  %v8010_v6 = vld [vmem:[#allocation3 + $0x51] sm:$0xff]  ;;  %v8031_v37 = vld [vmem:[#allocation3 + $0x62] sm:$0xff] }
 0x311   : > { %v2554_v35 = vadd.f32 %v2500_v11, %v2276_v54 }
 0x313   : > { %v2832_v9 = vadd.f32 %v2778_v59, %v2554_v35  ;;  %6091 = vmatmul.msk.f32.gmra.mxu2 %vm257_vm1, %v7991_v58 }
 0x314   : > { %v2787_v34 = vpop.f32.mrf.mxu0  ;;  %6125 = vmatmul.msk.f32.gmra.mxu3 %vm257_vm1, %v7993_v20 }
 0x315   : > { %vm2907_vm11 = vcmp.ge.f32.partialorder %v2832_v9, 0.0  ;;  %v2939_v1 = vmul.f32 0.2, %v2832_v9  ;;  %v8001_v14 = vpop.f32.mrf.mxu1 }
 0x316   : > { %v2225_v28 = vpop.f32.mrf.mxu2 }
 0x317   : > { %6161 = vmatmul.msk.f32.gmra.mxu0 %vm257_vm1, %v7831_v38  ;;  %v2503_v36 = vpop.f32.mrf.mxu3  ;;  %v2971_v24 = vsel %vm2907_vm11, %v2832_v9, %v2939_v1  ;;  %v2277_v59 = vadd.f32 %v2225_v28, %v1998_v41  ;;  %v8005_v25 = vld [vmem:[#allocation3 + $0x108] sm:$0xff]  ;;  %v9342_v38 = vld [vmem:[#allocation40_spill] sm:$0xff] }
 0x318   : > { %3004 = vst.msk [vmem:[#allocation3 + $0x111] sm:$0xff] %vm257_vm1, %v2971_v24  ;;  %6073 = vmatmul.msk.f32.gmra.mxu1 %vm257_vm1, %v8005_v25  ;;  %v1999_v10 = vadd.f32 %v7763_v57, %v9342_v38  ;;  %v8029_v57 = vld [vmem:[#allocation3 + $0x61] sm:$0xff] }
 0x319   : > { %v2555_v27 = vadd.f32 %v2503_v36, %v2277_v59 }
 0x31b   : > { %v2833_v46 = vadd.f32 %v2781_v53, %v2555_v27  ;;  %6092 = vmatmul.msk.f32.gmra.mxu2 %vm257_vm1, %v8010_v6  ;;  %v8050_v27 = vld [vmem:[#allocation3 + $0x6a] sm:$0xff] }
 0x31c   : > { %v2790_v0 = vpop.f32.mrf.mxu0  ;;  %6126 = vmatmul.msk.f32.gmra.mxu3 %vm257_vm1, %v8012_v39 }
 0x31d   : > { %vm2908_vm12 = vcmp.ge.f32.partialorder %v2833_v46, 0.0  ;;  %v2940_v52 = vmul.f32 0.2, %v2833_v46  ;;  %v8020_v12 = vpop.f32.mrf.mxu1 }
 0x31e   : > { %v2228_v7 = vpop.f32.mrf.mxu2 }
 0x31f   : > { %6162 = vmatmul.msk.f32.gmra.mxu0 %vm257_vm1, %v7844_v49  ;;  %v2506_v30 = vpop.f32.mrf.mxu3  ;;  %v2972_v43 = vsel %vm2908_vm12, %v2833_v46, %v2940_v52  ;;  %v2278_v53 = vadd.f32 %v2228_v7, %v1999_v10  ;;  %v8024_v56 = vld [vmem:[#allocation3 + $0x110] sm:$0xff]  ;;  %v9343_v49 = vld [vmem:[#allocation42_spill] sm:$0xff] }
 0x320   : > { %3005 = vst.msk [vmem:[#allocation3 + $0x121] sm:$0xff] %vm257_vm1, %v2972_v43  ;;  %6074 = vmatmul.msk.f32.gmra.mxu1 %vm257_vm1, %v8024_v56  ;;  %v2000_v9 = vadd.f32 %v7775_v51, %v9343_v49  ;;  %v8048_v51 = vld [vmem:[#allocation3 + $0x69] sm:$0xff] }
 0x321   : > { %v2556_v11 = vadd.f32 %v2506_v30, %v2278_v53 }
 0x323   : > { %v2834_v35 = vadd.f32 %v2784_v47, %v2556_v11  ;;  %6093 = vmatmul.msk.f32.gmra.mxu2 %vm257_vm1, %v8029_v57 }
 0x324   : > { %v2793_v54 = vpop.f32.mrf.mxu0  ;;  %6127 = vmatmul.msk.f32.gmra.mxu3 %vm257_vm1, %v8031_v37 }
 0x325   : > { %vm2909_vm13 = vcmp.ge.f32.partialorder %v2834_v35, 0.0  ;;  %v2941_v22 = vmul.f32 0.2, %v2834_v35  ;;  %v8039_v41 = vpop.f32.mrf.mxu1 }
 0x326   : > { %v2231_v1 = vpop.f32.mrf.mxu2 }
 0x327   : > { %6163 = vmatmul.msk.f32.gmra.mxu0 %vm257_vm1, %v7858_v21  ;;  %v2509_v28 = vpop.f32.mrf.mxu3  ;;  %v2973_v36 = vsel %vm2909_vm13, %v2834_v35, %v2941_v22  ;;  %v2279_v47 = vadd.f32 %v2231_v1, %v2000_v9  ;;  %v8043_v24 = vld [vmem:[#allocation3 + $0x120] sm:$0xff]  ;;  %v2001_v21 = vadd.f32 %v7789_v48, %v7646_v42 }
 0x328   : > { %3006 = vst.msk [vmem:[#allocation3 + $0x129] sm:$0xff] %vm257_vm1, %v2973_v36  ;;  %6075 = vmatmul.msk.f32.gmra.mxu1 %vm257_vm1, %v8043_v24  ;;  %v8067_v42 = vld [vmem:[#allocation3 + $0x79] sm:$0xff] }
 0x329   : > { %v2557_v59 = vadd.f32 %v2509_v28, %v2279_v47  ;;  %v8069_v48 = vld [vmem:[#allocation3 + $0x7a] sm:$0xff] }
 0x32b   : > { %v2835_v38 = vadd.f32 %v2787_v34, %v2557_v59  ;;  %6094 = vmatmul.msk.f32.gmra.mxu2 %vm257_vm1, %v8048_v51 }
 0x32c   : > { %v2796_v46 = vpop.f32.mrf.mxu0  ;;  %6128 = vmatmul.msk.f32.gmra.mxu3 %vm257_vm1, %v8050_v27 }
 0x32d   : > { %vm2910_vm14 = vcmp.ge.f32.partialorder %v2835_v38, 0.0  ;;  %v2942_v10 = vmul.f32 0.2, %v2835_v38  ;;  %v8058_v52 = vpop.f32.mrf.mxu1 }
 0x32e   : > { %v2234_v7 = vpop.f32.mrf.mxu2 }
 0x32f   : > { %6164 = vmatmul.msk.f32.gmra.mxu0 %vm257_vm1, %v7872_v23  ;;  %v2512_v30 = vpop.f32.mrf.mxu3  ;;  %v2974_v43 = vsel %vm2910_vm14, %v2835_v38, %v2942_v10  ;;  %v2280_v34 = vadd.f32 %v2234_v7, %v2001_v21  ;;  %v8062_v53 = vld [vmem:[#allocation3 + $0x128] sm:$0xff]  ;;  %v9344_v23 = vld [vmem:[#allocation68_spill] sm:$0xff] }
 0x330   : > { %3007 = vst.msk [vmem:[#allocation3 + $0x139] sm:$0xff] %vm257_vm1, %v2974_v43  ;;  %6076 = vmatmul.msk.f32.gmra.mxu1 %vm257_vm1, %v8062_v53  ;;  %v2002_v9 = vadd.f32 %v7805_v44, %v9344_v23  ;;  %v8088_v44 = vld [vmem:[#allocation3 + $0x81] sm:$0xff] }
 0x331   : > { %v2558_v11 = vadd.f32 %v2512_v30, %v2280_v34  ;;  %v8090_v21 = vld [vmem:[#allocation3 + $0x82] sm:$0xff] }
 0x333   : > { %v2836_v49 = vadd.f32 %v2790_v0, %v2558_v11  ;;  %6095 = vmatmul.msk.f32.gmra.mxu2 %vm257_vm1, %v8067_v42 }
 0x334   : > { %v8071_v35 = vpop.f32.mrf.mxu0  ;;  %6129 = vmatmul.msk.f32.gmra.mxu3 %vm257_vm1, %v8069_v48 }
 0x335   : > { %vm2911_vm15 = vcmp.ge.f32.partialorder %v2836_v49, 0.0  ;;  %v2943_v22 = vmul.f32 0.2, %v2836_v49  ;;  %v8079_v1 = vpop.f32.mrf.mxu1 }
 0x336   : > { %v2237_v28 = vpop.f32.mrf.mxu2 }
 0x337   : > { %6165 = vmatmul.msk.f32.gmra.mxu0 %vm257_vm1, %v7883_v26  ;;  %v2515_v36 = vpop.f32.mrf.mxu3  ;;  %v2975_v47 = vsel %vm2911_vm15, %v2836_v49, %v2943_v22  ;;  %v2281_v0 = vadd.f32 %v2237_v28, %v2002_v9  ;;  %v8083_v59 = vld [vmem:[#allocation3 + $0x138] sm:$0xff]  ;;  %v9345_v26 = vld [vmem:[#allocation70_spill] sm:$0xff] }
 0x338   : > { %3008 = vst.msk [vmem:[#allocation3 + $0x141] sm:$0xff] %vm257_vm1, %v2975_v47  ;;  %6077 = vmatmul.msk.f32.gmra.mxu1 %vm257_vm1, %v8083_v59  ;;  %v2003_v30 = vadd.f32 %v7823_v8, %v9345_v26  ;;  %v6219_v8 = vld [vmem:[%s9135_s3 + $0x14] sm:$0xf]  ;;  %v8113_v28 = vld [vmem:[#allocation3 + $0x91] sm:$0xff] }
 0x339   : > { %v2559_v38 = vadd.f32 %v2515_v36, %v2281_v0  ;;  %6220 = vmatpush.msk.msra.mxu2 %vm469_vm0, %v6219_v8  ;;  %v9347_v0 = vld [vmem:[#allocation46_spill] sm:$0xff] }
 0x33a   : > { %v8144_v8 = vld [vmem:[#allocation3 + $0x99] sm:$0xff] }
 0x33b   : > { %v2837_v7 = vadd.f32 %v2793_v54, %v2559_v38  ;;  %6096 = vmatmul.msk.f32.gmra.mxu2 %vm257_vm1, %v8088_v44  ;;  %v2004_v38 = vadd.f32 %v7836_v55, %v9347_v0  ;;  %v6253_v55 = vld [vmem:[%s9135_s3 + $0x18] sm:$0xf] }
 0x33c   : > { %v8092_v10 = vpop.f32.mrf.mxu0  ;;  %6130 = vmatmul.msk.f32.gmra.mxu3 %vm257_vm1, %v8090_v21 }
 0x33d   : > { %vm2912_vm2 = vcmp.ge.f32.partialorder %v2837_v7, 0.0  ;;  %v2944_v43 = vmul.f32 0.2, %v2837_v7  ;;  %v8100_v34 = vpop.f32.mrf.mxu1  ;;  %6254 = vmatpush.msk.msra.mxu3 %vm469_vm0, %v6253_v55 }
 0x33e   : > { %v2240_v11 = vpop.f32.mrf.mxu2 }
 0x33f   : > { %6166 = vmatmul.msk.f32.gmra.mxu0 %vm257_vm1, %v7896_v3  ;;  %v2518_v49 = vpop.f32.mrf.mxu3  ;;  %v2976_v23 = vsel %vm2912_vm2, %v2837_v7, %v2944_v43  ;;  %v2282_v54 = vadd.f32 %v2240_v11, %v2003_v30  ;;  %v8104_v9 = vld [vmem:[#allocation3 + $0x140] sm:$0xff]  ;;  %v8115_v3 = vld [vmem:[#allocation3 + $0x92] sm:$0xff] }
 0x340   : > { %3009 = vst.msk [vmem:[#allocation3 + $0x151] sm:$0xff] %vm257_vm1, %v2976_v23  ;;  %6078 = vmatmul.msk.f32.gmra.mxu1 %vm257_vm1, %v8104_v9 }
 0x341   : > { %v2560_v22 = vadd.f32 %v2518_v49, %v2282_v54  ;;  %9346 = vst [vmem:[#allocation50_spill] sm:$0xff] %v8115_v3  ;;  %v6321_v54 = vld [vmem:[%s9135_s3 + $0x20] sm:$0xf] }
 0x342   : > { %6322 = vmatpush.msk.msra.mxu1 %vm469_vm0, %v6321_v54  ;;  %v8168_v54 = vld [vmem:[#allocation3 + $0xaa] sm:$0xff] }
 0x343   : > { %v2838_v47 = vadd.f32 %v2796_v46, %v2560_v22  ;;  %6097 = vmatmul.msk.f32.gmra.mxu2 %vm257_vm1, %v8113_v28  ;;  %v8146_v22 = vld [vmem:[#allocation3 + $0x9a] sm:$0xff]  ;;  %9350 = vst [vmem:[#allocation52_spill] sm:$0xff] %v8168_v54 }
 0x344   : > { %v8117_v36 = vpop.f32.mrf.mxu0  ;;  %6131 = vmatmul.msk.f32.gmra.mxu3 %vm257_vm1, %v8115_v3  ;;  %9348 = vst [vmem:[#allocation45_spill] sm:$0xff] %v8146_v22 }
 0x345   : > { %vm2913_vm3 = vcmp.ge.f32.partialorder %v2838_v47, 0.0  ;;  %v2945_v7 = vmul.f32 0.2, %v2838_v47  ;;  %v8125_v26 = vpop.f32.mrf.mxu1 }
 0x346   : > { %v2243_v30 = vpop.f32.mrf.mxu2 }
 0x347   : > { %6167 = vmatmul.msk.f32.gmra.mxu0 %vm257_vm1, %v7909_v16  ;;  %v2521_v43 = vpop.f32.mrf.mxu3  ;;  %v2977_v11 = vsel %vm2913_vm3, %v2838_v47, %v2945_v7  ;;  %v2283_v46 = vadd.f32 %v2243_v30, %v2004_v38  ;;  %v8129_v49 = vld [vmem:[#allocation3 + $0x150] sm:$0xff]  ;;  %v6287_v16 = vld [vmem:[%s9135_s3 + $0x1c] sm:$0xf] }
 0x348   : > { %3010 = vst.msk [vmem:[#allocation3 + $0x159] sm:$0xff] %vm257_vm1, %v2977_v11  ;;  %6079 = vmatmul.msk.f32.gmra.mxu1 %vm257_vm1, %v8129_v49  ;;  %6288 = vmatpush.msk.msra.mxu0 %vm469_vm0, %v6287_v16  ;;  %v9349_v38 = vld [vmem:[#allocation48_spill] sm:$0xff] }
 0x349   : > { %v2561_v23 = vadd.f32 %v2521_v43, %v2283_v46  ;;  %v2005_v7 = vadd.f32 %v7855_v4, %v9349_v38  ;;  %v8166_v4 = vld [vmem:[#allocation3 + $0xa9] sm:$0xff] }
 0x34b   : > { %v2839_v0 = vadd.f32 %v8071_v35, %v2561_v23  ;;  %6098 = vmatmul.msk.f32.gmra.mxu2 %vm257_vm1, %v8144_v8 }
 0x34c   : > { %v2808_v47 = vpop.f32.mrf.mxu0  ;;  %6132 = vmatmul.msk.f32.gmra.mxu3 %vm257_vm1, %v8146_v22 }
 0x34d   : > { %vm2914_vm4 = vcmp.ge.f32.partialorder %v2839_v0, 0.0  ;;  %v2946_v30 = vmul.f32 0.2, %v2839_v0  ;;  %v8157_v43 = vpop.f32.mrf.mxu1 }
 0x34e   : > { %v2246_v11 = vpop.f32.mrf.mxu2 }
 0x34f   : > { %6168 = vmatmul.msk.f32.gmra.mxu0 %vm257_vm1, %v7922_v17  ;;  %v2524_v46 = vpop.f32.mrf.mxu3  ;;  %v2978_v55 = vsel %vm2914_vm4, %v2839_v0, %v2946_v30  ;;  %v2284_v35 = vadd.f32 %v2246_v11, %v2005_v7  ;;  %v8161_v23 = vld [vmem:[#allocation3 + $0x158] sm:$0xff]  ;;  %v9351_v17 = vld [vmem:[#allocation44_spill] sm:$0xff] }
 0x350   : > { %3011 = vst.msk [vmem:[#allocation3 + $0x169] sm:$0xff] %vm257_vm1, %v2978_v55  ;;  %6080 = vmatmul.msk.f32.gmra.mxu1 %vm257_vm1, %v8161_v23  ;;  %v2006_v0 = vadd.f32 %v7870_v15, %v9351_v17  ;;  %v8186_v15 = vld [vmem:[#allocation3 + $0xb1] sm:$0xff] }
 0x351   : > { %v2562_v16 = vadd.f32 %v2524_v46, %v2284_v35  ;;  %v8188_v17 = vld [vmem:[#allocation3 + $0xb2] sm:$0xff] }
 0x352   : > { %9352 = vst [vmem:[#allocation47_spill] sm:$0xff] %v8188_v17 }
 0x353   : > { %v2840_v22 = vadd.f32 %v8092_v10, %v2562_v16  ;;  %6099 = vmatmul.msk.f32.gmra.mxu2 %vm257_vm1, %v8166_v4 }
 0x354   : > { %v4002_v38 = vpop.f32.mrf.mxu0  ;;  %6133 = vmatmul.msk.f32.gmra.mxu3 %vm257_vm1, %v8168_v54 }
 0x355   : > { %vm2915_vm0 = vcmp.ge.f32.partialorder %v2840_v22, 0.0  ;;  %v2947_v7 = vmul.f32 0.2, %v2840_v22  ;;  %v8177_v30 = vpop.f32.mrf.mxu1 }
 0x356   : > { %v2249_v11 = vpop.f32.mrf.mxu2 }
 0x357   : > { %6169 = vmatmul.msk.f32.gmra.mxu0 %vm257_vm1, %v7938_v5  ;;  %v2527_v46 = vpop.f32.mrf.mxu3  ;;  %v2979_v55 = vsel %vm2915_vm0, %v2840_v22, %v2947_v7  ;;  %v2285_v10 = vadd.f32 %v2249_v11, %v2006_v0  ;;  %v8181_v35 = vld [vmem:[#allocation3 + $0x168] sm:$0xff]  ;;  %v2007_v5 = vadd.f32 %v7888_v32, %v7716_v45  ;;  %v8209_v45 = vld [vmem:[%s9136_s4] ss:$0 sm:$0xff] }
 0x358   : > { %3012 = vst.msk [vmem:[#allocation3 + $0x171] sm:$0xff] %vm257_vm1, %v2979_v55  ;;  %6081 = vmatmul.msk.f32.gmra.mxu1 %vm257_vm1, %v8181_v35 }
 0x359   : > { %v2563_v16 = vadd.f32 %v2527_v46, %v2285_v10  ;;  %v8211_v10 = vld [vmem:[#allocation3 + $0xc1] sm:$0xff] }
 0x35b   : > { %v2841_v3 = vadd.f32 %v8117_v36, %v2563_v16  ;;  %6100 = vmatmul.msk.f32.gmra.mxu2 %vm257_vm1, %v8186_v15 }
 0x35c   : > { %v4005_v54 = vpop.f32.mrf.mxu0  ;;  %6134 = vmatmul.msk.f32.gmra.mxu3 %vm257_vm1, %v8188_v17 }
 0x35d   : > { %vm2916_vm5 = vcmp.ge.f32.partialorder %v2841_v3, 0.0  ;;  %v2948_v22 = vmul.f32 0.2, %v2841_v3  ;;  %v8197_v0 = vpop.f32.mrf.mxu1 }
 0x35e   : > { %v2252_v7 = vpop.f32.mrf.mxu2 }
 0x35f   : > { %6170 = vmatmul.msk.f32.gmra.mxu0 %vm257_vm1, %v7954_v33  ;;  %v2530_v11 = vpop.f32.mrf.mxu3  ;;  %v2980_v46 = vsel %vm2916_vm5, %v2841_v3, %v2948_v22  ;;  %v2286_v36 = vadd.f32 %v2252_v7, %v2007_v5  ;;  %v8201_v55 = vld [vmem:[#allocation3 + $0x170] sm:$0xff]  ;;  %v8213_v33 = vld [vmem:[#allocation3 + $0xc2] sm:$0xff]  ;;  %v3264_v5 = vadd.f32 %v8209_v45, %v7901_v40 }
 0x360   : > { %3013 = vst.msk [vmem:[#allocation3 + $0x181] sm:$0xff] %vm257_vm1, %v2980_v46  ;;  %6082 = vmatmul.msk.f32.gmra.mxu1 %vm257_vm1, %v8201_v55  ;;  %v8230_v40 = vld [vmem:[#allocation3 + $0xca] sm:$0xff] }
 0x361   : > { %v2564_v32 = vadd.f32 %v2530_v11, %v2286_v36  ;;  %9353 = vst [vmem:[#allocation54_spill] sm:$0xff] %v8213_v33 }
 0x362   : > { %9354 = vst [vmem:[#allocation49_spill] sm:$0xff] %v8230_v40 }
 0x363   : > { %v2842_v3 = vadd.f32 %v2808_v47, %v2564_v32  ;;  %6101 = vmatmul.msk.f32.gmra.mxu2 %vm257_vm1, %v8211_v10 }
 0x364   : > { %v4008_v16 = vpop.f32.mrf.mxu0  ;;  %6135 = vmatmul.msk.f32.gmra.mxu3 %vm257_vm1, %v8213_v33  ;;  %v8228_v33 = vld [vmem:[#allocation3 + $0xc9] sm:$0xff] }
 0x365   : > { %vm2917_vm6 = vcmp.ge.f32.partialorder %v2842_v3, 0.0  ;;  %v2949_v22 = vmul.f32 0.2, %v2842_v3  ;;  %v8221_v7 = vpop.f32.mrf.mxu1 }
 0x366   : > { %v3446_v11 = vpop.f32.mrf.mxu2 }
 0x367   : > { %6171 = vmatmul.msk.f32.gmra.mxu0 %vm257_vm1, %v7970_v63  ;;  %v3724_v46 = vpop.f32.mrf.mxu3  ;;  %v2981_v36 = vsel %vm2917_vm6, %v2842_v3, %v2949_v22  ;;  %v3542_v47 = vadd.f32 %v3446_v11, %v3264_v5  ;;  %v3265_v3 = vadd.f32 %v8209_v45, %v7916_v18 }
 0x368   : > { %3014 = vst.msk [vmem:[#allocation3 + $0x189] sm:$0xff] %vm257_vm1, %v2981_v36  ;;  %6187 = vmatmul.msk.f32.vlgmr.msrb.gmra.mxu1 %vm257_vm1, %v7927_v2  ;;  %v8246_v36 = vld [vmem:[#allocation3 + $0xd9] sm:$0xff] }
 0x369   : > { %v3820_v32 = vadd.f32 %v3724_v46, %v3542_v47  ;;  %v8248_v47 = vld [vmem:[#allocation3 + $0xda] sm:$0xff] }
 0x36a   : > { %9356 = vst [vmem:[#allocation51_spill] sm:$0xff] %v8248_v47 }
 0x36b   : > { %6102 = vmatmul.msk.f32.gmra.mxu2 %vm257_vm1, %v8228_v33  ;;  %v8236_v63 = vadd.f32 %v4002_v38, %v3820_v32 }
 0x36c   : > { %v4011_v17 = vpop.f32.mrf.mxu0  ;;  %6136 = vmatmul.msk.f32.gmra.mxu3 %vm257_vm1, %v8230_v40  ;;  %v8484_v40 = vld [vmem:[#allocation3 + $0x171] sm:$0xff] }
 0x36d   : > { %9355 = vst [vmem:[#allocation56_spill] sm:$0xff] %v8236_v63  ;;  %v8240_v5 = vpop.f32.mrf.mxu1  ;;  %v8266_v63 = vld [vmem:[#allocation3 + $0xe2] sm:$0xff] }
 0x36e   : > { %v3449_v2 = vpop.f32.mrf.mxu2  ;;  %9358 = vst [vmem:[#allocation53_spill] sm:$0xff] %v8266_v63 }
 0x36f   : > { %6172 = vmatmul.msk.f32.gmra.mxu0 %vm257_vm1, %v7986_v19  ;;  %v3727_v22 = vpop.f32.mrf.mxu3  ;;  %v3543_v11 = vadd.f32 %v3449_v2, %v3265_v3  ;;  %v3266_v19 = vadd.f32 %v8209_v45, %v7934_v50 }
 0x370   : > { %6188 = vmatmul.msk.f32.gmra.mxu1 %vm257_vm1, %v7943_v31 }
 0x371   : > { %v3821_v46 = vadd.f32 %v3727_v22, %v3543_v11  ;;  %v8264_v11 = vld [vmem:[#allocation3 + $0xe1] sm:$0xff] }
 0x373   : > { %6103 = vmatmul.msk.f32.gmra.mxu2 %vm257_vm1, %v8246_v36  ;;  %v8254_v18 = vadd.f32 %v4005_v54, %v3821_v46 }
 0x374   : > { %v4014_v38 = vpop.f32.mrf.mxu0  ;;  %6137 = vmatmul.msk.f32.gmra.mxu3 %vm257_vm1, %v8248_v47 }
 0x375   : > { %9357 = vst [vmem:[#allocation58_spill] sm:$0xff] %v8254_v18  ;;  %v8258_v32 = vpop.f32.mrf.mxu1  ;;  %v8282_v18 = vld [vmem:[#allocation3 + $0xf1] sm:$0xff] }
 0x376   : > { %v3452_v31 = vpop.f32.mrf.mxu2 }
 0x377   : > { %6173 = vmatmul.msk.f32.gmra.mxu0 %vm257_vm1, %v8005_v25  ;;  %v3730_v3 = vpop.f32.mrf.mxu3  ;;  %v3544_v2 = vadd.f32 %v3452_v31, %v3266_v19  ;;  %v3267_v25 = vadd.f32 %v8209_v45, %v7950_v13 }
 0x378   : > { %6189 = vmatmul.msk.f32.gmra.mxu1 %vm257_vm1, %v7959_v61 }
 0x379   : > { %v3822_v22 = vadd.f32 %v3730_v3, %v3544_v2 }
 0x37b   : > { %6104 = vmatmul.msk.f32.gmra.mxu2 %vm257_vm1, %v8264_v11  ;;  %v8272_v50 = vadd.f32 %v4008_v16, %v3822_v22 }
 0x37c   : > { %v4017_v54 = vpop.f32.mrf.mxu0  ;;  %6138 = vmatmul.msk.f32.gmra.mxu3 %vm257_vm1, %v8266_v63  ;;  %v8284_v63 = vld [vmem:[#allocation3 + $0xf2] sm:$0xff] }
 0x37d   : > { %9359 = vst [vmem:[#allocation60_spill] sm:$0xff] %v8272_v50  ;;  %v8276_v46 = vpop.f32.mrf.mxu1  ;;  %v8300_v50 = vld [vmem:[#allocation3 + $0xf9] sm:$0xff] }
 0x37e   : > { %v3455_v19 = vpop.f32.mrf.mxu2  ;;  %9360 = vst [vmem:[#allocation55_spill] sm:$0xff] %v8284_v63 }
 0x37f   : > { %6174 = vmatmul.msk.f32.gmra.mxu0 %vm257_vm1, %v8024_v56  ;;  %v3733_v31 = vpop.f32.mrf.mxu3  ;;  %v3545_v3 = vadd.f32 %v3455_v19, %v3267_v25  ;;  %v3268_v56 = vadd.f32 %v8209_v45, %v7966_v60 }
 0x380   : > { %6190 = vmatmul.msk.f32.gmra.mxu1 %vm257_vm1, %v7975_v62 }
 0x381   : > { %v3823_v2 = vadd.f32 %v3733_v31, %v3545_v3 }
 0x383   : > { %6105 = vmatmul.msk.f32.gmra.mxu2 %vm257_vm1, %v8282_v18  ;;  %v8290_v13 = vadd.f32 %v4011_v17, %v3823_v2 }
 0x384   : > { %v4020_v16 = vpop.f32.mrf.mxu0  ;;  %6139 = vmatmul.msk.f32.gmra.mxu3 %vm257_vm1, %v8284_v63  ;;  %v8302_v63 = vld [vmem:[#allocation3 + $0xfa] sm:$0xff] }
 0x385   : > { %9361 = vst [vmem:[#allocation62_spill] sm:$0xff] %v8290_v13  ;;  %v8294_v22 = vpop.f32.mrf.mxu1  ;;  %v8318_v13 = vld [vmem:[#allocation3 + $0x109] sm:$0xff] }
 0x386   : > { %v3458_v25 = vpop.f32.mrf.mxu2  ;;  %9362 = vst [vmem:[#allocation57_spill] sm:$0xff] %v8302_v63 }
 0x387   : > { %6175 = vmatmul.msk.f32.gmra.mxu0 %vm257_vm1, %v8043_v24  ;;  %v3736_v19 = vpop.f32.mrf.mxu3  ;;  %v3546_v31 = vadd.f32 %v3458_v25, %v3268_v56  ;;  %v3269_v24 = vadd.f32 %v8209_v45, %v7982_v29 }
 0x388   : > { %6191 = vmatmul.msk.f32.gmra.mxu1 %vm257_vm1, %v7991_v58 }
 0x389   : > { %v3824_v3 = vadd.f32 %v3736_v19, %v3546_v31 }
 0x38b   : > { %6106 = vmatmul.msk.f32.gmra.mxu2 %vm257_vm1, %v8300_v50  ;;  %v8308_v60 = vadd.f32 %v4014_v38, %v3824_v3 }
 0x38c   : > { %v4023_v17 = vpop.f32.mrf.mxu0  ;;  %6140 = vmatmul.msk.f32.gmra.mxu3 %vm257_vm1, %v8302_v63  ;;  %v8320_v63 = vld [vmem:[#allocation3 + $0x10a] sm:$0xff] }
 0x38d   : > { %9363 = vst [vmem:[#allocation64_spill] sm:$0xff] %v8308_v60  ;;  %v8312_v2 = vpop.f32.mrf.mxu1  ;;  %v8336_v60 = vld [vmem:[#allocation3 + $0x111] sm:$0xff] }
 0x38e   : > { %v3461_v56 = vpop.f32.mrf.mxu2  ;;  %9364 = vst [vmem:[#allocation59_spill] sm:$0xff] %v8320_v63 }
 0x38f   : > { %6176 = vmatmul.msk.f32.gmra.mxu0 %vm257_vm1, %v8062_v53  ;;  %v3739_v25 = vpop.f32.mrf.mxu3  ;;  %v3547_v19 = vadd.f32 %v3461_v56, %v3269_v24  ;;  %v3270_v53 = vadd.f32 %v8209_v45, %v8001_v14 }
 0x390   : > { %6192 = vmatmul.msk.f32.gmra.mxu1 %vm257_vm1, %v8010_v6 }
 0x391   : > { %v3825_v31 = vadd.f32 %v3739_v25, %v3547_v19 }
 0x393   : > { %6107 = vmatmul.msk.f32.gmra.mxu2 %vm257_vm1, %v8318_v13  ;;  %v8326_v29 = vadd.f32 %v4017_v54, %v3825_v31 }
 0x394   : > { %v4026_v38 = vpop.f32.mrf.mxu0  ;;  %6141 = vmatmul.msk.f32.gmra.mxu3 %vm257_vm1, %v8320_v63  ;;  %v8338_v63 = vld [vmem:[#allocation3 + $0x112] sm:$0xff] }
 0x395   : > { %9365 = vst [vmem:[#allocation66_spill] sm:$0xff] %v8326_v29  ;;  %v8330_v3 = vpop.f32.mrf.mxu1  ;;  %v8354_v29 = vld [vmem:[#allocation3 + $0x121] sm:$0xff] }
 0x396   : > { %v3464_v24 = vpop.f32.mrf.mxu2  ;;  %9366 = vst [vmem:[#allocation61_spill] sm:$0xff] %v8338_v63 }
 0x397   : > { %6177 = vmatmul.msk.f32.gmra.mxu0 %vm257_vm1, %v8083_v59  ;;  %v3742_v56 = vpop.f32.mrf.mxu3  ;;  %v3548_v25 = vadd.f32 %v3464_v24, %v3270_v53  ;;  %v3271_v59 = vadd.f32 %v8209_v45, %v8020_v12 }
 0x398   : > { %6193 = vmatmul.msk.f32.gmra.mxu1 %vm257_vm1, %v8029_v57 }
 0x399   : > { %v3826_v19 = vadd.f32 %v3742_v56, %v3548_v25 }
 0x39b   : > { %6108 = vmatmul.msk.f32.gmra.mxu2 %vm257_vm1, %v8336_v60  ;;  %v8344_v14 = vadd.f32 %v4020_v16, %v3826_v19 }
 0x39c   : > { %v4029_v54 = vpop.f32.mrf.mxu0  ;;  %6142 = vmatmul.msk.f32.gmra.mxu3 %vm257_vm1, %v8338_v63  ;;  %v8356_v63 = vld [vmem:[#allocation3 + $0x122] sm:$0xff] }
 0x39d   : > { %9367 = vst [vmem:[#allocation63_spill] sm:$0xff] %v8344_v14  ;;  %v8348_v31 = vpop.f32.mrf.mxu1  ;;  %v8372_v14 = vld [vmem:[#allocation3 + $0x129] sm:$0xff] }
 0x39e   : > { %v3467_v53 = vpop.f32.mrf.mxu2  ;;  %9368 = vst [vmem:[#allocation65_spill] sm:$0xff] %v8356_v63 }
 0x39f   : > { %6178 = vmatmul.msk.f32.gmra.mxu0 %vm257_vm1, %v8104_v9  ;;  %v3745_v24 = vpop.f32.mrf.mxu3  ;;  %v3549_v56 = vadd.f32 %v3467_v53, %v3271_v59  ;;  %v3272_v9 = vadd.f32 %v8209_v45, %v8039_v41 }
 0x3a0   : > { %6194 = vmatmul.msk.f32.gmra.mxu1 %vm257_vm1, %v8048_v51 }
 0x3a1   : > { %v3827_v25 = vadd.f32 %v3745_v24, %v3549_v56 }
 0x3a3   : > { %6109 = vmatmul.msk.f32.gmra.mxu2 %vm257_vm1, %v8354_v29  ;;  %v8362_v12 = vadd.f32 %v4023_v17, %v3827_v25 }
 0x3a4   : > { %v4032_v16 = vpop.f32.mrf.mxu0  ;;  %6143 = vmatmul.msk.f32.gmra.mxu3 %vm257_vm1, %v8356_v63  ;;  %v8374_v63 = vld [vmem:[#allocation3 + $0x12a] sm:$0xff] }
 0x3a5   : > { %9369 = vst [vmem:[#allocation67_spill] sm:$0xff] %v8362_v12  ;;  %v8366_v19 = vpop.f32.mrf.mxu1  ;;  %v8390_v12 = vld [vmem:[#allocation3 + $0x139] sm:$0xff] }
 0x3a6   : > { %v3470_v59 = vpop.f32.mrf.mxu2  ;;  %9370 = vst [vmem:[#allocation69_spill] sm:$0xff] %v8374_v63 }
 0x3a7   : > { %6179 = vmatmul.msk.f32.gmra.mxu0 %vm257_vm1, %v8129_v49  ;;  %v3748_v53 = vpop.f32.mrf.mxu3  ;;  %v3550_v24 = vadd.f32 %v3470_v59, %v3272_v9  ;;  %v3273_v49 = vadd.f32 %v8209_v45, %v8058_v52 }
 0x3a8   : > { %6195 = vmatmul.msk.f32.gmra.mxu1 %vm257_vm1, %v8067_v42 }
 0x3a9   : > { %v3828_v56 = vadd.f32 %v3748_v53, %v3550_v24 }
 0x3ab   : > { %6110 = vmatmul.msk.f32.gmra.mxu2 %vm257_vm1, %v8372_v14  ;;  %v8380_v41 = vadd.f32 %v4026_v38, %v3828_v56 }
 0x3ac   : > { %v4035_v17 = vpop.f32.mrf.mxu0  ;;  %6144 = vmatmul.msk.f32.gmra.mxu3 %vm257_vm1, %v8374_v63  ;;  %v8392_v63 = vld [vmem:[#allocation3 + $0x13a] sm:$0xff] }
 0x3ad   : > { %9371 = vst [vmem:[#allocation71_spill] sm:$0xff] %v8380_v41  ;;  %v8384_v25 = vpop.f32.mrf.mxu1  ;;  %v8408_v41 = vld [vmem:[#allocation3 + $0x141] sm:$0xff] }
 0x3ae   : > { %v3473_v9 = vpop.f32.mrf.mxu2  ;;  %9372 = vst [vmem:[#allocation72_spill] sm:$0xff] %v8392_v63 }
 0x3af   : > { %6180 = vmatmul.msk.f32.gmra.mxu0 %vm257_vm1, %v8161_v23  ;;  %v3751_v59 = vpop.f32.mrf.mxu3  ;;  %v3551_v53 = vadd.f32 %v3473_v9, %v3273_v49  ;;  %v3274_v23 = vadd.f32 %v8209_v45, %v8079_v1 }
 0x3b0   : > { %6196 = vmatmul.msk.f32.gmra.mxu1 %vm257_vm1, %v8088_v44 }
 0x3b1   : > { %v3829_v24 = vadd.f32 %v3751_v59, %v3551_v53 }
 0x3b3   : > { %6111 = vmatmul.msk.f32.gmra.mxu2 %vm257_vm1, %v8390_v12  ;;  %v8398_v52 = vadd.f32 %v4029_v54, %v3829_v24 }
 0x3b4   : > { %v4038_v38 = vpop.f32.mrf.mxu0  ;;  %6145 = vmatmul.msk.f32.gmra.mxu3 %vm257_vm1, %v8392_v63  ;;  %v8410_v63 = vld [vmem:[#allocation3 + $0x142] sm:$0xff] }
 0x3b5   : > { %9373 = vst [vmem:[#allocation35_spill] sm:$0xff] %v8398_v52  ;;  %v8402_v56 = vpop.f32.mrf.mxu1  ;;  %v8426_v52 = vld [vmem:[#allocation3 + $0x151] sm:$0xff] }
 0x3b6   : > { %v3476_v49 = vpop.f32.mrf.mxu2  ;;  %9374 = vst [vmem:[#allocation39_spill] sm:$0xff] %v8410_v63 }
 0x3b7   : > { %6181 = vmatmul.msk.f32.gmra.mxu0 %vm257_vm1, %v8181_v35  ;;  %v3754_v9 = vpop.f32.mrf.mxu3  ;;  %v3552_v59 = vadd.f32 %v3476_v49, %v3274_v23  ;;  %v3275_v35 = vadd.f32 %v8209_v45, %v8100_v34 }
 0x3b8   : > { %6197 = vmatmul.msk.f32.gmra.mxu1 %vm257_vm1, %v8113_v28 }
 0x3b9   : > { %v3830_v53 = vadd.f32 %v3754_v9, %v3552_v59 }
 0x3bb   : > { %6112 = vmatmul.msk.f32.gmra.mxu2 %vm257_vm1, %v8408_v41  ;;  %v8416_v1 = vadd.f32 %v4032_v16, %v3830_v53  ;;  %v3276_v53 = vadd.f32 %v8209_v45, %v8125_v26 }
 0x3bc   : > { %v4041_v54 = vpop.f32.mrf.mxu0  ;;  %6146 = vmatmul.msk.f32.gmra.mxu3 %vm257_vm1, %v8410_v63  ;;  %v8428_v63 = vld [vmem:[#allocation3 + $0x152] sm:$0xff] }
 0x3bd   : > { %9375 = vst [vmem:[#allocation36_spill] sm:$0xff] %v8416_v1  ;;  %v8420_v24 = vpop.f32.mrf.mxu1 }
 0x3be   : > { %v3479_v23 = vpop.f32.mrf.mxu2  ;;  %9376 = vst [vmem:[#allocation41_spill] sm:$0xff] %v8428_v63 }
 0x3bf   : > { %6182 = vmatmul.msk.f32.gmra.mxu0 %vm257_vm1, %v8201_v55  ;;  %v3757_v49 = vpop.f32.mrf.mxu3  ;;  %v3553_v9 = vadd.f32 %v3479_v23, %v3275_v35  ;;  %v8436_v55 = vld [vmem:[#allocation3 + $0x180] sm:$0xff] }
 0x3c0   : > { %6198 = vmatmul.msk.f32.gmra.mxu1 %vm257_vm1, %v8144_v8  ;;  %9378 = vst [vmem:[#allocation43_spill] sm:$0xff] %v8436_v55 }
 0x3c1   : > { %v3831_v59 = vadd.f32 %v3757_v49, %v3553_v9 }
 0x3c3   : > { %6113 = vmatmul.msk.f32.gmra.mxu2 %vm257_vm1, %v8426_v52  ;;  %v8434_v34 = vadd.f32 %v4035_v17, %v3831_v59  ;;  %v8448_v17 = vld [vmem:[#allocation3 + $0x15a] sm:$0xff] }
 0x3c4   : > { %v4044_v16 = vpop.f32.mrf.mxu0  ;;  %6147 = vmatmul.msk.f32.gmra.mxu3 %vm257_vm1, %v8428_v63  ;;  %v8446_v63 = vld [vmem:[#allocation3 + $0x159] sm:$0xff]  ;;  %9379 = vst [vmem:[#allocation40_spill] sm:$0xff] %v8448_v17 }
 0x3c5   : > { %9377 = vst [vmem:[#allocation38_spill] sm:$0xff] %v8434_v34  ;;  %v8440_v35 = vpop.f32.mrf.mxu1  ;;  %v8456_v34 = vld [vmem:[#allocation3 + $0x188] sm:$0xff] }
 0x3c6   : > { %v3482_v23 = vpop.f32.mrf.mxu2  ;;  %9381 = vst [vmem:[#allocation68_spill] sm:$0xff] %v8456_v34 }
 0x3c7   : > { %6183 = vmatmul.msk.f32.gmra.mxu0 %vm257_vm1, %v8436_v55  ;;  %v3760_v49 = vpop.f32.mrf.mxu3  ;;  %v3554_v9 = vadd.f32 %v3482_v23, %v3276_v53  ;;  %v3277_v53 = vadd.f32 %v8209_v45, %v8157_v43 }
 0x3c8   : > { %6199 = vmatmul.msk.f32.gmra.mxu1 %vm257_vm1, %v8166_v4 }
 0x3c9   : > { %v3832_v1 = vadd.f32 %v3760_v49, %v3554_v9 }
 0x3cb   : > { %6114 = vmatmul.msk.f32.gmra.mxu2 %vm257_vm1, %v8446_v63  ;;  %v8454_v26 = vadd.f32 %v4038_v38, %v3832_v1  ;;  %v8468_v38 = vld [vmem:[#allocation3 + $0x16a] sm:$0xff] }
 0x3cc   : > { %v4047_v59 = vpop.f32.mrf.mxu0  ;;  %6148 = vmatmul.msk.f32.gmra.mxu3 %vm257_vm1, %v8448_v17  ;;  %v8466_v17 = vld [vmem:[#allocation3 + $0x169] sm:$0xff]  ;;  %9382 = vst [vmem:[#allocation70_spill] sm:$0xff] %v8468_v38 }
 0x3cd   : > { %9380 = vst [vmem:[#allocation42_spill] sm:$0xff] %v8454_v26  ;;  %v8460_v23 = vpop.f32.mrf.mxu1 }
 0x3ce   : > { %v3485_v49 = vpop.f32.mrf.mxu2 }
 0x3cf   : > { %6184 = vmatmul.msk.f32.gmra.mxu0 %vm257_vm1, %v8456_v34  ;;  %v3763_v9 = vpop.f32.mrf.mxu3  ;;  %v3555_v55 = vadd.f32 %v3485_v49, %v3277_v53  ;;  %v3278_v53 = vadd.f32 %v8209_v45, %v8177_v30 }
 0x3d0   : > { %6200 = vmatmul.msk.f32.gmra.mxu1 %vm257_vm1, %v8186_v15 }
 0x3d1   : > { %v3833_v47 = vadd.f32 %v3763_v9, %v3555_v55 }
 0x3d3   : > { %6115 = vmatmul.msk.f32.gmra.mxu2 %vm257_vm1, %v8466_v17  ;;  %v8474_v43 = vadd.f32 %v4041_v54, %v3833_v47 }
 0x3d4   : > { %v4050_v1 = vpop.f32.mrf.mxu0  ;;  %6149 = vmatmul.msk.f32.gmra.mxu3 %vm257_vm1, %v8468_v38  ;;  %v8486_v38 = vld [vmem:[#allocation3 + $0x172] sm:$0xff] }
 0x3d5   : > { %9383 = vst [vmem:[#allocation46_spill] sm:$0xff] %v8474_v43  ;;  %v8478_v49 = vpop.f32.mrf.mxu1  ;;  %v4408_v43 = vld [vmem:[#allocation3 + $0x1a] sm:$0xff] }
 0x3d6   : > { %9384 = vst [vmem:[#allocation48_spill] sm:$0xff] %v8478_v49  ;;  %v3488_v55 = vpop.f32.mrf.mxu2  ;;  %v4687_v49 = vld [vmem:[#allocation3 + $0x30] sm:$0xff] }
 0x3d7   : > { %6289 = vmatmul.msk.f32.vlgmr.msra.gmra.mxu0 %vm257_vm1, %v7959_v61  ;;  %v3766_v9 = vpop.f32.mrf.mxu3  ;;  %v3556_v26 = vadd.f32 %v3488_v55, %v3278_v53  ;;  %9385 = vst [vmem:[#allocation44_spill] sm:$0xff] %v8486_v38  ;;  %v3279_v61 = vadd.f32 %v8209_v45, %v8197_v0 }
 0x3d8   : > { %6201 = vmatmul.msk.f32.gmra.mxu1 %vm257_vm1, %v8211_v10 }
 0x3d9   : > { %v3834_v34 = vadd.f32 %v3766_v9, %v3556_v26 }
 0x3db   : > { %6116 = vmatmul.msk.f32.gmra.mxu2 %vm257_vm1, %v8484_v40  ;;  %v8492_v30 = vadd.f32 %v4044_v16, %v3834_v34  ;;  %v3280_v16 = vadd.f32 %v8209_v45, %v8221_v7 }
 0x3dc   : > { %v4053_v47 = vpop.f32.mrf.mxu0  ;;  %6150 = vmatmul.msk.f32.gmra.mxu3 %vm257_vm1, %v8486_v38 }
 0x3dd   : > { %v8496_v54 = vpop.f32.mrf.mxu1 }
 0x3de   : > { %v3491_v26 = vpop.f32.mrf.mxu2 }
 0x3df   : > { %6290 = vmatmul.msk.f32.gmra.mxu0 %vm257_vm1, %v7975_v62  ;;  %v3769_v53 = vpop.f32.mrf.mxu3  ;;  %v3557_v55 = vadd.f32 %v3491_v26, %v3279_v61 }
 0x3e0   : > { %6202 = vmatmul.msk.f32.gmra.mxu1 %vm257_vm1, %v8228_v33 }
 0x3e1   : > { %v3835_v9 = vadd.f32 %v3769_v53, %v3557_v55  ;;  %v4688_v55 = vld [vmem:[#allocation3 + $0x38] sm:$0xff] }
 0x3e3   : > { %6221 = vmatmul.msk.f32.vlgmr.msra.gmra.mxu2 %vm257_vm1, %v4408_v43  ;;  %v8504_v0 = vadd.f32 %v4047_v59, %v3835_v9  ;;  %v4409_v43 = vld [vmem:[#allocation3 + $0x22] sm:$0xff]  ;;  %v3281_v59 = vadd.f32 %v8209_v45, %v8240_v5 }
 0x3e4   : > { %v4056_v38 = vpop.f32.mrf.mxu0  ;;  %6255 = vmatmul.msk.f32.vlgmr.msra.gmra.mxu3 %vm257_vm1, %v4687_v49 }
 0x3e5   : > { %v8508_v62 = vpop.f32.mrf.mxu1 }
 0x3e6   : > { %v3494_v34 = vpop.f32.mrf.mxu2 }
 0x3e7   : > { %6291 = vmatmul.msk.f32.gmra.mxu0 %vm257_vm1, %v7991_v58  ;;  %v3772_v61 = vpop.f32.mrf.mxu3  ;;  %v3558_v26 = vadd.f32 %v3494_v34, %v3280_v16 }
 0x3e8   : > { %6203 = vmatmul.msk.f32.gmra.mxu1 %vm257_vm1, %v8246_v36 }
 0x3e9   : > { %v3836_v53 = vadd.f32 %v3772_v61, %v3558_v26  ;;  %v8526_v26 = vld [vmem:[#allocation3 + $0x32] sm:$0xff] }
 0x3eb   : > { %6222 = vmatmul.msk.f32.gmra.mxu2 %vm257_vm1, %v4409_v43  ;;  %v8516_v7 = vadd.f32 %v4050_v1, %v3836_v53  ;;  %v4689_v43 = vld [vmem:[#allocation3 + $0x48] sm:$0xff] }
 0x3ec   : > { %v4059_v49 = vpop.f32.mrf.mxu0  ;;  %6256 = vmatmul.msk.f32.gmra.mxu3 %vm257_vm1, %v4688_v55 }
 0x3ed   : > { %9386 = vst [vmem:[#allocation73_spill] sm:$0xff] %v8516_v7  ;;  %v8520_v58 = vpop.f32.mrf.mxu1 }
 0x3ee   : > { %v3497_v9 = vpop.f32.mrf.mxu2 }
 0x3ef   : > { %6292 = vmatmul.msk.f32.gmra.mxu0 %vm257_vm1, %v8010_v6  ;;  %v3775_v16 = vpop.f32.mrf.mxu3  ;;  %v3559_v34 = vadd.f32 %v3497_v9, %v3281_v59  ;;  %v3282_v6 = vadd.f32 %v8209_v45, %v8258_v32 }
 0x3f0   : > { %6204 = vmatmul.msk.f32.gmra.mxu1 %vm257_vm1, %v8264_v11 }
 0x3f1   : > { %v3837_v61 = vadd.f32 %v3775_v16, %v3559_v34  ;;  %v8541_v34 = vld [vmem:[#allocation3 + $0x3a] sm:$0xff] }
 0x3f3   : > { %6223 = vmatmul.msk.f32.gmra.mxu2 %vm257_vm1, %v8526_v26  ;;  %v8531_v5 = vadd.f32 %v4053_v47, %v3837_v61 }
 0x3f4   : > { %v4062_v1 = vpop.f32.mrf.mxu0  ;;  %6257 = vmatmul.msk.f32.gmra.mxu3 %vm257_vm1, %v4689_v43  ;;  %v4690_v43 = vld [vmem:[#allocation3 + $0x50] sm:$0xff] }
 0x3f5   : > { %9387 = vst [vmem:[#allocation74_spill] sm:$0xff] %v8531_v5  ;;  %v8535_v53 = vpop.f32.mrf.mxu1  ;;  %v4691_v5 = vld [vmem:[#allocation3 + $0x60] sm:$0xff] }
 0x3f6   : > { %v3500_v55 = vpop.f32.mrf.mxu2 }
 0x3f7   : > { %6293 = vmatmul.msk.f32.gmra.mxu0 %vm257_vm1, %v8029_v57  ;;  %v3778_v59 = vpop.f32.mrf.mxu3  ;;  %v3560_v9 = vadd.f32 %v3500_v55, %v3282_v6  ;;  %v3283_v57 = vadd.f32 %v8209_v45, %v8276_v46 }
 0x3f8   : > { %6205 = vmatmul.msk.f32.gmra.mxu1 %vm257_vm1, %v8282_v18 }
 0x3f9   : > { %v3838_v16 = vadd.f32 %v3778_v59, %v3560_v9 }
 0x3fb   : > { %6224 = vmatmul.msk.f32.gmra.mxu2 %vm257_vm1, %v8541_v34  ;;  %v8546_v32 = vadd.f32 %v4056_v38, %v3838_v16  ;;  %v3284_v38 = vadd.f32 %v8209_v45, %v8294_v22 }
 0x3fc   : > { %v4065_v47 = vpop.f32.mrf.mxu0  ;;  %6258 = vmatmul.msk.f32.gmra.mxu3 %vm257_vm1, %v4690_v43 }
 0x3fd   : > { %v8550_v61 = vpop.f32.mrf.mxu1 }
 0x3fe   : > { %v3503_v6 = vpop.f32.mrf.mxu2 }
 0x3ff   : > { %6294 = vmatmul.msk.f32.gmra.mxu0 %vm257_vm1, %v8048_v51  ;;  %v3781_v55 = vpop.f32.mrf.mxu3  ;;  %v3561_v59 = vadd.f32 %v3503_v6, %v3283_v57 }
 0x400   : > { %6206 = vmatmul.msk.f32.gmra.mxu1 %vm257_vm1, %v8300_v50 }
 0x401   : > { %v3839_v9 = vadd.f32 %v3781_v55, %v3561_v59 }
 0x403   : > { %6225 = vmatmul.msk.f32.gmra.mxu2 %vm257_vm1, %v7993_v20  ;;  %v8559_v46 = vadd.f32 %v4059_v49, %v3839_v9  ;;  %v4692_v20 = vld [vmem:[#allocation3 + $0x68] sm:$0xff]  ;;  %v3285_v49 = vadd.f32 %v8209_v45, %v8312_v2 }
 0x404   : > { %v4068_v7 = vpop.f32.mrf.mxu0  ;;  %6259 = vmatmul.msk.f32.gmra.mxu3 %vm257_vm1, %v4691_v5 }
 0x405   : > { %v8563_v51 = vpop.f32.mrf.mxu1 }
 0x406   : > { %v3506_v16 = vpop.f32.mrf.mxu2 }
 0x407   : > { %6295 = vmatmul.msk.f32.gmra.mxu0 %vm257_vm1, %v8067_v42  ;;  %v3784_v43 = vpop.f32.mrf.mxu3  ;;  %v3562_v57 = vadd.f32 %v3506_v16, %v3284_v38 }
 0x408   : > { %6207 = vmatmul.msk.f32.gmra.mxu1 %vm257_vm1, %v8318_v13 }
 0x409   : > { %v3840_v6 = vadd.f32 %v3784_v43, %v3562_v57 }
 0x40b   : > { %6226 = vmatmul.msk.f32.gmra.mxu2 %vm257_vm1, %v8012_v39  ;;  %v8572_v22 = vadd.f32 %v4062_v1, %v3840_v6  ;;  %v4693_v39 = vld [vmem:[#allocation3 + $0x78] sm:$0xff]  ;;  %v3286_v1 = vadd.f32 %v8209_v45, %v8330_v3 }
 0x40c   : > { %v4071_v55 = vpop.f32.mrf.mxu0  ;;  %6260 = vmatmul.msk.f32.gmra.mxu3 %vm257_vm1, %v4692_v20 }
 0x40d   : > { %v8576_v42 = vpop.f32.mrf.mxu1 }
 0x40e   : > { %v3509_v5 = vpop.f32.mrf.mxu2 }
 0x40f   : > { %6296 = vmatmul.msk.f32.gmra.mxu0 %vm257_vm1, %v8088_v44  ;;  %v3787_v59 = vpop.f32.mrf.mxu3  ;;  %v3563_v9 = vadd.f32 %v3509_v5, %v3285_v49 }
 0x410   : > { %6208 = vmatmul.msk.f32.gmra.mxu1 %vm257_vm1, %v8336_v60 }
 0x411   : > { %v3841_v38 = vadd.f32 %v3787_v59, %v3563_v9 }
 0x413   : > { %6227 = vmatmul.msk.f32.gmra.mxu2 %vm257_vm1, %v8031_v37  ;;  %v8585_v2 = vadd.f32 %v4065_v47, %v3841_v38  ;;  %v4694_v37 = vld [vmem:[#allocation3 + $0x80] sm:$0xff]  ;;  %v3287_v47 = vadd.f32 %v8209_v45, %v8348_v31 }
 0x414   : > { %v4074_v16 = vpop.f32.mrf.mxu0  ;;  %6261 = vmatmul.msk.f32.gmra.mxu3 %vm257_vm1, %v4693_v39 }
 0x415   : > { %v8589_v44 = vpop.f32.mrf.mxu1 }
 0x416   : > { %v3512_v43 = vpop.f32.mrf.mxu2 }
 0x417   : > { %6297 = vmatmul.msk.f32.gmra.mxu0 %vm257_vm1, %v8113_v28  ;;  %v3790_v57 = vpop.f32.mrf.mxu3  ;;  %v3564_v6 = vadd.f32 %v3512_v43, %v3286_v1 }
 0x418   : > { %6209 = vmatmul.msk.f32.gmra.mxu1 %vm257_vm1, %v8354_v29 }
 0x419   : > { %v3842_v20 = vadd.f32 %v3790_v57, %v3564_v6 }
 0x41b   : > { %6228 = vmatmul.msk.f32.gmra.mxu2 %vm257_vm1, %v8050_v27  ;;  %v8598_v3 = vadd.f32 %v4068_v7, %v3842_v20  ;;  %v4695_v27 = vld [vmem:[#allocation3 + $0x90] sm:$0xff]  ;;  %v3288_v7 = vadd.f32 %v8209_v45, %v8366_v19 }
 0x41c   : > { %v4077_v49 = vpop.f32.mrf.mxu0  ;;  %6262 = vmatmul.msk.f32.gmra.mxu3 %vm257_vm1, %v4694_v37 }
 0x41d   : > { %v8602_v28 = vpop.f32.mrf.mxu1 }
 0x41e   : > { %v3515_v5 = vpop.f32.mrf.mxu2 }
 0x41f   : > { %6298 = vmatmul.msk.f32.gmra.mxu0 %vm257_vm1, %v8144_v8  ;;  %v3793_v59 = vpop.f32.mrf.mxu3  ;;  %v3565_v9 = vadd.f32 %v3515_v5, %v3287_v47 }
 0x420   : > { %6210 = vmatmul.msk.f32.gmra.mxu1 %vm257_vm1, %v8372_v14 }
 0x421   : > { %v3843_v38 = vadd.f32 %v3793_v59, %v3565_v9  ;;  %v9388_v9 = vld [vmem:[#allocation50_spill] sm:$0xff] }
 0x423   : > { %6229 = vmatmul.msk.f32.gmra.mxu2 %vm257_vm1, %v8069_v48  ;;  %v8611_v31 = vadd.f32 %v4071_v55, %v3843_v38  ;;  %v4696_v48 = vld [vmem:[#allocation3 + $0x98] sm:$0xff]  ;;  %v3289_v55 = vadd.f32 %v8209_v45, %v8384_v25  ;;  %v3290_v38 = vadd.f32 %v8209_v45, %v8402_v56  ;;  %v3291_v56 = vadd.f32 %v8209_v45, %v8420_v24 }
 0x424   : > { %v4080_v39 = vpop.f32.mrf.mxu0  ;;  %6263 = vmatmul.msk.f32.gmra.mxu3 %vm257_vm1, %v4695_v27 }
 0x425   : > { %v8615_v8 = vpop.f32.mrf.mxu1 }
 0x426   : > { %v3518_v1 = vpop.f32.mrf.mxu2 }
 0x427   : > { %6299 = vmatmul.msk.f32.gmra.mxu0 %vm257_vm1, %v8166_v4  ;;  %v3796_v43 = vpop.f32.mrf.mxu3  ;;  %v3566_v57 = vadd.f32 %v3518_v1, %v3288_v7 }
 0x428   : > { %6211 = vmatmul.msk.f32.gmra.mxu1 %vm257_vm1, %v8390_v12 }
 0x429   : > { %v3844_v6 = vadd.f32 %v3796_v43, %v3566_v57  ;;  %v4698_v57 = vld [vmem:[#allocation3 + $0xb0] sm:$0xff] }
 0x42b   : > { %6230 = vmatmul.msk.f32.gmra.mxu2 %vm257_vm1, %v8090_v21  ;;  %v8624_v19 = vadd.f32 %v4074_v16, %v3844_v6  ;;  %v4697_v21 = vld [vmem:[#allocation3 + $0xa8] sm:$0xff]  ;;  %v9389_v6 = vld [vmem:[#allocation45_spill] sm:$0xff] }
 0x42c   : > { %v4083_v20 = vpop.f32.mrf.mxu0  ;;  %6264 = vmatmul.msk.f32.gmra.mxu3 %vm257_vm1, %v4696_v48 }
 0x42d   : > { %v8628_v4 = vpop.f32.mrf.mxu1 }
 0x42e   : > { %v3521_v37 = vpop.f32.mrf.mxu2 }
 0x42f   : > { %6300 = vmatmul.msk.f32.gmra.mxu0 %vm257_vm1, %v8186_v15  ;;  %v3799_v47 = vpop.f32.mrf.mxu3  ;;  %v3567_v5 = vadd.f32 %v3521_v37, %v3289_v55 }
 0x430   : > { %6212 = vmatmul.msk.f32.gmra.mxu1 %vm257_vm1, %v8408_v41 }
 0x431   : > { %v3845_v59 = vadd.f32 %v3799_v47, %v3567_v5 }
 0x433   : > { %6231 = vmatmul.msk.f32.gmra.mxu2 %vm257_vm1, %v9388_v9  ;;  %v8637_v25 = vadd.f32 %v4077_v49, %v3845_v59  ;;  %v4699_v59 = vld [vmem:[#allocation3 + $0xc0] sm:$0xff] }
 0x434   : > { %6265 = vmatmul.msk.f32.gmra.mxu3 %vm257_vm1, %v4697_v21  ;;  %v4086_v16 = vpop.f32.mrf.mxu0  ;;  %v9390_v21 = vld [vmem:[#allocation52_spill] sm:$0xff] }
 0x435   : > { %v8641_v15 = vpop.f32.mrf.mxu1 }
 0x436   : > { %v3524_v27 = vpop.f32.mrf.mxu2 }
 0x437   : > { %6301 = vmatmul.msk.f32.gmra.mxu0 %vm257_vm1, %v8211_v10  ;;  %v3802_v7 = vpop.f32.mrf.mxu3  ;;  %v3568_v1 = vadd.f32 %v3524_v27, %v3290_v38 }
 0x438   : > { %6213 = vmatmul.msk.f32.gmra.mxu1 %vm257_vm1, %v8426_v52 }
 0x439   : > { %v3846_v43 = vadd.f32 %v3802_v7, %v3568_v1 }
 0x43b   : > { %6232 = vmatmul.msk.f32.gmra.mxu2 %vm257_vm1, %v9389_v6  ;;  %v8650_v49 = vadd.f32 %v4080_v39, %v3846_v43  ;;  %v3292_v39 = vadd.f32 %v8209_v45, %v8440_v35  ;;  %v4700_v43 = vld [vmem:[#allocation3 + $0xc8] sm:$0xff] }
 0x43c   : > { %6266 = vmatmul.msk.f32.gmra.mxu3 %vm257_vm1, %v4698_v57  ;;  %v4089_v10 = vpop.f32.mrf.mxu0  ;;  %v9391_v57 = vld [vmem:[#allocation47_spill] sm:$0xff] }
 0x43d   : > { %v8654_v48 = vpop.f32.mrf.mxu1 }
 0x43e   : > { %v3527_v55 = vpop.f32.mrf.mxu2 }
 0x43f   : > { %6302 = vmatmul.msk.f32.gmra.mxu0 %vm257_vm1, %v8228_v33  ;;  %v3805_v37 = vpop.f32.mrf.mxu3  ;;  %v3569_v47 = vadd.f32 %v3527_v55, %v3291_v56 }
 0x440   : > { %6214 = vmatmul.msk.f32.gmra.mxu1 %vm257_vm1, %v8446_v63 }
 0x441   : > { %v3847_v5 = vadd.f32 %v3805_v37, %v3569_v47 }
 0x443   : > { %6233 = vmatmul.msk.f32.gmra.mxu2 %vm257_vm1, %v9390_v21  ;;  %v8663_v24 = vadd.f32 %v4083_v20, %v3847_v5  ;;  %v3293_v20 = vadd.f32 %v8209_v45, %v8460_v23  ;;  %v4701_v5 = vld [vmem:[#allocation3 + $0xd8] sm:$0xff] }
 0x444   : > { %6267 = vmatmul.msk.f32.gmra.mxu3 %vm257_vm1, %v4699_v59  ;;  %v4092_v7 = vpop.f32.mrf.mxu0  ;;  %v9392_v59 = vld [vmem:[#allocation54_spill] sm:$0xff] }
 0x445   : > { %v8667_v9 = vpop.f32.mrf.mxu1 }
 0x446   : > { %v3530_v33 = vpop.f32.mrf.mxu2 }
 0x447   : > { %6303 = vmatmul.msk.f32.gmra.mxu0 %vm257_vm1, %v8246_v36  ;;  %v3808_v38 = vpop.f32.mrf.mxu3  ;;  %v3570_v27 = vadd.f32 %v3530_v33, %v3292_v39 }
 0x448   : > { %6215 = vmatmul.msk.f32.gmra.mxu1 %vm257_vm1, %v8466_v17 }
 0x449   : > { %v3848_v1 = vadd.f32 %v3808_v38, %v3570_v27  ;;  %v8697_v27 = vld [vmem:[#allocation3 + $0x181] sm:$0xff] }
 0x44b   : > { %6234 = vmatmul.msk.f32.gmra.mxu2 %vm257_vm1, %v9391_v57  ;;  %v8676_v35 = vadd.f32 %v4086_v16, %v3848_v1  ;;  %v9394_v16 = vld [vmem:[#allocation48_spill] sm:$0xff] }
 0x44c   : > { %6268 = vmatmul.msk.f32.gmra.mxu3 %vm257_vm1, %v4700_v43  ;;  %v4095_v47 = vpop.f32.mrf.mxu0  ;;  %v3294_v21 = vadd.f32 %v8209_v45, %v9394_v16  ;;  %v4702_v43 = vld [vmem:[#allocation3 + $0xe0] sm:$0xff]  ;;  %v4703_v16 = vld [vmem:[#allocation3 + $0xf0] sm:$0xff] }
 0x44d   : > { %v8680_v36 = vpop.f32.mrf.mxu1 }
 0x44e   : > { %v3533_v6 = vpop.f32.mrf.mxu2 }
 0x44f   : > { %6304 = vmatmul.msk.f32.gmra.mxu0 %vm257_vm1, %v8264_v11  ;;  %v3811_v56 = vpop.f32.mrf.mxu3  ;;  %v3571_v55 = vadd.f32 %v3533_v6, %v3293_v20 }
 0x450   : > { %6216 = vmatmul.msk.f32.gmra.mxu1 %vm257_vm1, %v8484_v40 }
 0x451   : > { %v3849_v37 = vadd.f32 %v3811_v56, %v3571_v55 }
 0x453   : > { %6235 = vmatmul.msk.f32.gmra.mxu2 %vm257_vm1, %v9392_v59  ;;  %v8689_v23 = vadd.f32 %v4089_v10, %v3849_v37  ;;  %v9395_v10 = vld [vmem:[#allocation49_spill] sm:$0xff] }
 0x454   : > { %6269 = vmatmul.msk.f32.gmra.mxu3 %vm257_vm1, %v4701_v5  ;;  %v5115_v57 = vpop.f32.mrf.mxu0  ;;  %v8712_v5 = vld [vmem:[#allocation3 + $0x189] sm:$0xff] }
 0x455   : > { %9393 = vst [vmem:[#allocation50_spill] sm:$0xff] %v8689_v23  ;;  %v8693_v11 = vpop.f32.mrf.mxu1 }
 0x456   : > { %v3536_v39 = vpop.f32.mrf.mxu2 }
 0x457   : > { %6305 = vmatmul.msk.f32.gmra.mxu0 %vm257_vm1, %v8282_v18  ;;  %v3814_v33 = vpop.f32.mrf.mxu3  ;;  %v3572_v38 = vadd.f32 %v3536_v39, %v3294_v21  ;;  %v3295_v18 = vadd.f32 %v8209_v45, %v8496_v54  ;;  %v9399_v54 = vld [vmem:[#allocation56_spill] sm:$0xff] }
 0x458   : > { %6217 = vmatmul.msk.f32.gmra.mxu1 %vm257_vm1, %v8697_v27 }
 0x459   : > { %v3850_v1 = vadd.f32 %v3814_v33, %v3572_v38 }
 0x45b   : > { %6236 = vmatmul.msk.f32.gmra.mxu2 %vm257_vm1, %v9395_v10  ;;  %v8704_v20 = vadd.f32 %v4092_v7, %v3850_v1  ;;  %v9397_v7 = vld [vmem:[#allocation51_spill] sm:$0xff]  ;;  %v4704_v10 = vld [vmem:[#allocation3 + $0xf8] sm:$0xff] }
 0x45c   : > { %6270 = vmatmul.msk.f32.gmra.mxu3 %vm257_vm1, %v4702_v43  ;;  %v5118_v21 = vpop.f32.mrf.mxu0 }
 0x45d   : > { %9396 = vst [vmem:[#allocation45_spill] sm:$0xff] %v8704_v20  ;;  %v8708_v6 = vpop.f32.mrf.mxu1 }
 0x45e   : > { %v3539_v56 = vpop.f32.mrf.mxu2 }
 0x45f   : > { %6306 = vmatmul.msk.f32.gmra.mxu0 %vm257_vm1, %v8300_v50  ;;  %v3817_v55 = vpop.f32.mrf.mxu3  ;;  %v3573_v37 = vadd.f32 %v3539_v56, %v3295_v18  ;;  %v4376_v50 = vadd.f32 %v8508_v62, %v9399_v54  ;;  %v9400_v18 = vld [vmem:[#allocation53_spill] sm:$0xff]  ;;  %v9402_v54 = vld [vmem:[#allocation55_spill] sm:$0xff] }
 0x460   : > { %6218 = vmatmul.msk.f32.gmra.mxu1 %vm257_vm1, %v8712_v5 }
 0x461   : > { %v3851_v59 = vadd.f32 %v3817_v55, %v3573_v37 }
 0x463   : > { %6237 = vmatmul.msk.f32.gmra.mxu2 %vm257_vm1, %v9397_v7  ;;  %v8719_v45 = vadd.f32 %v4095_v47, %v3851_v59  ;;  %v9401_v47 = vld [vmem:[#allocation58_spill] sm:$0xff]  ;;  %v4705_v7 = vld [vmem:[#allocation3 + $0x108] sm:$0xff] }
 0x464   : > { %6271 = vmatmul.msk.f32.gmra.mxu3 %vm257_vm1, %v4703_v16  ;;  %v4377_v56 = vadd.f32 %v8520_v58, %v9401_v47  ;;  %v9404_v47 = vld [vmem:[#allocation57_spill] sm:$0xff] }
 0x465   : > { %9398 = vst [vmem:[#allocation52_spill] sm:$0xff] %v8719_v45  ;;  %v8723_v39 = vpop.f32.mrf.mxu1 }
 0x466   : > { %v4558_v33 = vpop.f32.mrf.mxu2 }
 0x467   : > { %6307 = vmatmul.msk.f32.gmra.mxu0 %vm257_vm1, %v8318_v13  ;;  %v4837_v38 = vpop.f32.mrf.mxu3  ;;  %v4654_v1 = vadd.f32 %v4558_v33, %v4376_v50 }
 0x468   : > { %6323 = vmatmul.msk.f32.vlgmr.msra.gmra.mxu1 %vm257_vm1, %v8526_v26  ;;  %v5121_v26 = vpop.f32.mrf.mxu0 }
 0x469   : > { %v4933_v43 = vadd.f32 %v4837_v38, %v4654_v1  ;;  %v5245_v1 = vld [vmem:[#allocation3 + $0x4a] sm:$0xff] }
 0x46b   : > { %6238 = vmatmul.msk.f32.gmra.mxu2 %vm257_vm1, %v9400_v18  ;;  %v8732_v62 = vadd.f32 %v5115_v57, %v4933_v43  ;;  %v9403_v57 = vld [vmem:[#allocation60_spill] sm:$0xff] }
 0x46c   : > { %6272 = vmatmul.msk.f32.gmra.mxu3 %vm257_vm1, %v4704_v10  ;;  %v4378_v50 = vadd.f32 %v8535_v53, %v9403_v57  ;;  %v4706_v18 = vld [vmem:[#allocation3 + $0x110] sm:$0xff] }
 0x46d   : > { %v8736_v55 = vpop.f32.mrf.mxu1 }
 0x46e   : > { %v4561_v13 = vpop.f32.mrf.mxu2 }
 0x46f   : > { %6308 = vmatmul.msk.f32.gmra.mxu0 %vm257_vm1, %v8336_v60  ;;  %v4840_v37 = vpop.f32.mrf.mxu3  ;;  %v4655_v59 = vadd.f32 %v4561_v13, %v4377_v56 }
 0x470   : > { %6324 = vmatmul.msk.f32.gmra.mxu1 %vm257_vm1, %v8541_v34  ;;  %v5124_v43 = vpop.f32.mrf.mxu0 }
 0x471   : > { %v4934_v16 = vadd.f32 %v4840_v37, %v4655_v59 }
 0x473   : > { %6239 = vmatmul.msk.f32.gmra.mxu2 %vm257_vm1, %v9402_v54  ;;  %v8745_v58 = vadd.f32 %v5118_v21, %v4934_v16  ;;  %v9405_v21 = vld [vmem:[#allocation62_spill] sm:$0xff]  ;;  %v5246_v16 = vld [vmem:[#allocation3 + $0x52] sm:$0xff] }
 0x474   : > { %6273 = vmatmul.msk.f32.gmra.mxu3 %vm257_vm1, %v4705_v7  ;;  %v4379_v56 = vadd.f32 %v8550_v61, %v9405_v21  ;;  %v4707_v54 = vld [vmem:[#allocation3 + $0x120] sm:$0xff]  ;;  %v9408_v21 = vld [vmem:[#allocation61_spill] sm:$0xff] }
 0x475   : > { %v8749_v60 = vpop.f32.mrf.mxu1 }
 0x476   : > { %v4564_v33 = vpop.f32.mrf.mxu2 }
 0x477   : > { %6309 = vmatmul.msk.f32.gmra.mxu0 %vm257_vm1, %v8354_v29  ;;  %v4843_v38 = vpop.f32.mrf.mxu3  ;;  %v4656_v34 = vadd.f32 %v4564_v33, %v4378_v50  ;;  %v9406_v50 = vld [vmem:[#allocation59_spill] sm:$0xff] }
 0x478   : > { %6325 = vmatmul.msk.f32.gmra.mxu1 %vm257_vm1, %v5245_v1  ;;  %v5127_v57 = vpop.f32.mrf.mxu0 }
 0x479   : > { %v4935_v10 = vadd.f32 %v4843_v38, %v4656_v34 }
 0x47b   : > { %6240 = vmatmul.msk.f32.gmra.mxu2 %vm257_vm1, %v9404_v47  ;;  %v8757_v53 = vadd.f32 %v5121_v26, %v4935_v10  ;;  %v9407_v26 = vld [vmem:[#allocation64_spill] sm:$0xff]  ;;  %v5247_v10 = vld [vmem:[#allocation3 + $0x62] sm:$0xff] }
 0x47c   : > { %6274 = vmatmul.msk.f32.gmra.mxu3 %vm257_vm1, %v4706_v18  ;;  %v4380_v33 = vadd.f32 %v8563_v51, %v9407_v26  ;;  %v4708_v47 = vld [vmem:[#allocation3 + $0x128] sm:$0xff]  ;;  %v9409_v51 = vld [vmem:[#allocation66_spill] sm:$0xff]  ;;  %v9410_v26 = vld [vmem:[#allocation65_spill] sm:$0xff] }
 0x47d   : > { %v8761_v29 = vpop.f32.mrf.mxu1 }
 0x47e   : > { %v4567_v13 = vpop.f32.mrf.mxu2 }
 0x47f   : > { %6310 = vmatmul.msk.f32.gmra.mxu0 %vm257_vm1, %v8372_v14  ;;  %v4846_v37 = vpop.f32.mrf.mxu3  ;;  %v4657_v59 = vadd.f32 %v4567_v13, %v4379_v56  ;;  %v4381_v56 = vadd.f32 %v8576_v42, %v9409_v51  ;;  %v9412_v51 = vld [vmem:[#allocation69_spill] sm:$0xff] }
 0x480   : > { %6326 = vmatmul.msk.f32.gmra.mxu1 %vm257_vm1, %v5246_v16  ;;  %v5130_v13 = vpop.f32.mrf.mxu0 }
 0x481   : > { %v4936_v7 = vadd.f32 %v4846_v37, %v4657_v59 }
 0x483   : > { %6241 = vmatmul.msk.f32.gmra.mxu2 %vm257_vm1, %v9406_v50  ;;  %v8769_v61 = vadd.f32 %v5124_v43, %v4936_v7  ;;  %v5248_v7 = vld [vmem:[#allocation3 + $0x6a] sm:$0xff]  ;;  %v4709_v50 = vld [vmem:[#allocation3 + $0x138] sm:$0xff] }
 0x484   : > { %6275 = vmatmul.msk.f32.gmra.mxu3 %vm257_vm1, %v4707_v54 }
 0x485   : > { %v8773_v14 = vpop.f32.mrf.mxu1 }
 0x486   : > { %v4570_v38 = vpop.f32.mrf.mxu2 }
 0x487   : > { %6311 = vmatmul.msk.f32.gmra.mxu0 %vm257_vm1, %v8390_v12  ;;  %v4849_v34 = vpop.f32.mrf.mxu3  ;;  %v4658_v1 = vadd.f32 %v4570_v38, %v4380_v33 }
 0x488   : > { %6327 = vmatmul.msk.f32.gmra.mxu1 %vm257_vm1, %v5247_v10  ;;  %v5249_v10 = vld [vmem:[#allocation3 + $0x7a] sm:$0xff] }
 0x489   : > { %v4937_v18 = vadd.f32 %v4849_v34, %v4658_v1 }
 0x48b   : > { %6242 = vmatmul.msk.f32.gmra.mxu2 %vm257_vm1, %v9408_v21  ;;  %v8781_v43 = vadd.f32 %v5127_v57, %v4937_v18  ;;  %v9411_v57 = vld [vmem:[#allocation63_spill] sm:$0xff]  ;;  %v5133_v18 = vpop.f32.mrf.mxu0  ;;  %v4710_v21 = vld [vmem:[#allocation3 + $0x140] sm:$0xff] }
 0x48c   : > { %6276 = vmatmul.msk.f32.gmra.mxu3 %vm257_vm1, %v4708_v47  ;;  %v4382_v33 = vadd.f32 %v8589_v44, %v9411_v57  ;;  %v9414_v57 = vld [vmem:[#allocation72_spill] sm:$0xff] }
 0x48d   : > { %v8785_v12 = vpop.f32.mrf.mxu1 }
 0x48e   : > { %v4573_v37 = vpop.f32.mrf.mxu2 }
 0x48f   : > { %6312 = vmatmul.msk.f32.gmra.mxu0 %vm257_vm1, %v8408_v41  ;;  %v4852_v59 = vpop.f32.mrf.mxu3  ;;  %v4659_v16 = vadd.f32 %v4573_v37, %v4381_v56  ;;  %v9413_v56 = vld [vmem:[#allocation67_spill] sm:$0xff] }
 0x490   : > { %6328 = vmatmul.msk.f32.gmra.mxu1 %vm257_vm1, %v5248_v7 }
 0x491   : > { %v4938_v54 = vadd.f32 %v4852_v59, %v4659_v16  ;;  %v5250_v16 = vld [vmem:[#allocation3 + $0x82] sm:$0xff] }
 0x493   : > { %6243 = vmatmul.msk.f32.gmra.mxu2 %vm257_vm1, %v9410_v26  ;;  %v8793_v42 = vadd.f32 %v5130_v13, %v4938_v54  ;;  %v4383_v13 = vadd.f32 %v8602_v28, %v9413_v56  ;;  %v4711_v26 = vld [vmem:[#allocation3 + $0x150] sm:$0xff] }
 0x494   : > { %6277 = vmatmul.msk.f32.gmra.mxu3 %vm257_vm1, %v4709_v50  ;;  %v5136_v50 = vpop.f32.mrf.mxu0  ;;  %v9417_v56 = vld [vmem:[#allocation40_spill] sm:$0xff] }
 0x495   : > { %v8797_v38 = vpop.f32.mrf.mxu1 }
 0x496   : > { %v4576_v41 = vpop.f32.mrf.mxu2 }
 0x497   : > { %6313 = vmatmul.msk.f32.gmra.mxu0 %vm257_vm1, %v8426_v52  ;;  %v4855_v34 = vpop.f32.mrf.mxu3  ;;  %v4660_v1 = vadd.f32 %v4576_v41, %v4382_v33  ;;  %v4712_v41 = vld [vmem:[#allocation3 + $0x158] sm:$0xff] }
 0x498   : > { %6329 = vmatmul.msk.f32.gmra.mxu1 %vm257_vm1, %v5249_v10  ;;  %v5252_v10 = vld [vmem:[#allocation3 + $0x9a] sm:$0xff] }
 0x499   : > { %v4939_v47 = vadd.f32 %v4855_v34, %v4660_v1  ;;  %v9415_v34 = vld [vmem:[#allocation39_spill] sm:$0xff] }
 0x49b   : > { %6244 = vmatmul.msk.f32.gmra.mxu2 %vm257_vm1, %v9412_v51  ;;  %v8805_v44 = vadd.f32 %v5133_v18, %v4939_v47  ;;  %v4713_v18 = vld [vmem:[#allocation3 + $0x168] sm:$0xff]  ;;  %v9416_v47 = vld [vmem:[#allocation41_spill] sm:$0xff]  ;;  %v4714_v51 = vld [vmem:[#allocation3 + $0x170] sm:$0xff] }
 0x49c   : > { %6278 = vmatmul.msk.f32.gmra.mxu3 %vm257_vm1, %v4710_v21  ;;  %v5253_v21 = vld [vmem:[#allocation3 + $0xaa] sm:$0xff] }
 0x49d   : > { %v8809_v52 = vpop.f32.mrf.mxu1 }
 0x49e   : > { %v4579_v37 = vpop.f32.mrf.mxu2 }
 0x49f   : > { %6314 = vmatmul.msk.f32.gmra.mxu0 %vm257_vm1, %v8446_v63  ;;  %v4661_v59 = vadd.f32 %v4579_v37, %v4383_v13  ;;  %v4858_v7 = vpop.f32.mrf.mxu3  ;;  %v5251_v63 = vld [vmem:[#allocation3 + $0x92] sm:$0xff] }
 0x4a0   : > { %6330 = vmatmul.msk.f32.gmra.mxu1 %vm257_vm1, %v5250_v16  ;;  %v5254_v13 = vld [vmem:[#allocation3 + $0xb2] sm:$0xff] }
 0x4a1   : > { %v4940_v54 = vadd.f32 %v4858_v7, %v4661_v59  ;;  %v4995_v37 = vld [vmem:[#allocation3 + $0x199] sm:$0xff]  ;;  %v5255_v7 = vld [vmem:[#allocation3 + $0xc2] sm:$0xff] }
 0x4a2   : > { %v9418_v59 = vld [vmem:[#allocation70_spill] sm:$0xff] }
 0x4a3   : > { %6245 = vmatmul.msk.f32.gmra.mxu2 %vm257_vm1, %v9414_v57  ;;  %v8817_v28 = vadd.f32 %v5136_v50, %v4940_v54  ;;  %v4996_v54 = vld [vmem:[#allocation3 + $0x1a1] sm:$0xff]  ;;  %v9421_v50 = vld [vmem:[#allocation44_spill] sm:$0xff] }
 0x4a4   : > { %6279 = vmatmul.msk.f32.gmra.mxu3 %vm257_vm1, %v4711_v26  ;;  %v5256_v57 = vld [vmem:[#allocation3 + $0xca] sm:$0xff] }
 0x4a5   : > { %v8819_v33 = vpop.f32.mrf.mxu1 }
 0x4a7   : > { %6315 = vmatmul.msk.f32.gmra.mxu0 %vm257_vm1, %v8466_v17 }
 0x4a8   : > { %6331 = vmatmul.msk.f32.gmra.mxu1 %vm257_vm1, %v5251_v63  ;;  %v4717_v63 = vld [vmem:[#allocation3 + $0x198] sm:$0xff] }
 0x4ab   : > { %6246 = vmatmul.msk.f32.gmra.mxu2 %vm257_vm1, %v9415_v34 }
 0x4ac   : > { %6280 = vmatmul.msk.f32.gmra.mxu3 %vm257_vm1, %v4712_v41  ;;  %v8864_v41 = vld [vmem:[#allocation3 + $0x182] sm:$0xff] }
 0x4ad   : > { %v8827_v1 = vpop.f32.mrf.mxu1 }
 0x4af   : > { %6316 = vmatmul.msk.f32.gmra.mxu0 %vm257_vm1, %v8484_v40 }
 0x4b0   : > { %6332 = vmatmul.msk.f32.gmra.mxu1 %vm257_vm1, %v5252_v10  ;;  %v5257_v10 = vld [vmem:[#allocation3 + $0xda] sm:$0xff] }
 0x4b3   : > { %6247 = vmatmul.msk.f32.gmra.mxu2 %vm257_vm1, %v9416_v47  ;;  %v8872_v47 = vld [vmem:[#allocation3 + $0x18a] sm:$0xff] }
 0x4b4   : > { %6281 = vmatmul.msk.f32.gmra.mxu3 %vm257_vm1, %v4713_v18  ;;  %v4718_v18 = vld [vmem:[#allocation3 + $0x1a0] sm:$0xff] }
 0x4b5   : > { %v8835_v17 = vpop.f32.mrf.mxu1 }
 0x4b7   : > { %6317 = vmatmul.msk.f32.gmra.mxu0 %vm257_vm1, %v8697_v27  ;;  %v9419_v27 = vld [vmem:[#allocation43_spill] sm:$0xff] }
 0x4b8   : > { %6333 = vmatmul.msk.f32.gmra.mxu1 %vm257_vm1, %v5253_v21 }
 0x4bb   : > { %6248 = vmatmul.msk.f32.gmra.mxu2 %vm257_vm1, %v9417_v56 }
 0x4bc   : > { %6282 = vmatmul.msk.f32.gmra.mxu3 %vm257_vm1, %v4714_v51  ;;  %v5258_v51 = vld [vmem:[#allocation3 + $0xe2] sm:$0xff] }
 0x4bd   : > { %v8843_v40 = vpop.f32.mrf.mxu1 }
 0x4bf   : > { %6318 = vmatmul.msk.f32.gmra.mxu0 %vm257_vm1, %v8712_v5  ;;  %v9422_v5 = vld [vmem:[#allocation68_spill] sm:$0xff] }
 0x4c0   : > { %6334 = vmatmul.msk.f32.gmra.mxu1 %vm257_vm1, %v5254_v13 }
 0x4c3   : > { %6249 = vmatmul.msk.f32.gmra.mxu2 %vm257_vm1, %v9418_v59  ;;  %v9426_v59 = vld [vmem:[#allocation6_spill] sm:$0xff] }
 0x4c4   : > { %6283 = vmatmul.msk.f32.gmra.mxu3 %vm257_vm1, %v9419_v27 }
 0x4c5   : > { %v8852_v16 = vpop.f32.mrf.mxu1 }
 0x4c6   : > { %9420 = vst [vmem:[#allocation47_spill] sm:$0xff] %v8852_v16 }
 0x4c7   : > { %6319 = vmatmul.msk.f32.gmra.mxu0 %vm257_vm1, %v4995_v37  ;;  %v5259_v37 = vld [vmem:[#allocation3 + $0xf2] sm:$0xff] }
 0x4c8   : > { %6335 = vmatmul.msk.f32.gmra.mxu1 %vm257_vm1, %v5255_v7 }
 0x4cb   : > { %6250 = vmatmul.msk.f32.gmra.mxu2 %vm257_vm1, %v9421_v50 }
 0x4cc   : > { %6284 = vmatmul.msk.f32.gmra.mxu3 %vm257_vm1, %v9422_v5 }
 0x4cd   : > { %v8860_v26 = vpop.f32.mrf.mxu1 }
 0x4ce   : > { %9423 = vst [vmem:[#allocation54_spill] sm:$0xff] %v8860_v26 }
 0x4cf   : > { %6320 = vmatmul.msk.f32.gmra.mxu0 %vm257_vm1, %v4996_v54  ;;  %v8890_v54 = vpop.f32.mrf.mxu2 }
 0x4d0   : > { %6336 = vmatmul.msk.f32.gmra.mxu1 %vm257_vm1, %v5256_v57  ;;  %v5260_v57 = vld [vmem:[#allocation3 + $0xfa] sm:$0xff] }
 0x4d3   : > { %6251 = vmatmul.msk.f32.gmra.mxu2 %vm257_vm1, %v8864_v41 }
 0x4d4   : > { %6285 = vmatmul.msk.f32.gmra.mxu3 %vm257_vm1, %v4717_v63  ;;  %v9427_v63 = vld [vmem:[#allocation8_spill] sm:$0xff] }
 0x4d5   : > { %v8869_v34 = vpop.f32.mrf.mxu1 }
 0x4d6   : > { %9424 = vst [vmem:[#allocation48_spill] sm:$0xff] %v8869_v34 }
 0x4d8   : > { %6337 = vmatmul.msk.f32.gmra.mxu1 %vm257_vm1, %v5257_v10 }
 0x4db   : > { %6252 = vmatmul.msk.f32.gmra.mxu2 %vm257_vm1, %v8872_v47 }
 0x4dc   : > { %6286 = vmatmul.msk.f32.gmra.mxu3 %vm257_vm1, %v4718_v18  ;;  %v8897_v18 = vpop.f32.mrf.mxu3 }
 0x4dd   : > { %v8877_v21 = vpop.f32.mrf.mxu1 }
 0x4de   : > { %9425 = vst [vmem:[#allocation49_spill] sm:$0xff] %v8877_v21 }
 0x4e0   : > { %6338 = vmatmul.msk.f32.gmra.mxu1 %vm257_vm1, %v5258_v51 }
 0x4e5   : > { %v5393_v56 = vpop.f32.mrf.mxu1 }
 0x4e6   : > { %v5489_v13 = vadd.f32 %v5393_v56, %v8732_v62  ;;  %v8899_v56 = vpop.f32.mrf.mxu0 }
 0x4e8   : > { %v5521_v27 = vadd.f32 %v5489_v13, %v9426_v59  ;;  %6339 = vmatmul.msk.f32.gmra.mxu1 %vm257_vm1, %v5259_v37  ;;  %v8901_v37 = vpop.f32.mrf.mxu2 }
 0x4ea   : > { %vm5553_vm7 = vcmp.ge.f32.partialorder %v5521_v27, 0.0  ;;  %v5585_v7 = vmul.f32 0.2, %v5521_v27 }
 0x4ec   : > { %v5617_v50 = vsel %vm5553_vm7, %v5521_v27, %v5585_v7  ;;  %v5261_v27 = vld [vmem:[#allocation3 + $0x10a] sm:$0xff]  ;;  %v9428_v7 = vld [vmem:[#allocation10_spill] sm:$0xff] }
 0x4ed   : > { %5649 = vst.msk [vmem:[%s8888_s21] sm:$0xff] %vm257_vm1, %v5617_v50  ;;  %v5396_v62 = vpop.f32.mrf.mxu1 }
 0x4ee   : > { %v5490_v5 = vadd.f32 %v5396_v62, %v8745_v58 }
 0x4f0   : > { %v5522_v10 = vadd.f32 %v5490_v5, %v9427_v63  ;;  %6340 = vmatmul.msk.f32.gmra.mxu1 %vm257_vm1, %v5260_v57  ;;  %v8908_v5 = vpop.f32.mrf.mxu3 }
 0x4f2   : > { %vm5554_vm8 = vcmp.ge.f32.partialorder %v5522_v10, 0.0  ;;  %v5586_v51 = vmul.f32 0.2, %v5522_v10 }
 0x4f4   : > { %v5618_v13 = vsel %vm5554_vm8, %v5522_v10, %v5586_v51  ;;  %v8912_v10 = vpop.f32.mrf.mxu0 }
 0x4f5   : > { %5650 = vst.msk [vmem:[%s8888_s21 + $0x8] sm:$0xff] %vm257_vm1, %v5618_v13  ;;  %v5399_v59 = vpop.f32.mrf.mxu1  ;;  %v8915_v13 = vpop.f32.mrf.mxu2 }
 0x4f6   : > { %v5491_v58 = vadd.f32 %v5399_v59, %v8757_v53  ;;  %v5262_v53 = vld [vmem:[#allocation3 + $0x112] sm:$0xff] }
 0x4f7   : > { %v9429_v59 = vld [vmem:[#allocation12_spill] sm:$0xff] }
 0x4f8   : > { %v5523_v50 = vadd.f32 %v5491_v58, %v9428_v7  ;;  %6341 = vmatmul.msk.f32.gmra.mxu1 %vm257_vm1, %v5261_v27  ;;  %v8919_v21 = vpop.f32.mrf.mxu3 }
 0x4fa   : > { %vm5555_vm9 = vcmp.ge.f32.partialorder %v5523_v50, 0.0  ;;  %v5587_v62 = vmul.f32 0.2, %v5523_v50 }
 0x4fc   : > { %v5619_v57 = vsel %vm5555_vm9, %v5523_v50, %v5587_v62 }
 0x4fd   : > { %5651 = vst.msk [vmem:[%s8888_s21 + $0x10] sm:$0xff] %vm257_vm1, %v5619_v57  ;;  %v5402_v63 = vpop.f32.mrf.mxu1  ;;  %v5263_v57 = vld [vmem:[#allocation3 + $0x122] sm:$0xff] }
 0x4fe   : > { %v5492_v51 = vadd.f32 %v5402_v63, %v8769_v61  ;;  %v8924_v61 = vpop.f32.mrf.mxu0  ;;  %v9430_v63 = vld [vmem:[#allocation14_spill] sm:$0xff] }
 0x500   : > { %v5524_v58 = vadd.f32 %v5492_v51, %v9429_v59  ;;  %6342 = vmatmul.msk.f32.gmra.mxu1 %vm257_vm1, %v5262_v53  ;;  %v8928_v51 = vpop.f32.mrf.mxu2 }
 0x502   : > { %vm5556_vm10 = vcmp.ge.f32.partialorder %v5524_v58, 0.0  ;;  %v5588_v27 = vmul.f32 0.2, %v5524_v58 }
 0x504   : > { %v5620_v7 = vsel %vm5556_vm10, %v5524_v58, %v5588_v27 }
 0x505   : > { %5652 = vst.msk [vmem:[%s8888_s21 + $0x18] sm:$0xff] %vm257_vm1, %v5620_v7  ;;  %v5405_v50 = vpop.f32.mrf.mxu1  ;;  %v8933_v7 = vpop.f32.mrf.mxu3 }
 0x506   : > { %v5493_v62 = vadd.f32 %v5405_v50, %v8781_v43  ;;  %v5264_v43 = vld [vmem:[#allocation3 + $0x12a] sm:$0xff] }
 0x507   : > { %v9431_v50 = vld [vmem:[#allocation16_spill] sm:$0xff] }
 0x508   : > { %v5525_v45 = vadd.f32 %v5493_v62, %v9430_v63  ;;  %6343 = vmatmul.msk.f32.gmra.mxu1 %vm257_vm1, %v5263_v57  ;;  %v8937_v62 = vpop.f32.mrf.mxu0  ;;  %v8939_v63 = vpop.f32.mrf.mxu2 }
 0x50a   : > { %vm5557_vm11 = vcmp.ge.f32.partialorder %v5525_v45, 0.0  ;;  %v5589_v53 = vmul.f32 0.2, %v5525_v45 }
 0x50c   : > { %v5621_v59 = vsel %vm5557_vm11, %v5525_v45, %v5589_v53 }
 0x50d   : > { %5653 = vst.msk [vmem:[%s8888_s21 + $0x20] sm:$0xff] %vm257_vm1, %v5621_v59  ;;  %v5408_v58 = vpop.f32.mrf.mxu1  ;;  %v5265_v59 = vld [vmem:[#allocation3 + $0x13a] sm:$0xff] }
 0x50e   : > { %v5494_v27 = vadd.f32 %v5408_v58, %v8793_v42  ;;  %v9432_v58 = vld [vmem:[#allocation18_spill] sm:$0xff] }
 0x510   : > { %v5526_v34 = vadd.f32 %v5494_v27, %v9431_v50  ;;  %6344 = vmatmul.msk.f32.gmra.mxu1 %vm257_vm1, %v5264_v43  ;;  %v8946_v27 = vpop.f32.mrf.mxu3  ;;  %v9433_v43 = vld [vmem:[#allocation71_spill] sm:$0xff] }
 0x511   : > { %v4384_v50 = vadd.f32 %v8615_v8, %v9433_v43  ;;  %v9435_v43 = vld [vmem:[#allocation35_spill] sm:$0xff] }
 0x512   : > { %vm5558_vm12 = vcmp.ge.f32.partialorder %v5526_v34, 0.0  ;;  %v5590_v57 = vmul.f32 0.2, %v5526_v34 }
 0x513   : > { %v4662_v23 = vadd.f32 %v8890_v54, %v4384_v50  ;;  %v4385_v54 = vadd.f32 %v8628_v4, %v9435_v43 }
 0x514   : > { %v5622_v45 = vsel %vm5558_vm12, %v5526_v34, %v5590_v57  ;;  %v8951_v34 = vpop.f32.mrf.mxu0 }
 0x515   : > { %5654 = vst.msk [vmem:[%s8888_s21 + $0x28] sm:$0xff] %vm257_vm1, %v5622_v45  ;;  %v5411_v53 = vpop.f32.mrf.mxu1  ;;  %v8953_v45 = vpop.f32.mrf.mxu2  ;;  %v4663_v50 = vadd.f32 %v8901_v37, %v4385_v54  ;;  %v9437_v37 = vld [vmem:[#allocation36_spill] sm:$0xff] }
 0x516   : > { %v5495_v42 = vadd.f32 %v5411_v53, %v8805_v44 }
 0x517   : > { %v4942_v4 = vadd.f32 %v8908_v5, %v4663_v50  ;;  %v5268_v50 = vld [vmem:[#allocation3 + $0x15a] sm:$0xff] }
 0x518   : > { %v5527_v20 = vadd.f32 %v5495_v42, %v9432_v58  ;;  %6345 = vmatmul.msk.f32.gmra.mxu1 %vm257_vm1, %v5265_v59  ;;  %v5266_v42 = vld [vmem:[#allocation3 + $0x142] sm:$0xff]  ;;  %v4941_v59 = vadd.f32 %v8897_v18, %v4662_v23  ;;  %v9434_v58 = vld [vmem:[#allocation20_spill] sm:$0xff] }
 0x519   : > { %v5220_v54 = vadd.f32 %v8912_v10, %v4942_v4 }
 0x51a   : > { %vm5559_vm13 = vcmp.ge.f32.partialorder %v5527_v20, 0.0  ;;  %v5591_v26 = vmul.f32 0.2, %v5527_v20  ;;  %v5219_v16 = vadd.f32 %v8899_v56, %v4941_v59 }
 0x51c   : > { %v5623_v57 = vsel %vm5559_vm13, %v5527_v20, %v5591_v26  ;;  %v8963_v26 = vpop.f32.mrf.mxu3 }
 0x51d   : > { %5655 = vst.msk [vmem:[%s8888_s21 + $0x30] sm:$0xff] %vm257_vm1, %v5623_v57  ;;  %v5414_v44 = vpop.f32.mrf.mxu1 }
 0x51e   : > { %v5496_v53 = vadd.f32 %v5414_v44, %v8817_v28  ;;  %v8969_v28 = vpop.f32.mrf.mxu0  ;;  %v8971_v44 = vpop.f32.mrf.mxu2 }
 0x520   : > { %v5528_v8 = vadd.f32 %v5496_v53, %v9434_v58  ;;  %6346 = vmatmul.msk.f32.gmra.mxu1 %vm257_vm1, %v5266_v42  ;;  %v5267_v53 = vld [vmem:[#allocation3 + $0x152] sm:$0xff]  ;;  %v9436_v42 = vld [vmem:[#allocation22_spill] sm:$0xff] }
 0x522   : > { %vm5560_vm14 = vcmp.ge.f32.partialorder %v5528_v8, 0.0  ;;  %v5592_v20 = vmul.f32 0.2, %v5528_v8 }
 0x524   : > { %v5624_v57 = vsel %vm5560_vm14, %v5528_v8, %v5592_v20  ;;  %v4386_v8 = vadd.f32 %v8641_v15, %v9437_v37  ;;  %v9438_v15 = vld [vmem:[#allocation24_spill] sm:$0xff] }
 0x525   : > { %5656 = vst.msk [vmem:[%s8888_s21 + $0x38] sm:$0xff] %vm257_vm1, %v5624_v57  ;;  %v5417_v23 = vpop.f32.mrf.mxu1 }
 0x526   : > { %v5497_v18 = vadd.f32 %v5417_v23, %v5219_v16  ;;  %v4664_v59 = vadd.f32 %v8915_v13, %v4386_v8  ;;  %v8980_v16 = vpop.f32.mrf.mxu3  ;;  %v8985_v23 = vpop.f32.mrf.mxu0 }
 0x527   : > { %v8989_v13 = vpop.f32.mrf.mxu2 }
 0x528   : > { %v5529_v58 = vadd.f32 %v5497_v18, %v9436_v42  ;;  %6347 = vmatmul.msk.f32.gmra.mxu1 %vm257_vm1, %v5267_v53  ;;  %v4943_v57 = vadd.f32 %v8919_v21, %v4664_v59  ;;  %v9439_v53 = vld [vmem:[#allocation38_spill] sm:$0xff]  ;;  %v5269_v59 = vld [vmem:[#allocation3 + $0x16a] sm:$0xff] }
 0x529   : > { %v4387_v10 = vadd.f32 %v8654_v48, %v9439_v53  ;;  %v9441_v48 = vld [vmem:[#allocation42_spill] sm:$0xff] }
 0x52a   : > { %vm5561_vm15 = vcmp.ge.f32.partialorder %v5529_v58, 0.0  ;;  %v5593_v56 = vmul.f32 0.2, %v5529_v58  ;;  %v5221_v37 = vadd.f32 %v8924_v61, %v4943_v57 }
 0x52b   : > { %v4665_v42 = vadd.f32 %v8928_v51, %v4387_v10  ;;  %v5270_v10 = vld [vmem:[#allocation3 + $0x172] sm:$0xff] }
 0x52c   : > { %v5625_v43 = vsel %vm5561_vm15, %v5529_v58, %v5593_v56 }
 0x52d   : > { %5657 = vst.msk [vmem:[%s8888_s21 + $0x40] sm:$0xff] %vm257_vm1, %v5625_v43  ;;  %v5420_v5 = vpop.f32.mrf.mxu1  ;;  %v4944_v43 = vadd.f32 %v8933_v7, %v4665_v42  ;;  %v9442_v42 = vld [vmem:[#allocation28_spill] sm:$0xff] }
 0x52e   : > { %v5498_v20 = vadd.f32 %v5420_v5, %v5220_v54  ;;  %v4882_v56 = vpop.f32.mrf.mxu3  ;;  %v9440_v54 = vld [vmem:[#allocation26_spill] sm:$0xff]  ;;  %v9002_v51 = vpop.f32.mrf.mxu0 }
 0x530   : > { %v5530_v18 = vadd.f32 %v5498_v20, %v9438_v15  ;;  %6348 = vmatmul.msk.f32.gmra.mxu1 %vm257_vm1, %v5268_v50  ;;  %v4388_v20 = vadd.f32 %v8667_v9, %v9441_v48  ;;  %v4606_v50 = vpop.f32.mrf.mxu2 }
 0x532   : > { %vm5562_vm2 = vcmp.ge.f32.partialorder %v5530_v18, 0.0  ;;  %v5594_v4 = vmul.f32 0.2, %v5530_v18  ;;  %v4666_v57 = vadd.f32 %v8939_v63, %v4388_v20  ;;  %v9444_v20 = vld [vmem:[#allocation30_spill] sm:$0xff] }
 0x534   : > { %v5626_v58 = vsel %vm5562_vm2, %v5530_v18, %v5594_v4  ;;  %v5222_v18 = vadd.f32 %v8937_v62, %v4944_v43  ;;  %v4945_v4 = vadd.f32 %v8946_v27, %v4666_v57 }
 0x535   : > { %5658 = vst.msk [vmem:[%s8888_s21 + $0x48] sm:$0xff] %vm257_vm1, %v5626_v58  ;;  %v5423_v21 = vpop.f32.mrf.mxu1 }
 0x536   : > { %v5499_v8 = vadd.f32 %v5423_v21, %v5221_v37  ;;  %v4885_v58 = vpop.f32.mrf.mxu3  ;;  %v9443_v37 = vld [vmem:[#allocation46_spill] sm:$0xff]  ;;  %v5223_v43 = vadd.f32 %v8951_v34, %v4945_v4  ;;  %v9445_v4 = vld [vmem:[#allocation32_spill] sm:$0xff] }
 0x537   : > { %v4389_v21 = vadd.f32 %v8680_v36, %v9443_v37  ;;  %v4390_v36 = vadd.f32 %v8693_v11, %v8492_v30  ;;  %v4391_v30 = vadd.f32 %v8708_v6, %v8504_v0  ;;  %v9447_v6 = vld [vmem:[#allocation73_spill] sm:$0xff] }
 0x538   : > { %v5531_v5 = vadd.f32 %v5499_v8, %v9440_v54  ;;  %6349 = vmatmul.msk.f32.gmra.mxu1 %vm257_vm1, %v5269_v59  ;;  %v9014_v8 = vpop.f32.mrf.mxu0  ;;  %v4609_v54 = vpop.f32.mrf.mxu2 }
 0x539   : > { %v4667_v62 = vadd.f32 %v8953_v45, %v4389_v21  ;;  %v4668_v34 = vadd.f32 %v8971_v44, %v4390_v36  ;;  %v5273_v21 = vld [vmem:[#allocation3 + $0x19a] sm:$0xff] }
 0x53a   : > { %vm5563_vm3 = vcmp.ge.f32.partialorder %v5531_v5, 0.0  ;;  %v5595_v61 = vmul.f32 0.2, %v5531_v5 }
 0x53b   : > { %v4946_v48 = vadd.f32 %v8963_v26, %v4667_v62 }
 0x53c   : > { %v5627_v15 = vsel %vm5563_vm3, %v5531_v5, %v5595_v61 }
 0x53d   : > { %5659 = vst.msk [vmem:[%s8888_s21 + $0x50] sm:$0xff] %vm257_vm1, %v5627_v15  ;;  %v5426_v7 = vpop.f32.mrf.mxu1 }
 0x53e   : > { %v5500_v53 = vadd.f32 %v5426_v7, %v5222_v18  ;;  %v4888_v57 = vpop.f32.mrf.mxu3  ;;  %v5224_v18 = vadd.f32 %v8969_v28, %v4946_v48  ;;  %v4669_v28 = vadd.f32 %v8989_v13, %v4391_v30  ;;  %v4392_v13 = vadd.f32 %v8723_v39, %v9447_v6 }
 0x540   : > { %v5532_v9 = vadd.f32 %v5500_v53, %v9442_v42  ;;  %6350 = vmatmul.msk.f32.gmra.mxu1 %vm257_vm1, %v5270_v10  ;;  %v5166_v7 = vpop.f32.mrf.mxu0  ;;  %v4612_v10 = vpop.f32.mrf.mxu2  ;;  %v4948_v62 = vadd.f32 %v4882_v56, %v4669_v28  ;;  %v5274_v56 = vld [vmem:[#allocation3 + $0x1a2] sm:$0xff] }
 0x542   : > { %vm5564_vm4 = vcmp.ge.f32.partialorder %v5532_v9, 0.0  ;;  %v5596_v63 = vmul.f32 0.2, %v5532_v9  ;;  %v5226_v48 = vadd.f32 %v9002_v51, %v4948_v62 }
 0x544   : > { %v5628_v59 = vsel %vm5564_vm4, %v5532_v9, %v5596_v63 }
 0x545   : > { %5660 = vst.msk [vmem:[%s8888_s21 + $0x58] sm:$0xff] %vm257_vm1, %v5628_v59  ;;  %v5429_v27 = vpop.f32.mrf.mxu1 }
 0x546   : > { %v5501_v5 = vadd.f32 %v5429_v27, %v5223_v43  ;;  %v4891_v37 = vpop.f32.mrf.mxu3 }
 0x548   : > { %v5533_v61 = vadd.f32 %v5501_v5, %v9444_v20  ;;  %6351 = vmatmul.msk.f32.gmra.mxu1 %vm257_vm1, %v8864_v41  ;;  %v4947_v41 = vadd.f32 %v8980_v16, %v4668_v34  ;;  %v5169_v59 = vpop.f32.mrf.mxu0  ;;  %v4615_v0 = vpop.f32.mrf.mxu2  ;;  %v9448_v34 = vld [vmem:[#allocation5_spill] sm:$0xff] }
 0x54a   : > { %vm5565_vm0 = vcmp.ge.f32.partialorder %v5533_v61, 0.0  ;;  %v5597_v45 = vmul.f32 0.2, %v5533_v61  ;;  %v5225_v9 = vadd.f32 %v8985_v23, %v4947_v41  ;;  %v4670_v23 = vadd.f32 %v4606_v50, %v4392_v13 }
 0x54b   : > { %v4395_v13 = vadd.f32 %v8761_v29, %v8559_v46 }
 0x54c   : > { %v5629_v15 = vsel %vm5565_vm0, %v5533_v61, %v5597_v45  ;;  %v4949_v45 = vadd.f32 %v4885_v58, %v4670_v23 }
 0x54d   : > { %5661 = vst.msk [vmem:[%s8888_s21 + $0x60] sm:$0xff] %vm257_vm1, %v5629_v15  ;;  %v5432_v26 = vpop.f32.mrf.mxu1 }
 0x54e   : > { %v5502_v53 = vadd.f32 %v5432_v26, %v5224_v18  ;;  %v4894_v36 = vpop.f32.mrf.mxu3  ;;  %v9449_v18 = vld [vmem:[#allocation74_spill] sm:$0xff] }
 0x54f   : > { %v4393_v39 = vadd.f32 %v8736_v55, %v9449_v18  ;;  %v4394_v55 = vadd.f32 %v8749_v60, %v8546_v32 }
 0x550   : > { %v5534_v42 = vadd.f32 %v5502_v53, %v9445_v4  ;;  %6352 = vmatmul.msk.f32.gmra.mxu1 %vm257_vm1, %v8872_v47  ;;  %v9446_v47 = vld [vmem:[#allocation4_spill] sm:$0xff]  ;;  %v5172_v26 = vpop.f32.mrf.mxu0  ;;  %v4618_v53 = vpop.f32.mrf.mxu2  ;;  %v5227_v4 = vadd.f32 %v9014_v8, %v4949_v45  ;;  %v4396_v45 = vadd.f32 %v8773_v14, %v8572_v22 }
 0x551   : > { %v4671_v51 = vadd.f32 %v4609_v54, %v4393_v39 }
 0x552   : > { %vm5566_vm5 = vcmp.ge.f32.partialorder %v5534_v42, 0.0  ;;  %v5598_v11 = vmul.f32 0.2, %v5534_v42  ;;  %v4674_v29 = vadd.f32 %v4618_v53, %v4396_v45 }
 0x553   : > { %v4950_v30 = vadd.f32 %v4888_v57, %v4671_v51  ;;  %v9451_v57 = vld [vmem:[#allocation9_spill] sm:$0xff] }
 0x554   : > { %v5630_v44 = vsel %vm5566_vm5, %v5534_v42, %v5598_v11  ;;  %v9450_v11 = vld [vmem:[#allocation7_spill] sm:$0xff]  ;;  %v9453_v51 = vld [vmem:[#allocation13_spill] sm:$0xff] }
 0x555   : > { %5662 = vst.msk [vmem:[%s8888_s21 + $0x68] sm:$0xff] %vm257_vm1, %v5630_v44  ;;  %v5435_v16 = vpop.f32.mrf.mxu1 }
 0x556   : > { %v5503_v63 = vadd.f32 %v5435_v16, %v5225_v9  ;;  %v4897_v44 = vpop.f32.mrf.mxu3  ;;  %v4672_v16 = vadd.f32 %v4612_v10, %v4394_v55  ;;  %v4398_v55 = vadd.f32 %v8797_v38, %v8598_v3 }
 0x557   : > { %v4953_v39 = vadd.f32 %v4897_v44, %v4674_v29 }
 0x558   : > { %v5535_v43 = vadd.f32 %v5503_v63, %v9446_v47  ;;  %6353 = vmatmul.msk.f32.gmra.mxu1 %vm257_vm1, %v5273_v21  ;;  %v5175_v21 = vpop.f32.mrf.mxu0  ;;  %v5228_v63 = vadd.f32 %v5166_v7, %v4950_v30  ;;  %v4621_v62 = vpop.f32.mrf.mxu2 }
 0x55a   : > { %vm5567_vm6 = vcmp.ge.f32.partialorder %v5535_v43, 0.0  ;;  %v5599_v27 = vmul.f32 0.2, %v5535_v43 }
 0x55c   : > { %v5631_v5 = vsel %vm5567_vm6, %v5535_v43, %v5599_v27  ;;  %v4951_v43 = vadd.f32 %v4891_v37, %v4672_v16  ;;  %v4673_v27 = vadd.f32 %v4615_v0, %v4395_v13  ;;  %v9452_v37 = vld [vmem:[#allocation11_spill] sm:$0xff] }
 0x55d   : > { %5663 = vst.msk [vmem:[%s8888_s21 + $0x70] sm:$0xff] %vm257_vm1, %v5631_v5  ;;  %v5438_v20 = vpop.f32.mrf.mxu1 }
 0x55e   : > { %v5504_v61 = vadd.f32 %v5438_v20, %v5226_v48  ;;  %v4900_v60 = vpop.f32.mrf.mxu3  ;;  %v5229_v23 = vadd.f32 %v5169_v59, %v4951_v43 }
 0x560   : > { %v5536_v15 = vadd.f32 %v5504_v61, %v9448_v34  ;;  %6354 = vmatmul.msk.f32.gmra.mxu1 %vm257_vm1, %v5274_v56  ;;  %v5178_v5 = vpop.f32.mrf.mxu0  ;;  %v4624_v20 = vpop.f32.mrf.mxu2  ;;  %v4952_v56 = vadd.f32 %v4894_v36, %v4673_v27 }
 0x561   : > { %v4676_v16 = vadd.f32 %v4624_v20, %v4398_v55  ;;  %v4400_v20 = vadd.f32 %v8819_v33, %v8624_v19 }
 0x562   : > { %vm5568_vm7 = vcmp.ge.f32.partialorder %v5536_v15, 0.0  ;;  %v5600_v50 = vmul.f32 0.2, %v5536_v15  ;;  %v5230_v0 = vadd.f32 %v5172_v26, %v4952_v56 }
 0x564   : > { %v5632_v41 = vsel %vm5568_vm7, %v5536_v15, %v5600_v50 }
 0x565   : > { %5664 = vst.msk [vmem:[%s8888_s21 + $0x78] sm:$0xff] %vm257_vm1, %v5632_v41  ;;  %v5441_v42 = vpop.f32.mrf.mxu1 }
 0x566   : > { %v5505_v58 = vadd.f32 %v5441_v42, %v5227_v4  ;;  %v4903_v15 = vpop.f32.mrf.mxu3  ;;  %v4397_v4 = vadd.f32 %v8785_v12, %v8585_v2  ;;  %v5231_v42 = vadd.f32 %v5175_v21, %v4953_v39 }
 0x568   : > { %v5537_v28 = vadd.f32 %v5505_v58, %v9450_v11  ;;  %v5181_v50 = vpop.f32.mrf.mxu0  ;;  %v4627_v41 = vpop.f32.mrf.mxu2  ;;  %v4675_v14 = vadd.f32 %v4621_v62, %v4397_v4 }
 0x56a   : > { %vm5569_vm8 = vcmp.ge.f32.partialorder %v5537_v28, 0.0  ;;  %v5601_v9 = vmul.f32 0.2, %v5537_v28  ;;  %v4954_v11 = vadd.f32 %v4900_v60, %v4675_v14  ;;  %v9458_v14 = vld [vmem:[#allocation23_spill] sm:$0xff] }
 0x56c   : > { %v5633_v54 = vsel %vm5569_vm8, %v5537_v28, %v5601_v9  ;;  %v9454_v28 = vld [vmem:[#allocation15_spill] sm:$0xff] }
 0x56d   : > { %5665 = vst.msk [vmem:[%s8888_s21 + $0x80] sm:$0xff] %vm257_vm1, %v5633_v54  ;;  %v5444_v8 = vpop.f32.mrf.mxu1 }
 0x56e   : > { %v5506_v47 = vadd.f32 %v5444_v8, %v5228_v63  ;;  %v4906_v30 = vpop.f32.mrf.mxu3  ;;  %v5232_v63 = vadd.f32 %v5178_v5, %v4954_v11  ;;  %v4955_v8 = vadd.f32 %v4903_v15, %v4676_v16  ;;  %v9456_v5 = vld [vmem:[#allocation19_spill] sm:$0xff]  ;;  %v9457_v15 = vld [vmem:[#allocation21_spill] sm:$0xff] }
 0x570   : > { %v5538_v6 = vadd.f32 %v5506_v47, %v9451_v57  ;;  %v5184_v9 = vpop.f32.mrf.mxu0  ;;  %v4630_v12 = vpop.f32.mrf.mxu2  ;;  %v9455_v47 = vld [vmem:[#allocation17_spill] sm:$0xff]  ;;  %v5233_v60 = vadd.f32 %v5181_v50, %v4955_v8 }
 0x571   : > { %v4678_v56 = vadd.f32 %v4630_v12, %v4400_v20  ;;  %v4403_v12 = vadd.f32 %v8843_v40, %v8663_v24  ;;  %v9463_v20 = vld [vmem:[#allocation50_spill] sm:$0xff] }
 0x572   : > { %vm5570_vm9 = vcmp.ge.f32.partialorder %v5538_v6, 0.0  ;;  %v5602_v32 = vmul.f32 0.2, %v5538_v6 }
 0x574   : > { %v5634_v10 = vsel %vm5570_vm9, %v5538_v6, %v5602_v32  ;;  %v4399_v6 = vadd.f32 %v8809_v52, %v8611_v31 }
 0x575   : > { %5666 = vst.msk [vmem:[%s8888_s21 + $0x88] sm:$0xff] %vm257_vm1, %v5634_v10  ;;  %v5447_v7 = vpop.f32.mrf.mxu1 }
 0x576   : > { %v5507_v48 = vadd.f32 %v5447_v7, %v5229_v23  ;;  %v4909_v57 = vpop.f32.mrf.mxu3  ;;  %v4677_v13 = vadd.f32 %v4627_v41, %v4399_v6 }
 0x578   : > { %v5539_v61 = vadd.f32 %v5507_v48, %v9452_v37  ;;  %v5187_v38 = vpop.f32.mrf.mxu0  ;;  %v4633_v27 = vpop.f32.mrf.mxu2  ;;  %v4956_v7 = vadd.f32 %v4906_v30, %v4677_v13 }
 0x57a   : > { %vm5571_vm10 = vcmp.ge.f32.partialorder %v5539_v61, 0.0  ;;  %v5603_v46 = vmul.f32 0.2, %v5539_v61 }
 0x57c   : > { %v5635_v34 = vsel %vm5571_vm10, %v5539_v61, %v5603_v46  ;;  %v5234_v61 = vadd.f32 %v5184_v9, %v4956_v7  ;;  %v9459_v9 = vld [vmem:[#allocation25_spill] sm:$0xff] }
 0x57d   : > { %5667 = vst.msk [vmem:[%s8888_s21 + $0x90] sm:$0xff] %vm257_vm1, %v5635_v34  ;;  %v5450_v59 = vpop.f32.mrf.mxu1 }
 0x57e   : > { %v5508_v18 = vadd.f32 %v5450_v59, %v5230_v0  ;;  %v4912_v52 = vpop.f32.mrf.mxu3  ;;  %v4957_v0 = vadd.f32 %v4909_v57, %v4678_v56 }
 0x580   : > { %v5540_v36 = vadd.f32 %v5508_v18, %v9453_v51  ;;  %v5190_v46 = vpop.f32.mrf.mxu0  ;;  %v4636_v34 = vpop.f32.mrf.mxu2  ;;  %v4401_v18 = vadd.f32 %v8827_v1, %v8637_v25  ;;  %v5235_v50 = vadd.f32 %v5187_v38, %v4957_v0 }
 0x582   : > { %vm5572_vm11 = vcmp.ge.f32.partialorder %v5540_v36, 0.0  ;;  %v5604_v22 = vmul.f32 0.2, %v5540_v36  ;;  %v4679_v33 = vadd.f32 %v4633_v27, %v4401_v18 }
 0x584   : > { %v5636_v53 = vsel %vm5572_vm11, %v5540_v36, %v5604_v22  ;;  %v4958_v22 = vadd.f32 %v4912_v52, %v4679_v33  ;;  %v9467_v33 = vld [vmem:[#allocation48_spill] sm:$0xff] }
 0x585   : > { %5668 = vst.msk [vmem:[%s8888_s21 + $0x98] sm:$0xff] %vm257_vm1, %v5636_v53  ;;  %v5453_v26 = vpop.f32.mrf.mxu1 }
 0x586   : > { %v5509_v58 = vadd.f32 %v5453_v26, %v5231_v42  ;;  %v4915_v51 = vpop.f32.mrf.mxu3  ;;  %v4402_v26 = vadd.f32 %v8835_v17, %v8650_v49  ;;  %v5236_v30 = vadd.f32 %v5190_v46, %v4958_v22 }
 0x588   : > { %v5541_v44 = vadd.f32 %v5509_v58, %v9454_v28  ;;  %v5193_v4 = vpop.f32.mrf.mxu0  ;;  %v4639_v42 = vpop.f32.mrf.mxu2  ;;  %v4680_v1 = vadd.f32 %v4636_v34, %v4402_v26  ;;  %v9468_v26 = vld [vmem:[#allocation34_spill] sm:$0xff] }
 0x58a   : > { %vm5573_vm12 = vcmp.ge.f32.partialorder %v5541_v44, 0.0  ;;  %v5605_v2 = vmul.f32 0.2, %v5541_v44  ;;  %v4959_v55 = vadd.f32 %v4915_v51, %v4680_v1 }
 0x58c   : > { %v5637_v54 = vsel %vm5573_vm12, %v5541_v44, %v5605_v2 }
 0x58d   : > { %5669 = vst.msk [vmem:[%s8888_s21 + $0xa0] sm:$0xff] %vm257_vm1, %v5637_v54  ;;  %v5456_v21 = vpop.f32.mrf.mxu1  ;;  %v4681_v54 = vadd.f32 %v4639_v42, %v4403_v12 }
 0x58e   : > { %v5510_v62 = vadd.f32 %v5456_v21, %v5232_v63  ;;  %v4918_v44 = vpop.f32.mrf.mxu3  ;;  %v5237_v21 = vadd.f32 %v5193_v4, %v4959_v55 }
 0x590   : > { %v5542_v43 = vadd.f32 %v5510_v62, %v9455_v47  ;;  %v5196_v16 = vpop.f32.mrf.mxu0  ;;  %v4642_v17 = vpop.f32.mrf.mxu2  ;;  %v4960_v47 = vadd.f32 %v4918_v44, %v4681_v54 }
 0x592   : > { %vm5574_vm13 = vcmp.ge.f32.partialorder %v5542_v43, 0.0  ;;  %v5606_v3 = vmul.f32 0.2, %v5542_v43 }
 0x594   : > { %v5638_v32 = vsel %vm5574_vm13, %v5542_v43, %v5606_v3  ;;  %v9460_v43 = vld [vmem:[#allocation27_spill] sm:$0xff] }
 0x595   : > { %5670 = vst.msk [vmem:[%s8888_s21 + $0xa8] sm:$0xff] %vm257_vm1, %v5638_v32  ;;  %v5459_v10 = vpop.f32.mrf.mxu1  ;;  %v9461_v3 = vld [vmem:[#allocation47_spill] sm:$0xff] }
 0x596   : > { %v5511_v23 = vadd.f32 %v5459_v10, %v5233_v60  ;;  %v4921_v6 = vpop.f32.mrf.mxu3  ;;  %v4404_v38 = vadd.f32 %v9461_v3, %v8676_v35  ;;  %v5238_v60 = vadd.f32 %v5196_v16, %v4960_v47 }
 0x598   : > { %v5543_v48 = vadd.f32 %v5511_v23, %v9456_v5  ;;  %v5199_v40 = vpop.f32.mrf.mxu0  ;;  %v4682_v13 = vadd.f32 %v4642_v17, %v4404_v38  ;;  %v4645_v27 = vpop.f32.mrf.mxu2  ;;  %v9462_v5 = vld [vmem:[#allocation29_spill] sm:$0xff] }
 0x599   : > { %v9471_v17 = vld [vmem:[#allocation33_spill] sm:$0xff] }
 0x59a   : > { %vm5575_vm14 = vcmp.ge.f32.partialorder %v5543_v48, 0.0  ;;  %v5607_v31 = vmul.f32 0.2, %v5543_v48  ;;  %v4961_v7 = vadd.f32 %v4921_v6, %v4682_v13 }
 0x59c   : > { %v5639_v37 = vsel %vm5575_vm14, %v5543_v48, %v5607_v31  ;;  %v9464_v31 = vld [vmem:[#allocation54_spill] sm:$0xff] }
 0x59d   : > { %5671 = vst.msk [vmem:[%s8888_s21 + $0xb0] sm:$0xff] %vm257_vm1, %v5639_v37  ;;  %v5462_v45 = vpop.f32.mrf.mxu1  ;;  %v4405_v52 = vadd.f32 %v9464_v31, %v9463_v20 }
 0x59e   : > { %v5512_v29 = vadd.f32 %v5462_v45, %v5234_v61  ;;  %v4924_v56 = vpop.f32.mrf.mxu3  ;;  %v5239_v45 = vadd.f32 %v5199_v40, %v4961_v7 }
 0x59f   : > { %v4683_v37 = vadd.f32 %v4645_v27, %v4405_v52 }
 0x5a0   : > { %v5544_v59 = vadd.f32 %v5512_v29, %v9457_v15  ;;  %v5202_v34 = vpop.f32.mrf.mxu0  ;;  %v4648_v0 = vpop.f32.mrf.mxu2 }
 0x5a1   : > { %v4962_v15 = vadd.f32 %v4924_v56, %v4683_v37 }
 0x5a2   : > { %vm5576_vm15 = vcmp.ge.f32.partialorder %v5544_v59, 0.0  ;;  %v5608_v19 = vmul.f32 0.2, %v5544_v59 }
 0x5a3   : > { %v5240_v4 = vadd.f32 %v5202_v34, %v4962_v15 }
 0x5a4   : > { %v5640_v39 = vsel %vm5576_vm15, %v5544_v59, %v5608_v19  ;;  %v9465_v59 = vld [vmem:[#allocation31_spill] sm:$0xff]  ;;  %v9466_v19 = vld [vmem:[#allocation45_spill] sm:$0xff] }
 0x5a5   : > { %5672 = vst.msk [vmem:[%s8888_s21 + $0xb8] sm:$0xff] %vm257_vm1, %v5640_v39  ;;  %v5465_v36 = vpop.f32.mrf.mxu1  ;;  %v4406_v39 = vadd.f32 %v9467_v33, %v9466_v19 }
 0x5a6   : > { %v5513_v41 = vadd.f32 %v5465_v36, %v5235_v50  ;;  %v4927_v51 = vpop.f32.mrf.mxu3 }
 0x5a7   : > { %v4684_v36 = vadd.f32 %v4648_v0, %v4406_v39 }
 0x5a8   : > { %v5545_v53 = vadd.f32 %v5513_v41, %v9458_v14  ;;  %v4651_v1 = vpop.f32.mrf.mxu2 }
 0x5a9   : > { %v4963_v42 = vadd.f32 %v4927_v51, %v4684_v36 }
 0x5aa   : > { %vm5577_vm2 = vcmp.ge.f32.partialorder %v5545_v53, 0.0  ;;  %v5609_v25 = vmul.f32 0.2, %v5545_v53 }
 0x5ac   : > { %v5641_v58 = vsel %vm5577_vm2, %v5545_v53, %v5609_v25  ;;  %v5205_v53 = vpop.f32.mrf.mxu0 }
 0x5ad   : > { %5673 = vst.msk [vmem:[%s8888_s21 + $0xc0] sm:$0xff] %vm257_vm1, %v5641_v58  ;;  %v5468_v11 = vpop.f32.mrf.mxu1  ;;  %v9469_v58 = vld [vmem:[#allocation52_spill] sm:$0xff]  ;;  %v5241_v44 = vadd.f32 %v5205_v53, %v4963_v42 }
 0x5ae   : > { %v5514_v28 = vadd.f32 %v5468_v11, %v5236_v30  ;;  %v9470_v30 = vld [vmem:[#allocation49_spill] sm:$0xff] }
 0x5af   : > { %v4407_v11 = vadd.f32 %v9470_v30, %v9469_v58 }
 0x5b0   : > { %v5546_v2 = vadd.f32 %v5514_v28, %v9459_v9 }
 0x5b1   : > { %v4685_v55 = vadd.f32 %v4651_v1, %v4407_v11 }
 0x5b2   : > { %vm5578_vm3 = vcmp.ge.f32.partialorder %v5546_v2, 0.0  ;;  %v5610_v49 = vmul.f32 0.2, %v5546_v2 }
 0x5b4   : > { %v5642_v63 = vsel %vm5578_vm3, %v5546_v2, %v5610_v49  ;;  %v4930_v2 = vpop.f32.mrf.mxu3 }
 0x5b5   : > { %5674 = vst.msk [vmem:[%s8888_s21 + $0xc8] sm:$0xff] %vm257_vm1, %v5642_v63  ;;  %v5471_v62 = vpop.f32.mrf.mxu1  ;;  %v4964_v49 = vadd.f32 %v4930_v2, %v4685_v55  ;;  %v5208_v63 = vpop.f32.mrf.mxu0 }
 0x5b6   : > { %v5515_v8 = vadd.f32 %v5471_v62, %v5237_v21 }
 0x5b7   : > { %v5242_v62 = vadd.f32 %v5208_v63, %v4964_v49 }
 0x5b8   : > { %v5547_v57 = vadd.f32 %v5515_v8, %v9460_v43 }
 0x5ba   : > { %vm5579_vm4 = vcmp.ge.f32.partialorder %v5547_v57, 0.0  ;;  %v5611_v24 = vmul.f32 0.2, %v5547_v57 }
 0x5bc   : > { %v5643_v32 = vsel %vm5579_vm4, %v5547_v57, %v5611_v24  ;;  %v9472_v57 = vld [vmem:[#allocation37_spill] sm:$0xff] }
 0x5bd   : > { %5675 = vst.msk [vmem:[%s8888_s21 + $0xd0] sm:$0xff] %vm257_vm1, %v5643_v32  ;;  %v5474_v10 = vpop.f32.mrf.mxu1 }
 0x5be   : > { %v5516_v23 = vadd.f32 %v5474_v10, %v5238_v60 }
 0x5c0   : > { %v5548_v48 = vadd.f32 %v5516_v23, %v9462_v5 }
 0x5c2   : > { %vm5580_vm0 = vcmp.ge.f32.partialorder %v5548_v48, 0.0  ;;  %v5612_v35 = vmul.f32 0.2, %v5548_v48 }
 0x5c4   : > { %v5644_v61 = vsel %vm5580_vm0, %v5548_v48, %v5612_v35 }
 0x5c5   : > { %5676 = vst.msk [vmem:[%s8888_s21 + $0xd8] sm:$0xff] %vm257_vm1, %v5644_v61  ;;  %v5477_v46 = vpop.f32.mrf.mxu1 }
 0x5c6   : > { %v5517_v29 = vadd.f32 %v5477_v46, %v5239_v45 }
 0x5c8   : > { %v5549_v18 = vadd.f32 %v5517_v29, %v9465_v59 }
 0x5ca   : > { %vm5581_vm5 = vcmp.ge.f32.partialorder %v5549_v18, 0.0  ;;  %v5613_v50 = vmul.f32 0.2, %v5549_v18 }
 0x5cc   : > { %v5645_v41 = vsel %vm5581_vm5, %v5549_v18, %v5613_v50 }
 0x5cd   : > { %5677 = vst.msk [vmem:[%s8888_s21 + $0xe0] sm:$0xff] %vm257_vm1, %v5645_v41  ;;  %v5480_v22 = vpop.f32.mrf.mxu1 }
 0x5ce   : > { %v5518_v14 = vadd.f32 %v5480_v22, %v5240_v4 }
 0x5d0   : > { %v5550_v25 = vadd.f32 %v5518_v14, %v9468_v26 }
 0x5d2   : > { %vm5582_vm6 = vcmp.ge.f32.partialorder %v5550_v25, 0.0  ;;  %v5614_v28 = vmul.f32 0.2, %v5550_v25 }
 0x5d4   : > { %v5646_v9 = vsel %vm5582_vm6, %v5550_v25, %v5614_v28 }
 0x5d5   : > { %5678 = vst.msk [vmem:[%s8888_s21 + $0xe8] sm:$0xff] %vm257_vm1, %v5646_v9  ;;  %v5483_v12 = vpop.f32.mrf.mxu1 }
 0x5d6   : > { %v5519_v16 = vadd.f32 %v5483_v12, %v5241_v44 }
 0x5d8   : > { %v5551_v54 = vadd.f32 %v5519_v16, %v9471_v17 }
 0x5da   : > { %vm5583_vm7 = vcmp.ge.f32.partialorder %v5551_v54, 0.0  ;;  %v5615_v21 = vmul.f32 0.2, %v5551_v54 }
 0x5dc   : > { %v5647_v8 = vsel %vm5583_vm7, %v5551_v54, %v5615_v21 }
 0x5dd   : > { %5679 = vst.msk [vmem:[%s8888_s21 + $0xf0] sm:$0xff] %vm257_vm1, %v5647_v8  ;;  %v5486_v47 = vpop.f32.mrf.mxu1 }
 0x5de   : > { %v5520_v43 = vadd.f32 %v5486_v47, %v5242_v62 }
 0x5e0   : > { %v5552_v6 = vadd.f32 %v5520_v43, %v9472_v57 }
 0x5e2   : > { %vm5584_vm8 = vcmp.ge.f32.partialorder %v5552_v6, 0.0  ;;  %v5616_v3 = vmul.f32 0.2, %v5552_v6 }
 0x5e4   : > { %v5648_v38 = vsel %vm5584_vm8, %v5552_v6, %v5616_v3 }
 0x5e5   : > { %5680 = vst.msk [vmem:[%s8888_s21 + $0xf8] sm:$0xff] %vm257_vm1, %v5648_v38 }
 0x5e6 PF: > { %s15_s18 = sadd.s32 1, %s6378_s18  }
 0x5e7   : > { %p12_p4 = scmp.ge.s32.totalorder %s15_s18, 4  }
 0x5e9   :  { %14 = sbr.rel (!%p12_p4) target bundleno = 1 (0x1), region = 92 }

</bundles_post_ra>
